<compile_context>
chip_gen: v6e
topology: v6e:2x2x1
jax: 0.10.0
libtpu: 0.0.40
codegen_flags: <defaults>
</compile_context>

<pallas_src>
import functools

import jax
import jax.numpy as jnp
from jax import lax
from jax.experimental import pallas as pl
from jax.experimental.pallas import tpu as pltpu

N_ETYPES = 6          # GatedGraphConv n_etypes
N_STEPS = 5           # GatedGraphConv n_steps
N_LSTM_LAYERS = 3     # Set2Set LSTM layers
LANE = 128            # vreg lane width


def _vmem_spec():
    return pl.BlockSpec(memory_space=pltpu.MemorySpace.VMEM)


# --------------------------------------------------------------------------
# Fused kernel: GatedGraphConv (5 GRU steps) -> Set2Set readout -> predict.
# --------------------------------------------------------------------------
def ggnn_fused_kernel(adj_ref, feat_ref, abias_ref, memb_ref,
                      wmsg_ref, gru_ref, lstmw_ref, predw_ref, out_ref,
                      msgv_ref, *, n_iters):
    feat0 = feat_ref[...]            # (N, D)   initial (padded) node features
    adj = adj_ref[...]               # (N, 6N)  adj[dst, t*N + src]
    abias = abias_ref[...]           # (N, D)   hoisted message-bias contribution
    memb = memb_ref[...]             # (B, N)   graph membership (0/1)
    N, D = feat0.shape
    B = memb.shape[0]
    NEG = jnp.float32(-1e30)

    # ---- packed conv parameters (all row offsets are multiples of 8) ----
    w_msg = wmsg_ref[...]            # (D, 6*128) lane-aligned per-etype blocks
    wih_r = gru_ref[0 * D:1 * D, :]  # per-gate (D, D) GRU weights — no lane slicing
    wih_z = gru_ref[1 * D:2 * D, :]
    wih_n = gru_ref[2 * D:3 * D, :]
    whh_r = gru_ref[3 * D:4 * D, :]
    whh_z = gru_ref[4 * D:5 * D, :]
    whh_n = gru_ref[5 * D:6 * D, :]
    gb = gru_ref[6 * D:6 * D + 8, :]             # aligned 8-row block; rows 0..3 used
    b_r = jnp.broadcast_to(gb[0:1, :], (N, D))   # bih_r + bhh_r   (hoisted, traced once)
    b_z = jnp.broadcast_to(gb[1:2, :], (N, D))   # bih_z + bhh_z
    bi_n = jnp.broadcast_to(gb[2:3, :], (N, D))  # bih_n
    bh_n = jnp.broadcast_to(gb[3:4, :], (N, D))  # bhh_n

    # ---- phase 1: GatedGraphConv — 5 GRU propagation steps ----
    h = feat0
    for _ in range(N_STEPS):
        # all 6 per-etype message linears as one wide matmul: (N, 6*128); each etype's
        # D output columns sit at the start of their own 128-lane group.
        msg_wide = jnp.dot(h, w_msg, preferred_element_type=jnp.float32)
        # scatter into (6N, 128): 6 full-vreg-width stores, no rotations / masked vst
        for t in range(N_ETYPES):
            msgv_ref[t * N:(t + 1) * N, :] = msg_wide[:, t * LANE:(t + 1) * LANE]
        # (etype, src) aggregation as ONE matmul against the stacked adjacency
        a_full = jnp.dot(adj, msgv_ref[...], preferred_element_type=jnp.float32)
        a = abias + a_full[:, :D]                 # slice starts at lane 0 (free mask)
        # GRU gates, per-gate (D, D) weights: no lane-offset slices of gi/gh
        r = jax.nn.sigmoid(jnp.dot(a, wih_r, preferred_element_type=jnp.float32)
                           + jnp.dot(h, whh_r, preferred_element_type=jnp.float32)
                           + b_r)
        z = jax.nn.sigmoid(jnp.dot(a, wih_z, preferred_element_type=jnp.float32)
                           + jnp.dot(h, whh_z, preferred_element_type=jnp.float32)
                           + b_z)
        gh_n = jnp.dot(h, whh_n, preferred_element_type=jnp.float32) + bh_n
        n = jnp.tanh(jnp.dot(a, wih_n, preferred_element_type=jnp.float32)
                     + bi_n + r * gh_n)
        h = (1.0 - z) * n + z * h
    hconv = h                                     # (N, D)
    hconv_t = hconv.T                             # transpose hoisted out of readout loop

    # ---- phase 2: Set2Set readout (3-layer LSTM + per-graph attention) ----
    wih0_q = lstmw_ref[0 * D:1 * D, :]            # layer 0 input is [q | rdt]
    wih0_r = lstmw_ref[1 * D:2 * D, :]
    whh0 = lstmw_ref[2 * D:3 * D, :]
    wih1 = lstmw_ref[3 * D:4 * D, :]
    whh1 = lstmw_ref[4 * D:5 * D, :]
    wih2 = lstmw_ref[5 * D:6 * D, :]
    whh2 = lstmw_ref[6 * D:7 * D, :]
    b_all = lstmw_ref[7 * D:7 * D + 3, :]         # (3, 4D)  bih_l + bhh_l
    b0 = jnp.broadcast_to(b_all[0:1, :], (B, 4 * D))
    b1 = jnp.broadcast_to(b_all[1:2, :], (B, 4 * D))
    b2 = jnp.broadcast_to(b_all[2:3, :], (B, 4 * D))

    mask = memb > 0.0

    def lstm_cell(gates, c_prev):
        i_g = jax.nn.sigmoid(gates[:, :D])
        f_g = jax.nn.sigmoid(gates[:, D:2 * D])
        g_g = jnp.tanh(gates[:, 2 * D:3 * D])
        o_g = jax.nn.sigmoid(gates[:, 3 * D:])
        c_new = f_g * c_prev + i_g * g_g
        return o_g * jnp.tanh(c_new), c_new

    h0 = jnp.zeros((B, D), jnp.float32)
    h1 = jnp.zeros((B, D), jnp.float32)
    h2 = jnp.zeros((B, D), jnp.float32)
    c0 = jnp.zeros((B, D), jnp.float32)
    c1 = jnp.zeros((B, D), jnp.float32)
    c2 = jnp.zeros((B, D), jnp.float32)
    q = jnp.zeros((B, D), jnp.float32)
    rdt = jnp.zeros((B, D), jnp.float32)

    for _ in range(n_iters):
        # layer 0: q_star = [q | rdt] split into two dots (no concat staging)
        g0 = (jnp.dot(q, wih0_q, preferred_element_type=jnp.float32)
              + jnp.dot(rdt, wih0_r, preferred_element_type=jnp.float32)
              + jnp.dot(h0, whh0, preferred_element_type=jnp.float32) + b0)
        h0, c0 = lstm_cell(g0, c0)
        # layer 1
        g1 = (jnp.dot(h0, wih1, preferred_element_type=jnp.float32)
              + jnp.dot(h1, whh1, preferred_element_type=jnp.float32) + b1)
        h1, c1 = lstm_cell(g1, c1)
        # layer 2
        g2 = (jnp.dot(h1, wih2, preferred_element_type=jnp.float32)
              + jnp.dot(h2, whh2, preferred_element_type=jnp.float32) + b2)
        h2, c2 = lstm_cell(g2, c2)
        q = h2                                                            # (B, D)

        # per-graph attention softmax: scores[b, n] = q[b] . hconv[n]
        scores = jnp.dot(q, hconv_t, preferred_element_type=jnp.float32)  # (B, N)
        e = jnp.where(mask, scores, NEG)
        m = jnp.max(e, axis=1, keepdims=True)
        p = jnp.where(mask, jnp.exp(e - m), 0.0)          # exp of masked scores only
        s = jnp.sum(p, axis=1, keepdims=True)
        inv_s = pl.reciprocal(jnp.maximum(s, jnp.float32(1e-30)), approx=False)
        alpha = p * inv_s                                  # EUP reciprocal, VPU multiply
        rdt = jnp.dot(alpha, hconv, preferred_element_type=jnp.float32)   # (B, D)

    # ---- phase 3: predict Linear(2D -> 3) on q_star = [q | rdt] (no concat) ----
    w_pred_q = predw_ref[0:D, :]
    w_pred_r = predw_ref[D:2 * D, :]
    b_pred = predw_ref[2 * D:2 * D + 1, :]
    out_ref[...] = (jnp.dot(q, w_pred_q, preferred_element_type=jnp.float32)
                    + jnp.dot(rdt, w_pred_r, preferred_element_type=jnp.float32)
                    + b_pred)


def ggnn_forward_pallas(adj, feat, memb, params, n_iters):
    N, D = feat.shape
    B = memb.shape[0]
    assert N >= B and D <= LANE

    # ---- one-time parameter packing / static layouts (plain XLA, outside kernel) ----
    # adjacency stacked along lanes: adj_hcat[dst, t*N + src] = adj[t, dst, src]
    adj_hcat = jnp.transpose(adj, (1, 0, 2)).reshape(N, N_ETYPES * N)
    # hoisted bias contribution: a_bias[n] = sum_t (sum_src adj[t,n,src]) * bmsg[t]
    deg = jnp.sum(adj, axis=2)                                           # (6, N)
    a_bias = jnp.einsum("tn,td->nd", deg, params["bmsg"].reshape(N_ETYPES, D))

    # lane-aligned message weights: etype t's (D, D) block at lanes [t*128, t*128+D)
    w_msg_lane = jnp.zeros((D, N_ETYPES * LANE), jnp.float32)
    for t in range(N_ETYPES):
        w_msg_lane = w_msg_lane.at[:, t * LANE:t * LANE + D].set(params["wmsg"][t])

    # per-gate GRU weights stacked along rows, biases in an 8-row aligned tail block
    wih, whh = params["gru_wih"], params["gru_whh"]          # (D, 3D) each, order r|z|n
    bih, bhh = params["gru_bih"], params["gru_bhh"]          # (1, 3D)
    gru_bias = jnp.zeros((8, D), jnp.float32)
    gru_bias = gru_bias.at[0].set((bih[:, :D] + bhh[:, :D])[0])
    gru_bias = gru_bias.at[1].set((bih[:, D:2 * D] + bhh[:, D:2 * D])[0])
    gru_bias = gru_bias.at[2].set(bih[0, 2 * D:])
    gru_bias = gru_bias.at[3].set(bhh[0, 2 * D:])
    gru_pack = jnp.concatenate(
        [wih[:, :D], wih[:, D:2 * D], wih[:, 2 * D:],
         whh[:, :D], whh[:, D:2 * D], whh[:, 2 * D:], gru_bias], axis=0)  # (6D+8, D)

    # LSTM: per-layer weight stacks + combined biases, all in one array (7D+3, 4D)
    lstm_w = jnp.concatenate(
        [params["wih0"], params["whh0"],
         params["wih1"], params["whh1"],
         params["wih2"], params["whh2"],
         params["bih0"] + params["bhh0"],
         params["bih1"] + params["bhh1"],
         params["bih2"] + params["bhh2"]], axis=0)

    pred_w = jnp.concatenate([params["wpred"], params["bpred"]], axis=0)  # (2D+1, 3)

    kernel = functools.partial(ggnn_fused_kernel, n_iters=n_iters)
    args = (adj_hcat, feat, a_bias, memb, w_msg_lane, gru_pack, lstm_w, pred_w)
    return pl.pallas_call(
        kernel,
        out_shape=jax.ShapeDtypeStruct((B, 3), jnp.float32),
        in_specs=[_vmem_spec() for _ in args],
        out_specs=_vmem_spec(),
        scratch_shapes=[pltpu.VMEM((N_ETYPES * N, LANE), jnp.float32)],  # stacked msgs
    )(*args)


# --------------------------------------------------------------------------
# Pure-JAX reference (same math) for a sanity check.
# --------------------------------------------------------------------------
def ggnn_conv_ref(adj, feat, p):
    h = feat
    D = h.shape[1]
    for _ in range(N_STEPS):
        a = jnp.zeros_like(h)
        for t in range(N_ETYPES):
            a = a + adj[t] @ (h @ p["wmsg"][t] + p["bmsg"][t])
        gi = a @ p["gru_wih"] + p["gru_bih"]
        gh = h @ p["gru_whh"] + p["gru_bhh"]
        r = jax.nn.sigmoid(gi[:, :D] + gh[:, :D])
        z = jax.nn.sigmoid(gi[:, D:2 * D] + gh[:, D:2 * D])
        n = jnp.tanh(gi[:, 2 * D:] + r * gh[:, 2 * D:])
        h = (1.0 - z) * n + z * h
    return h


def set2set_predict_ref(feat, memb, p, n_iters):
    B = memb.shape[0]
    D = feat.shape[1]
    wih = [p["wih0"], p["wih1"], p["wih2"]]
    whh = [p["whh0"], p["whh1"], p["whh2"]]
    bih = [p["bih0"], p["bih1"], p["bih2"]]
    bhh = [p["bhh0"], p["bhh1"], p["bhh2"]]
    h = [jnp.zeros((B, D)) for _ in range(N_LSTM_LAYERS)]
    c = [jnp.zeros((B, D)) for _ in range(N_LSTM_LAYERS)]
    q_star = jnp.zeros((B, 2 * D))
    for _ in range(n_iters):
        x = q_star
        for l in range(N_LSTM_LAYERS):
            gates = x @ wih[l] + bih[l] + h[l] @ whh[l] + bhh[l]
            i_g = jax.nn.sigmoid(gates[:, :D])
            f_g = jax.nn.sigmoid(gates[:, D:2 * D])
            g_g = jnp.tanh(gates[:, 2 * D:3 * D])
            o_g = jax.nn.sigmoid(gates[:, 3 * D:])
            c[l] = f_g * c[l] + i_g * g_g
            h[l] = o_g * jnp.tanh(c[l])
            x = h[l]
        q = x
        scores = q @ feat.T
        e_masked = jnp.where(memb > 0, scores, -1e30)
        m = jnp.max(e_masked, axis=1, keepdims=True)
        pexp = jnp.where(memb > 0, jnp.exp(e_masked - m), 0.0)
        alpha = pexp / jnp.sum(pexp, axis=1, keepdims=True)
        rdt = alpha @ feat
        q_star = jnp.concatenate([q, rdt], axis=-1)
    return q_star @ p["wpred"] + p["bpred"]


# --------------------------------------------------------------------------
# Deterministic parameter / input construction.
# --------------------------------------------------------------------------
def _uniform(key, shape, scale):
    return jax.random.uniform(key, shape, jnp.float32, -scale, scale)


def init_params(key, out_feats):
    D = out_feats
    ks = jax.random.split(key, 24)
    s = 1.0 / jnp.sqrt(jnp.float32(D))
    s2 = 1.0 / jnp.sqrt(jnp.float32(2 * D))
    p = {
        # GatedGraphConv: 6 per-etype Linear(D, D) + GRUCell(D, D)
        "wmsg": _uniform(ks[0], (N_ETYPES, D, D), s),
        "bmsg": _uniform(ks[1], (N_ETYPES, 1, D), s),
        "gru_wih": _uniform(ks[2], (D, 3 * D), s),
        "gru_whh": _uniform(ks[3], (D, 3 * D), s),
        "gru_bih": _uniform(ks[4], (1, 3 * D), s),
        "gru_bhh": _uniform(ks[5], (1, 3 * D), s),
        # Set2Set LSTM(input=2D, hidden=D, layers=3), weights pre-transposed
        "wih0": _uniform(ks[6], (2 * D, 4 * D), s),
        "whh0": _uniform(ks[7], (D, 4 * D), s),
        "bih0": _uniform(ks[8], (1, 4 * D), s),
        "bhh0": _uniform(ks[9], (1, 4 * D), s),
        "wih1": _uniform(ks[10], (D, 4 * D), s),
        "whh1": _uniform(ks[11], (D, 4 * D), s),
        "bih1": _uniform(ks[12], (1, 4 * D), s),
        "bhh1": _uniform(ks[13], (1, 4 * D), s),
        "wih2": _uniform(ks[14], (D, 4 * D), s),
        "whh2": _uniform(ks[15], (D, 4 * D), s),
        "bih2": _uniform(ks[16], (1, 4 * D), s),
        "bhh2": _uniform(ks[17], (1, 4 * D), s),
        # predict: Linear(2D, 3)
        "wpred": _uniform(ks[18], (2 * D, 3), s2),
        "bpred": _uniform(ks[19], (1, 3), s2),
    }
    return p


if __name__ == "__main__":
    key = jax.random.PRNGKey(0)
    k_feat, k_etype, k_param = jax.random.split(key, 3)

    # small batched graph: B graphs, 8 nodes each
    B = 2
    nodes_per_graph = 8
    N = B * nodes_per_graph
    in_feats = 8
    out_feats = 16          # D
    n_iter_readout = 3
    D = out_feats

    # node -> graph membership
    node_gid = jnp.repeat(jnp.arange(B), nodes_per_graph)
    memb = (node_gid[None, :] == jnp.arange(B)[:, None]).astype(jnp.float32)  # (B, N)

    # ring + skip edges inside each graph, random edge types in [0, 6)
    src_list, dst_list = [], []
    for g in range(B):
        off = g * nodes_per_graph
        for i in range(nodes_per_graph):
            src_list += [off + i, off + i]
            dst_list += [off + (i + 1) % nodes_per_graph,
                         off + (i + 3) % nodes_per_graph]
    src = jnp.array(src_list, dtype=jnp.int32)
    dst = jnp.array(dst_list, dtype=jnp.int32)
    E = src.shape[0]
    etypes = jax.random.randint(k_etype, (E,), 0, N_ETYPES)

    # dense per-etype adjacency A[t, dst, src]
    adj = jnp.zeros((N_ETYPES, N, N), jnp.float32).at[etypes, dst, src].add(1.0)

    # node features, zero-padded from in_feats to out_feats (GatedGraphConv semantics)
    feats = jax.random.normal(k_feat, (N, in_feats), jnp.float32)
    feats_padded = jnp.concatenate(
        [feats, jnp.zeros((N, D - in_feats), jnp.float32)], axis=-1)

    params = init_params(k_param, out_feats)

    # ---- GGNN.forward: conv1 -> set2set -> predict (one fused Pallas kernel) ----
    out = ggnn_forward_pallas(adj, feats_padded, memb, params, n_iter_readout)
    out = jax.block_until_ready(out)

    # sanity check against pure-JAX reference
    h_ref = ggnn_conv_ref(adj, feats_padded, params)
    out_ref = set2set_predict_ref(h_ref, memb, params, n_iter_readout)
    assert out.shape == (B, 3)
    assert jnp.allclose(out, out_ref, atol=1e-3, rtol=1e-3), (out, out_ref)

    # TODO(synk): nn.Dropout(p=0.1) and the unused layers (conv2, edge_net, feat_net,
    # lin_1, batch_first LSTM, lin_2) are not part of the active forward path.
    print("KERNEL_OK")
</pallas_src>

<mosaic_0001>
module attributes {stable_mosaic.version = 11 : i64} {
  func.func @ggnn_fused_kernel(%arg0: memref<16x96xf32, #tpu.memory_space<vmem>>, %arg1: memref<16x16xf32, #tpu.memory_space<vmem>>, %arg2: memref<16x16xf32, #tpu.memory_space<vmem>>, %arg3: memref<2x16xf32, #tpu.memory_space<vmem>>, %arg4: memref<16x768xf32, #tpu.memory_space<vmem>>, %arg5: memref<104x16xf32, #tpu.memory_space<vmem>>, %arg6: memref<115x64xf32, #tpu.memory_space<vmem>>, %arg7: memref<33x3xf32, #tpu.memory_space<vmem>>, %arg8: memref<2x3xf32, #tpu.memory_space<vmem>>, %arg9: memref<96x128xf32, #tpu.memory_space<vmem>>) attributes {dimension_semantics = [], scalar_prefetch = 0 : i64, scratch_operands = 1 : i64, tpu.core_type = #tpu.core_type<tc>} {
    %c0 = arith.constant 0 : index
    %c0_0 = arith.constant 0 : index
    %0 = vector.load %arg1[%c0, %c0_0] : memref<16x16xf32, #tpu.memory_space<vmem>>, vector<16x16xf32>
    %c0_1 = arith.constant 0 : index
    %c0_2 = arith.constant 0 : index
    %1 = vector.load %arg0[%c0_1, %c0_2] : memref<16x96xf32, #tpu.memory_space<vmem>>, vector<16x96xf32>
    %c0_3 = arith.constant 0 : index
    %c0_4 = arith.constant 0 : index
    %2 = vector.load %arg2[%c0_3, %c0_4] : memref<16x16xf32, #tpu.memory_space<vmem>>, vector<16x16xf32>
    %c0_5 = arith.constant 0 : index
    %c0_6 = arith.constant 0 : index
    %3 = vector.load %arg3[%c0_5, %c0_6] : memref<2x16xf32, #tpu.memory_space<vmem>>, vector<2x16xf32>
    %c0_7 = arith.constant 0 : index
    %c0_8 = arith.constant 0 : index
    %4 = vector.load %arg4[%c0_7, %c0_8] : memref<16x768xf32, #tpu.memory_space<vmem>>, vector<16x768xf32>
    %c0_9 = arith.constant 0 : index
    %c0_10 = arith.constant 0 : index
    %5 = vector.load %arg5[%c0_9, %c0_10] : memref<104x16xf32, #tpu.memory_space<vmem>>, vector<16x16xf32>
    %c16 = arith.constant 16 : index
    %c0_11 = arith.constant 0 : index
    %6 = vector.load %arg5[%c16, %c0_11] : memref<104x16xf32, #tpu.memory_space<vmem>>, vector<16x16xf32>
    %c32 = arith.constant 32 : index
    %c0_12 = arith.constant 0 : index
    %7 = vector.load %arg5[%c32, %c0_12] : memref<104x16xf32, #tpu.memory_space<vmem>>, vector<16x16xf32>
    %c48 = arith.constant 48 : index
    %c0_13 = arith.constant 0 : index
    %8 = vector.load %arg5[%c48, %c0_13] : memref<104x16xf32, #tpu.memory_space<vmem>>, vector<16x16xf32>
    %c64 = arith.constant 64 : index
    %c0_14 = arith.constant 0 : index
    %9 = vector.load %arg5[%c64, %c0_14] : memref<104x16xf32, #tpu.memory_space<vmem>>, vector<16x16xf32>
    %c80 = arith.constant 80 : index
    %c0_15 = arith.constant 0 : index
    %10 = vector.load %arg5[%c80, %c0_15] : memref<104x16xf32, #tpu.memory_space<vmem>>, vector<16x16xf32>
    %c96 = arith.constant 96 : index
    %c0_16 = arith.constant 0 : index
    %11 = vector.load %arg5[%c96, %c0_16] : memref<104x16xf32, #tpu.memory_space<vmem>>, vector<8x16xf32>
    %12 = vector.extract_strided_slice %11 {offsets = [0, 0], sizes = [1, 16], strides = [1, 1]} : vector<8x16xf32> to vector<1x16xf32>
    %13 = vector.shape_cast %12 : vector<1x16xf32> to vector<1x16xf32>
    %14 = vector.broadcast %13 : vector<1x16xf32> to vector<16x16xf32>
    %15 = vector.extract_strided_slice %11 {offsets = [1, 0], sizes = [1, 16], strides = [1, 1]} : vector<8x16xf32> to vector<1x16xf32>
    %16 = vector.shape_cast %15 : vector<1x16xf32> to vector<1x16xf32>
    %17 = vector.broadcast %16 : vector<1x16xf32> to vector<16x16xf32>
    %18 = vector.extract_strided_slice %11 {offsets = [2, 0], sizes = [1, 16], strides = [1, 1]} : vector<8x16xf32> to vector<1x16xf32>
    %19 = vector.shape_cast %18 : vector<1x16xf32> to vector<1x16xf32>
    %20 = vector.broadcast %19 : vector<1x16xf32> to vector<16x16xf32>
    %21 = vector.extract_strided_slice %11 {offsets = [3, 0], sizes = [1, 16], strides = [1, 1]} : vector<8x16xf32> to vector<1x16xf32>
    %22 = vector.shape_cast %21 : vector<1x16xf32> to vector<1x16xf32>
    %23 = vector.broadcast %22 : vector<1x16xf32> to vector<16x16xf32>
    %cst = arith.constant dense<0.000000e+00> : vector<16x768xf32>
    %24 = tpu.matmul %0, %4, %cst {dimension_numbers = #tpu.dot_dimension_numbers<[1], [0], [0], [1], [0, 0, 1, 1], [], []>} : vector<16x16xf32>, vector<16x768xf32>, vector<16x768xf32> -> vector<16x768xf32>
    %25 = vector.extract_strided_slice %24 {offsets = [0, 0], sizes = [16, 128], strides = [1, 1]} : vector<16x768xf32> to vector<16x128xf32>
    %c0_17 = arith.constant 0 : index
    %c0_18 = arith.constant 0 : index
    %26 = vector.load %arg9[%c0_17, %c0_18] : memref<96x128xf32, #tpu.memory_space<vmem>>, vector<16x128xf32>
    tpu.vector_store %arg9[%c0_17, %c0_18], %25 {strides = array<i32>} : memref<96x128xf32, #tpu.memory_space<vmem>>, vector<16x128xf32>,
    %27 = vector.extract_strided_slice %24 {offsets = [0, 128], sizes = [16, 128], strides = [1, 1]} : vector<16x768xf32> to vector<16x128xf32>
    %c16_19 = arith.constant 16 : index
    %c0_20 = arith.constant 0 : index
    %28 = vector.load %arg9[%c16_19, %c0_20] : memref<96x128xf32, #tpu.memory_space<vmem>>, vector<16x128xf32>
    tpu.vector_store %arg9[%c16_19, %c0_20], %27 {strides = array<i32>} : memref<96x128xf32, #tpu.memory_space<vmem>>, vector<16x128xf32>,
    %29 = vector.extract_strided_slice %24 {offsets = [0, 256], sizes = [16, 128], strides = [1, 1]} : vector<16x768xf32> to vector<16x128xf32>
    %c32_21 = arith.constant 32 : index
    %c0_22 = arith.constant 0 : index
    %30 = vector.load %arg9[%c32_21, %c0_22] : memref<96x128xf32, #tpu.memory_space<vmem>>, vector<16x128xf32>
    tpu.vector_store %arg9[%c32_21, %c0_22], %29 {strides = array<i32>} : memref<96x128xf32, #tpu.memory_space<vmem>>, vector<16x128xf32>,
    %31 = vector.extract_strided_slice %24 {offsets = [0, 384], sizes = [16, 128], strides = [1, 1]} : vector<16x768xf32> to vector<16x128xf32>
    %c48_23 = arith.constant 48 : index
    %c0_24 = arith.constant 0 : index
    %32 = vector.load %arg9[%c48_23, %c0_24] : memref<96x128xf32, #tpu.memory_space<vmem>>, vector<16x128xf32>
    tpu.vector_store %arg9[%c48_23, %c0_24], %31 {strides = array<i32>} : memref<96x128xf32, #tpu.memory_space<vmem>>, vector<16x128xf32>,
    %33 = vector.extract_strided_slice %24 {offsets = [0, 512], sizes = [16, 128], strides = [1, 1]} : vector<16x768xf32> to vector<16x128xf32>
    %c64_25 = arith.constant 64 : index
    %c0_26 = arith.constant 0 : index
    %34 = vector.load %arg9[%c64_25, %c0_26] : memref<96x128xf32, #tpu.memory_space<vmem>>, vector<16x128xf32>
    tpu.vector_store %arg9[%c64_25, %c0_26], %33 {strides = array<i32>} : memref<96x128xf32, #tpu.memory_space<vmem>>, vector<16x128xf32>,
    %35 = vector.extract_strided_slice %24 {offsets = [0, 640], sizes = [16, 128], strides = [1, 1]} : vector<16x768xf32> to vector<16x128xf32>
    %c80_27 = arith.constant 80 : index
    %c0_28 = arith.constant 0 : index
    %36 = vector.load %arg9[%c80_27, %c0_28] : memref<96x128xf32, #tpu.memory_space<vmem>>, vector<16x128xf32>
    tpu.vector_store %arg9[%c80_27, %c0_28], %35 {strides = array<i32>} : memref<96x128xf32, #tpu.memory_space<vmem>>, vector<16x128xf32>,
    %c0_29 = arith.constant 0 : index
    %c0_30 = arith.constant 0 : index
    %37 = vector.load %arg9[%c0_29, %c0_30] : memref<96x128xf32, #tpu.memory_space<vmem>>, vector<96x128xf32>
    %cst_31 = arith.constant dense<0.000000e+00> : vector<16x128xf32>
    %38 = tpu.matmul %1, %37, %cst_31 {dimension_numbers = #tpu.dot_dimension_numbers<[1], [0], [0], [1], [0, 0, 1, 1], [], []>} : vector<16x96xf32>, vector<96x128xf32>, vector<16x128xf32> -> vector<16x128xf32>
    %39 = vector.extract_strided_slice %38 {offsets = [0, 0], sizes = [16, 16], strides = [1, 1]} : vector<16x128xf32> to vector<16x16xf32>
    %40 = arith.addf %2, %39 : vector<16x16xf32>
    %cst_32 = arith.constant dense<0.000000e+00> : vector<16x16xf32>
    %41 = tpu.matmul %40, %5, %cst_32 {dimension_numbers = #tpu.dot_dimension_numbers<[1], [0], [0], [1], [0, 0, 1, 1], [], []>} : vector<16x16xf32>, vector<16x16xf32>, vector<16x16xf32> -> vector<16x16xf32>
    %cst_33 = arith.constant dense<0.000000e+00> : vector<16x16xf32>
    %42 = tpu.matmul %0, %8, %cst_33 {dimension_numbers = #tpu.dot_dimension_numbers<[1], [0], [0], [1], [0, 0, 1, 1], [], []>} : vector<16x16xf32>, vector<16x16xf32>, vector<16x16xf32> -> vector<16x16xf32>
    %43 = arith.addf %41, %42 : vector<16x16xf32>
    %44 = arith.addf %43, %14 : vector<16x16xf32>
    %45 = arith.negf %44 : vector<16x16xf32>
    %46 = math.exp %45 : vector<16x16xf32>
    %cst_34 = arith.constant 1.000000e+00 : f32
    %47 = vector.broadcast %cst_34 : f32 to vector<16x16xf32>
    %48 = arith.addf %47, %46 : vector<16x16xf32>
    %49 = arith.divf %47, %48 : vector<16x16xf32>
    %cst_35 = arith.constant dense<0.000000e+00> : vector<16x16xf32>
    %50 = tpu.matmul %40, %6, %cst_35 {dimension_numbers = #tpu.dot_dimension_numbers<[1], [0], [0], [1], [0, 0, 1, 1], [], []>} : vector<16x16xf32>, vector<16x16xf32>, vector<16x16xf32> -> vector<16x16xf32>
    %cst_36 = arith.constant dense<0.000000e+00> : vector<16x16xf32>
    %51 = tpu.matmul %0, %9, %cst_36 {dimension_numbers = #tpu.dot_dimension_numbers<[1], [0], [0], [1], [0, 0, 1, 1], [], []>} : vector<16x16xf32>, vector<16x16xf32>, vector<16x16xf32> -> vector<16x16xf32>
    %52 = arith.addf %50, %51 : vector<16x16xf32>
    %53 = arith.addf %52, %17 : vector<16x16xf32>
    %54 = arith.negf %53 : vector<16x16xf32>
    %55 = math.exp %54 : vector<16x16xf32>
    %cst_37 = arith.constant 1.000000e+00 : f32
    %56 = vector.broadcast %cst_37 : f32 to vector<16x16xf32>
    %57 = arith.addf %56, %55 : vector<16x16xf32>
    %58 = arith.divf %56, %57 : vector<16x16xf32>
    %cst_38 = arith.constant dense<0.000000e+00> : vector<16x16xf32>
    %59 = tpu.matmul %0, %10, %cst_38 {dimension_numbers = #tpu.dot_dimension_numbers<[1], [0], [0], [1], [0, 0, 1, 1], [], []>} : vector<16x16xf32>, vector<16x16xf32>, vector<16x16xf32> -> vector<16x16xf32>
    %60 = arith.addf %59, %23 : vector<16x16xf32>
    %cst_39 = arith.constant dense<0.000000e+00> : vector<16x16xf32>
    %61 = tpu.matmul %40, %7, %cst_39 {dimension_numbers = #tpu.dot_dimension_numbers<[1], [0], [0], [1], [0, 0, 1, 1], [], []>} : vector<16x16xf32>, vector<16x16xf32>, vector<16x16xf32> -> vector<16x16xf32>
    %62 = arith.addf %61, %20 : vector<16x16xf32>
    %63 = arith.mulf %49, %60 : vector<16x16xf32>
    %64 = arith.addf %62, %63 : vector<16x16xf32>
    %65 = math.tanh %64 : vector<16x16xf32>
    %cst_40 = arith.constant 1.000000e+00 : f32
    %66 = vector.broadcast %cst_40 : f32 to vector<16x16xf32>
    %67 = arith.subf %66, %58 : vector<16x16xf32>
    %68 = arith.mulf %67, %65 : vector<16x16xf32>
    %69 = arith.mulf %58, %0 : vector<16x16xf32>
    %70 = arith.addf %68, %69 : vector<16x16xf32>
    %cst_41 = arith.constant dense<0.000000e+00> : vector<16x768xf32>
    %71 = tpu.matmul %70, %4, %cst_41 {dimension_numbers = #tpu.dot_dimension_numbers<[1], [0], [0], [1], [0, 0, 1, 1], [], []>} : vector<16x16xf32>, vector<16x768xf32>, vector<16x768xf32> -> vector<16x768xf32>
    %72 = vector.extract_strided_slice %71 {offsets = [0, 0], sizes = [16, 128], strides = [1, 1]} : vector<16x768xf32> to vector<16x128xf32>
    %c0_42 = arith.constant 0 : index
    %c0_43 = arith.constant 0 : index
    %73 = vector.load %arg9[%c0_42, %c0_43] : memref<96x128xf32, #tpu.memory_space<vmem>>, vector<16x128xf32>
    tpu.vector_store %arg9[%c0_42, %c0_43], %72 {strides = array<i32>} : memref<96x128xf32, #tpu.memory_space<vmem>>, vector<16x128xf32>,
    %74 = vector.extract_strided_slice %71 {offsets = [0, 128], sizes = [16, 128], strides = [1, 1]} : vector<16x768xf32> to vector<16x128xf32>
    %c16_44 = arith.constant 16 : index
    %c0_45 = arith.constant 0 : index
    %75 = vector.load %arg9[%c16_44, %c0_45] : memref<96x128xf32, #tpu.memory_space<vmem>>, vector<16x128xf32>
    tpu.vector_store %arg9[%c16_44, %c0_45], %74 {strides = array<i32>} : memref<96x128xf32, #tpu.memory_space<vmem>>, vector<16x128xf32>,
    %76 = vector.extract_strided_slice %71 {offsets = [0, 256], sizes = [16, 128], strides = [1, 1]} : vector<16x768xf32> to vector<16x128xf32>
    %c32_46 = arith.constant 32 : index
    %c0_47 = arith.constant 0 : index
    %77 = vector.load %arg9[%c32_46, %c0_47] : memref<96x128xf32, #tpu.memory_space<vmem>>, vector<16x128xf32>
    tpu.vector_store %arg9[%c32_46, %c0_47], %76 {strides = array<i32>} : memref<96x128xf32, #tpu.memory_space<vmem>>, vector<16x128xf32>,
    %78 = vector.extract_strided_slice %71 {offsets = [0, 384], sizes = [16, 128], strides = [1, 1]} : vector<16x768xf32> to vector<16x128xf32>
    %c48_48 = arith.constant 48 : index
    %c0_49 = arith.constant 0 : index
    %79 = vector.load %arg9[%c48_48, %c0_49] : memref<96x128xf32, #tpu.memory_space<vmem>>, vector<16x128xf32>
    tpu.vector_store %arg9[%c48_48, %c0_49], %78 {strides = array<i32>} : memref<96x128xf32, #tpu.memory_space<vmem>>, vector<16x128xf32>,
    %80 = vector.extract_strided_slice %71 {offsets = [0, 512], sizes = [16, 128], strides = [1, 1]} : vector<16x768xf32> to vector<16x128xf32>
    %c64_50 = arith.constant 64 : index
    %c0_51 = arith.constant 0 : index
    %81 = vector.load %arg9[%c64_50, %c0_51] : memref<96x128xf32, #tpu.memory_space<vmem>>, vector<16x128xf32>
    tpu.vector_store %arg9[%c64_50, %c0_51], %80 {strides = array<i32>} : memref<96x128xf32, #tpu.memory_space<vmem>>, vector<16x128xf32>,
    %82 = vector.extract_strided_slice %71 {offsets = [0, 640], sizes = [16, 128], strides = [1, 1]} : vector<16x768xf32> to vector<16x128xf32>
    %c80_52 = arith.constant 80 : index
    %c0_53 = arith.constant 0 : index
    %83 = vector.load %arg9[%c80_52, %c0_53] : memref<96x128xf32, #tpu.memory_space<vmem>>, vector<16x128xf32>
    tpu.vector_store %arg9[%c80_52, %c0_53], %82 {strides = array<i32>} : memref<96x128xf32, #tpu.memory_space<vmem>>, vector<16x128xf32>,
    %c0_54 = arith.constant 0 : index
    %c0_55 = arith.constant 0 : index
    %84 = vector.load %arg9[%c0_54, %c0_55] : memref<96x128xf32, #tpu.memory_space<vmem>>, vector<96x128xf32>
    %cst_56 = arith.constant dense<0.000000e+00> : vector<16x128xf32>
    %85 = tpu.matmul %1, %84, %cst_56 {dimension_numbers = #tpu.dot_dimension_numbers<[1], [0], [0], [1], [0, 0, 1, 1], [], []>} : vector<16x96xf32>, vector<96x128xf32>, vector<16x128xf32> -> vector<16x128xf32>
    %86 = vector.extract_strided_slice %85 {offsets = [0, 0], sizes = [16, 16], strides = [1, 1]} : vector<16x128xf32> to vector<16x16xf32>
    %87 = arith.addf %2, %86 : vector<16x16xf32>
    %cst_57 = arith.constant dense<0.000000e+00> : vector<16x16xf32>
    %88 = tpu.matmul %87, %5, %cst_57 {dimension_numbers = #tpu.dot_dimension_numbers<[1], [0], [0], [1], [0, 0, 1, 1], [], []>} : vector<16x16xf32>, vector<16x16xf32>, vector<16x16xf32> -> vector<16x16xf32>
    %cst_58 = arith.constant dense<0.000000e+00> : vector<16x16xf32>
    %89 = tpu.matmul %70, %8, %cst_58 {dimension_numbers = #tpu.dot_dimension_numbers<[1], [0], [0], [1], [0, 0, 1, 1], [], []>} : vector<16x16xf32>, vector<16x16xf32>, vector<16x16xf32> -> vector<16x16xf32>
    %90 = arith.addf %88, %89 : vector<16x16xf32>
    %91 = arith.addf %90, %14 : vector<16x16xf32>
    %92 = arith.negf %91 : vector<16x16xf32>
    %93 = math.exp %92 : vector<16x16xf32>
    %cst_59 = arith.constant 1.000000e+00 : f32
    %94 = vector.broadcast %cst_59 : f32 to vector<16x16xf32>
    %95 = arith.addf %94, %93 : vector<16x16xf32>
    %96 = arith.divf %94, %95 : vector<16x16xf32>
    %cst_60 = arith.constant dense<0.000000e+00> : vector<16x16xf32>
    %97 = tpu.matmul %87, %6, %cst_60 {dimension_numbers = #tpu.dot_dimension_numbers<[1], [0], [0], [1], [0, 0, 1, 1], [], []>} : vector<16x16xf32>, vector<16x16xf32>, vector<16x16xf32> -> vector<16x16xf32>
    %cst_61 = arith.constant dense<0.000000e+00> : vector<16x16xf32>
    %98 = tpu.matmul %70, %9, %cst_61 {dimension_numbers = #tpu.dot_dimension_numbers<[1], [0], [0], [1], [0, 0, 1, 1], [], []>} : vector<16x16xf32>, vector<16x16xf32>, vector<16x16xf32> -> vector<16x16xf32>
    %99 = arith.addf %97, %98 : vector<16x16xf32>
    %100 = arith.addf %99, %17 : vector<16x16xf32>
    %101 = arith.negf %100 : vector<16x16xf32>
    %102 = math.exp %101 : vector<16x16xf32>
    %cst_62 = arith.constant 1.000000e+00 : f32
    %103 = vector.broadcast %cst_62 : f32 to vector<16x16xf32>
    %104 = arith.addf %103, %102 : vector<16x16xf32>
    %105 = arith.divf %103, %104 : vector<16x16xf32>
    %cst_63 = arith.constant dense<0.000000e+00> : vector<16x16xf32>
    %106 = tpu.matmul %70, %10, %cst_63 {dimension_numbers = #tpu.dot_dimension_numbers<[1], [0], [0], [1], [0, 0, 1, 1], [], []>} : vector<16x16xf32>, vector<16x16xf32>, vector<16x16xf32> -> vector<16x16xf32>
    %107 = arith.addf %106, %23 : vector<16x16xf32>
    %cst_64 = arith.constant dense<0.000000e+00> : vector<16x16xf32>
    %108 = tpu.matmul %87, %7, %cst_64 {dimension_numbers = #tpu.dot_dimension_numbers<[1], [0], [0], [1], [0, 0, 1, 1], [], []>} : vector<16x16xf32>, vector<16x16xf32>, vector<16x16xf32> -> vector<16x16xf32>
    %109 = arith.addf %108, %20 : vector<16x16xf32>
    %110 = arith.mulf %96, %107 : vector<16x16xf32>
    %111 = arith.addf %109, %110 : vector<16x16xf32>
    %112 = math.tanh %111 : vector<16x16xf32>
    %cst_65 = arith.constant 1.000000e+00 : f32
    %113 = vector.broadcast %cst_65 : f32 to vector<16x16xf32>
    %114 = arith.subf %113, %105 : vector<16x16xf32>
    %115 = arith.mulf %114, %112 : vector<16x16xf32>
    %116 = arith.mulf %105, %70 : vector<16x16xf32>
    %117 = arith.addf %115, %116 : vector<16x16xf32>
    %cst_66 = arith.constant dense<0.000000e+00> : vector<16x768xf32>
    %118 = tpu.matmul %117, %4, %cst_66 {dimension_numbers = #tpu.dot_dimension_numbers<[1], [0], [0], [1], [0, 0, 1, 1], [], []>} : vector<16x16xf32>, vector<16x768xf32>, vector<16x768xf32> -> vector<16x768xf32>
    %119 = vector.extract_strided_slice %118 {offsets = [0, 0], sizes = [16, 128], strides = [1, 1]} : vector<16x768xf32> to vector<16x128xf32>
    %c0_67 = arith.constant 0 : index
    %c0_68 = arith.constant 0 : index
    %120 = vector.load %arg9[%c0_67, %c0_68] : memref<96x128xf32, #tpu.memory_space<vmem>>, vector<16x128xf32>
    tpu.vector_store %arg9[%c0_67, %c0_68], %119 {strides = array<i32>} : memref<96x128xf32, #tpu.memory_space<vmem>>, vector<16x128xf32>,
    %121 = vector.extract_strided_slice %118 {offsets = [0, 128], sizes = [16, 128], strides = [1, 1]} : vector<16x768xf32> to vector<16x128xf32>
    %c16_69 = arith.constant 16 : index
    %c0_70 = arith.constant 0 : index
    %122 = vector.load %arg9[%c16_69, %c0_70] : memref<96x128xf32, #tpu.memory_space<vmem>>, vector<16x128xf32>
    tpu.vector_store %arg9[%c16_69, %c0_70], %121 {strides = array<i32>} : memref<96x128xf32, #tpu.memory_space<vmem>>, vector<16x128xf32>,
    %123 = vector.extract_strided_slice %118 {offsets = [0, 256], sizes = [16, 128], strides = [1, 1]} : vector<16x768xf32> to vector<16x128xf32>
    %c32_71 = arith.constant 32 : index
    %c0_72 = arith.constant 0 : index
    %124 = vector.load %arg9[%c32_71, %c0_72] : memref<96x128xf32, #tpu.memory_space<vmem>>, vector<16x128xf32>
    tpu.vector_store %arg9[%c32_71, %c0_72], %123 {strides = array<i32>} : memref<96x128xf32, #tpu.memory_space<vmem>>, vector<16x128xf32>,
    %125 = vector.extract_strided_slice %118 {offsets = [0, 384], sizes = [16, 128], strides = [1, 1]} : vector<16x768xf32> to vector<16x128xf32>
    %c48_73 = arith.constant 48 : index
    %c0_74 = arith.constant 0 : index
    %126 = vector.load %arg9[%c48_73, %c0_74] : memref<96x128xf32, #tpu.memory_space<vmem>>, vector<16x128xf32>
    tpu.vector_store %arg9[%c48_73, %c0_74], %125 {strides = array<i32>} : memref<96x128xf32, #tpu.memory_space<vmem>>, vector<16x128xf32>,
    %127 = vector.extract_strided_slice %118 {offsets = [0, 512], sizes = [16, 128], strides = [1, 1]} : vector<16x768xf32> to vector<16x128xf32>
    %c64_75 = arith.constant 64 : index
    %c0_76 = arith.constant 0 : index
    %128 = vector.load %arg9[%c64_75, %c0_76] : memref<96x128xf32, #tpu.memory_space<vmem>>, vector<16x128xf32>
    tpu.vector_store %arg9[%c64_75, %c0_76], %127 {strides = array<i32>} : memref<96x128xf32, #tpu.memory_space<vmem>>, vector<16x128xf32>,
    %129 = vector.extract_strided_slice %118 {offsets = [0, 640], sizes = [16, 128], strides = [1, 1]} : vector<16x768xf32> to vector<16x128xf32>
    %c80_77 = arith.constant 80 : index
    %c0_78 = arith.constant 0 : index
    %130 = vector.load %arg9[%c80_77, %c0_78] : memref<96x128xf32, #tpu.memory_space<vmem>>, vector<16x128xf32>
    tpu.vector_store %arg9[%c80_77, %c0_78], %129 {strides = array<i32>} : memref<96x128xf32, #tpu.memory_space<vmem>>, vector<16x128xf32>,
    %c0_79 = arith.constant 0 : index
    %c0_80 = arith.constant 0 : index
    %131 = vector.load %arg9[%c0_79, %c0_80] : memref<96x128xf32, #tpu.memory_space<vmem>>, vector<96x128xf32>
    %cst_81 = arith.constant dense<0.000000e+00> : vector<16x128xf32>
    %132 = tpu.matmul %1, %131, %cst_81 {dimension_numbers = #tpu.dot_dimension_numbers<[1], [0], [0], [1], [0, 0, 1, 1], [], []>} : vector<16x96xf32>, vector<96x128xf32>, vector<16x128xf32> -> vector<16x128xf32>
    %133 = vector.extract_strided_slice %132 {offsets = [0, 0], sizes = [16, 16], strides = [1, 1]} : vector<16x128xf32> to vector<16x16xf32>
    %134 = arith.addf %2, %133 : vector<16x16xf32>
    %cst_82 = arith.constant dense<0.000000e+00> : vector<16x16xf32>
    %135 = tpu.matmul %134, %5, %cst_82 {dimension_numbers = #tpu.dot_dimension_numbers<[1], [0], [0], [1], [0, 0, 1, 1], [], []>} : vector<16x16xf32>, vector<16x16xf32>, vector<16x16xf32> -> vector<16x16xf32>
    %cst_83 = arith.constant dense<0.000000e+00> : vector<16x16xf32>
    %136 = tpu.matmul %117, %8, %cst_83 {dimension_numbers = #tpu.dot_dimension_numbers<[1], [0], [0], [1], [0, 0, 1, 1], [], []>} : vector<16x16xf32>, vector<16x16xf32>, vector<16x16xf32> -> vector<16x16xf32>
    %137 = arith.addf %135, %136 : vector<16x16xf32>
    %138 = arith.addf %137, %14 : vector<16x16xf32>
    %139 = arith.negf %138 : vector<16x16xf32>
    %140 = math.exp %139 : vector<16x16xf32>
    %cst_84 = arith.constant 1.000000e+00 : f32
    %141 = vector.broadcast %cst_84 : f32 to vector<16x16xf32>
    %142 = arith.addf %141, %140 : vector<16x16xf32>
    %143 = arith.divf %141, %142 : vector<16x16xf32>
    %cst_85 = arith.constant dense<0.000000e+00> : vector<16x16xf32>
    %144 = tpu.matmul %134, %6, %cst_85 {dimension_numbers = #tpu.dot_dimension_numbers<[1], [0], [0], [1], [0, 0, 1, 1], [], []>} : vector<16x16xf32>, vector<16x16xf32>, vector<16x16xf32> -> vector<16x16xf32>
    %cst_86 = arith.constant dense<0.000000e+00> : vector<16x16xf32>
    %145 = tpu.matmul %117, %9, %cst_86 {dimension_numbers = #tpu.dot_dimension_numbers<[1], [0], [0], [1], [0, 0, 1, 1], [], []>} : vector<16x16xf32>, vector<16x16xf32>, vector<16x16xf32> -> vector<16x16xf32>
    %146 = arith.addf %144, %145 : vector<16x16xf32>
    %147 = arith.addf %146, %17 : vector<16x16xf32>
    %148 = arith.negf %147 : vector<16x16xf32>
    %149 = math.exp %148 : vector<16x16xf32>
    %cst_87 = arith.constant 1.000000e+00 : f32
    %150 = vector.broadcast %cst_87 : f32 to vector<16x16xf32>
    %151 = arith.addf %150, %149 : vector<16x16xf32>
    %152 = arith.divf %150, %151 : vector<16x16xf32>
    %cst_88 = arith.constant dense<0.000000e+00> : vector<16x16xf32>
    %153 = tpu.matmul %117, %10, %cst_88 {dimension_numbers = #tpu.dot_dimension_numbers<[1], [0], [0], [1], [0, 0, 1, 1], [], []>} : vector<16x16xf32>, vector<16x16xf32>, vector<16x16xf32> -> vector<16x16xf32>
    %154 = arith.addf %153, %23 : vector<16x16xf32>
    %cst_89 = arith.constant dense<0.000000e+00> : vector<16x16xf32>
    %155 = tpu.matmul %134, %7, %cst_89 {dimension_numbers = #tpu.dot_dimension_numbers<[1], [0], [0], [1], [0, 0, 1, 1], [], []>} : vector<16x16xf32>, vector<16x16xf32>, vector<16x16xf32> -> vector<16x16xf32>
    %156 = arith.addf %155, %20 : vector<16x16xf32>
    %157 = arith.mulf %143, %154 : vector<16x16xf32>
    %158 = arith.addf %156, %157 : vector<16x16xf32>
    %159 = math.tanh %158 : vector<16x16xf32>
    %cst_90 = arith.constant 1.000000e+00 : f32
    %160 = vector.broadcast %cst_90 : f32 to vector<16x16xf32>
    %161 = arith.subf %160, %152 : vector<16x16xf32>
    %162 = arith.mulf %161, %159 : vector<16x16xf32>
    %163 = arith.mulf %152, %117 : vector<16x16xf32>
    %164 = arith.addf %162, %163 : vector<16x16xf32>
    %cst_91 = arith.constant dense<0.000000e+00> : vector<16x768xf32>
    %165 = tpu.matmul %164, %4, %cst_91 {dimension_numbers = #tpu.dot_dimension_numbers<[1], [0], [0], [1], [0, 0, 1, 1], [], []>} : vector<16x16xf32>, vector<16x768xf32>, vector<16x768xf32> -> vector<16x768xf32>
    %166 = vector.extract_strided_slice %165 {offsets = [0, 0], sizes = [16, 128], strides = [1, 1]} : vector<16x768xf32> to vector<16x128xf32>
    %c0_92 = arith.constant 0 : index
    %c0_93 = arith.constant 0 : index
    %167 = vector.load %arg9[%c0_92, %c0_93] : memref<96x128xf32, #tpu.memory_space<vmem>>, vector<16x128xf32>
    tpu.vector_store %arg9[%c0_92, %c0_93], %166 {strides = array<i32>} : memref<96x128xf32, #tpu.memory_space<vmem>>, vector<16x128xf32>,
    %168 = vector.extract_strided_slice %165 {offsets = [0, 128], sizes = [16, 128], strides = [1, 1]} : vector<16x768xf32> to vector<16x128xf32>
    %c16_94 = arith.constant 16 : index
    %c0_95 = arith.constant 0 : index
    %169 = vector.load %arg9[%c16_94, %c0_95] : memref<96x128xf32, #tpu.memory_space<vmem>>, vector<16x128xf32>
    tpu.vector_store %arg9[%c16_94, %c0_95], %168 {strides = array<i32>} : memref<96x128xf32, #tpu.memory_space<vmem>>, vector<16x128xf32>,
    %170 = vector.extract_strided_slice %165 {offsets = [0, 256], sizes = [16, 128], strides = [1, 1]} : vector<16x768xf32> to vector<16x128xf32>
    %c32_96 = arith.constant 32 : index
    %c0_97 = arith.constant 0 : index
    %171 = vector.load %arg9[%c32_96, %c0_97] : memref<96x128xf32, #tpu.memory_space<vmem>>, vector<16x128xf32>
    tpu.vector_store %arg9[%c32_96, %c0_97], %170 {strides = array<i32>} : memref<96x128xf32, #tpu.memory_space<vmem>>, vector<16x128xf32>,
    %172 = vector.extract_strided_slice %165 {offsets = [0, 384], sizes = [16, 128], strides = [1, 1]} : vector<16x768xf32> to vector<16x128xf32>
    %c48_98 = arith.constant 48 : index
    %c0_99 = arith.constant 0 : index
    %173 = vector.load %arg9[%c48_98, %c0_99] : memref<96x128xf32, #tpu.memory_space<vmem>>, vector<16x128xf32>
    tpu.vector_store %arg9[%c48_98, %c0_99], %172 {strides = array<i32>} : memref<96x128xf32, #tpu.memory_space<vmem>>, vector<16x128xf32>,
    %174 = vector.extract_strided_slice %165 {offsets = [0, 512], sizes = [16, 128], strides = [1, 1]} : vector<16x768xf32> to vector<16x128xf32>
    %c64_100 = arith.constant 64 : index
    %c0_101 = arith.constant 0 : index
    %175 = vector.load %arg9[%c64_100, %c0_101] : memref<96x128xf32, #tpu.memory_space<vmem>>, vector<16x128xf32>
    tpu.vector_store %arg9[%c64_100, %c0_101], %174 {strides = array<i32>} : memref<96x128xf32, #tpu.memory_space<vmem>>, vector<16x128xf32>,
    %176 = vector.extract_strided_slice %165 {offsets = [0, 640], sizes = [16, 128], strides = [1, 1]} : vector<16x768xf32> to vector<16x128xf32>
    %c80_102 = arith.constant 80 : index
    %c0_103 = arith.constant 0 : index
    %177 = vector.load %arg9[%c80_102, %c0_103] : memref<96x128xf32, #tpu.memory_space<vmem>>, vector<16x128xf32>
    tpu.vector_store %arg9[%c80_102, %c0_103], %176 {strides = array<i32>} : memref<96x128xf32, #tpu.memory_space<vmem>>, vector<16x128xf32>,
    %c0_104 = arith.constant 0 : index
    %c0_105 = arith.constant 0 : index
    %178 = vector.load %arg9[%c0_104, %c0_105] : memref<96x128xf32, #tpu.memory_space<vmem>>, vector<96x128xf32>
    %cst_106 = arith.constant dense<0.000000e+00> : vector<16x128xf32>
    %179 = tpu.matmul %1, %178, %cst_106 {dimension_numbers = #tpu.dot_dimension_numbers<[1], [0], [0], [1], [0, 0, 1, 1], [], []>} : vector<16x96xf32>, vector<96x128xf32>, vector<16x128xf32> -> vector<16x128xf32>
    %180 = vector.extract_strided_slice %179 {offsets = [0, 0], sizes = [16, 16], strides = [1, 1]} : vector<16x128xf32> to vector<16x16xf32>
    %181 = arith.addf %2, %180 : vector<16x16xf32>
    %cst_107 = arith.constant dense<0.000000e+00> : vector<16x16xf32>
    %182 = tpu.matmul %181, %5, %cst_107 {dimension_numbers = #tpu.dot_dimension_numbers<[1], [0], [0], [1], [0, 0, 1, 1], [], []>} : vector<16x16xf32>, vector<16x16xf32>, vector<16x16xf32> -> vector<16x16xf32>
    %cst_108 = arith.constant dense<0.000000e+00> : vector<16x16xf32>
    %183 = tpu.matmul %164, %8, %cst_108 {dimension_numbers = #tpu.dot_dimension_numbers<[1], [0], [0], [1], [0, 0, 1, 1], [], []>} : vector<16x16xf32>, vector<16x16xf32>, vector<16x16xf32> -> vector<16x16xf32>
    %184 = arith.addf %182, %183 : vector<16x16xf32>
    %185 = arith.addf %184, %14 : vector<16x16xf32>
    %186 = arith.negf %185 : vector<16x16xf32>
    %187 = math.exp %186 : vector<16x16xf32>
    %cst_109 = arith.constant 1.000000e+00 : f32
    %188 = vector.broadcast %cst_109 : f32 to vector<16x16xf32>
    %189 = arith.addf %188, %187 : vector<16x16xf32>
    %190 = arith.divf %188, %189 : vector<16x16xf32>
    %cst_110 = arith.constant dense<0.000000e+00> : vector<16x16xf32>
    %191 = tpu.matmul %181, %6, %cst_110 {dimension_numbers = #tpu.dot_dimension_numbers<[1], [0], [0], [1], [0, 0, 1, 1], [], []>} : vector<16x16xf32>, vector<16x16xf32>, vector<16x16xf32> -> vector<16x16xf32>
    %cst_111 = arith.constant dense<0.000000e+00> : vector<16x16xf32>
    %192 = tpu.matmul %164, %9, %cst_111 {dimension_numbers = #tpu.dot_dimension_numbers<[1], [0], [0], [1], [0, 0, 1, 1], [], []>} : vector<16x16xf32>, vector<16x16xf32>, vector<16x16xf32> -> vector<16x16xf32>
    %193 = arith.addf %191, %192 : vector<16x16xf32>
    %194 = arith.addf %193, %17 : vector<16x16xf32>
    %195 = arith.negf %194 : vector<16x16xf32>
    %196 = math.exp %195 : vector<16x16xf32>
    %cst_112 = arith.constant 1.000000e+00 : f32
    %197 = vector.broadcast %cst_112 : f32 to vector<16x16xf32>
    %198 = arith.addf %197, %196 : vector<16x16xf32>
    %199 = arith.divf %197, %198 : vector<16x16xf32>
    %cst_113 = arith.constant dense<0.000000e+00> : vector<16x16xf32>
    %200 = tpu.matmul %164, %10, %cst_113 {dimension_numbers = #tpu.dot_dimension_numbers<[1], [0], [0], [1], [0, 0, 1, 1], [], []>} : vector<16x16xf32>, vector<16x16xf32>, vector<16x16xf32> -> vector<16x16xf32>
    %201 = arith.addf %200, %23 : vector<16x16xf32>
    %cst_114 = arith.constant dense<0.000000e+00> : vector<16x16xf32>
    %202 = tpu.matmul %181, %7, %cst_114 {dimension_numbers = #tpu.dot_dimension_numbers<[1], [0], [0], [1], [0, 0, 1, 1], [], []>} : vector<16x16xf32>, vector<16x16xf32>, vector<16x16xf32> -> vector<16x16xf32>
    %203 = arith.addf %202, %20 : vector<16x16xf32>
    %204 = arith.mulf %190, %201 : vector<16x16xf32>
    %205 = arith.addf %203, %204 : vector<16x16xf32>
    %206 = math.tanh %205 : vector<16x16xf32>
    %cst_115 = arith.constant 1.000000e+00 : f32
    %207 = vector.broadcast %cst_115 : f32 to vector<16x16xf32>
    %208 = arith.subf %207, %199 : vector<16x16xf32>
    %209 = arith.mulf %208, %206 : vector<16x16xf32>
    %210 = arith.mulf %199, %164 : vector<16x16xf32>
    %211 = arith.addf %209, %210 : vector<16x16xf32>
    %cst_116 = arith.constant dense<0.000000e+00> : vector<16x768xf32>
    %212 = tpu.matmul %211, %4, %cst_116 {dimension_numbers = #tpu.dot_dimension_numbers<[1], [0], [0], [1], [0, 0, 1, 1], [], []>} : vector<16x16xf32>, vector<16x768xf32>, vector<16x768xf32> -> vector<16x768xf32>
    %213 = vector.extract_strided_slice %212 {offsets = [0, 0], sizes = [16, 128], strides = [1, 1]} : vector<16x768xf32> to vector<16x128xf32>
    %c0_117 = arith.constant 0 : index
    %c0_118 = arith.constant 0 : index
    %214 = vector.load %arg9[%c0_117, %c0_118] : memref<96x128xf32, #tpu.memory_space<vmem>>, vector<16x128xf32>
    tpu.vector_store %arg9[%c0_117, %c0_118], %213 {strides = array<i32>} : memref<96x128xf32, #tpu.memory_space<vmem>>, vector<16x128xf32>,
    %215 = vector.extract_strided_slice %212 {offsets = [0, 128], sizes = [16, 128], strides = [1, 1]} : vector<16x768xf32> to vector<16x128xf32>
    %c16_119 = arith.constant 16 : index
    %c0_120 = arith.constant 0 : index
    %216 = vector.load %arg9[%c16_119, %c0_120] : memref<96x128xf32, #tpu.memory_space<vmem>>, vector<16x128xf32>
    tpu.vector_store %arg9[%c16_119, %c0_120], %215 {strides = array<i32>} : memref<96x128xf32, #tpu.memory_space<vmem>>, vector<16x128xf32>,
    %217 = vector.extract_strided_slice %212 {offsets = [0, 256], sizes = [16, 128], strides = [1, 1]} : vector<16x768xf32> to vector<16x128xf32>
    %c32_121 = arith.constant 32 : index
    %c0_122 = arith.constant 0 : index
    %218 = vector.load %arg9[%c32_121, %c0_122] : memref<96x128xf32, #tpu.memory_space<vmem>>, vector<16x128xf32>
    tpu.vector_store %arg9[%c32_121, %c0_122], %217 {strides = array<i32>} : memref<96x128xf32, #tpu.memory_space<vmem>>, vector<16x128xf32>,
    %219 = vector.extract_strided_slice %212 {offsets = [0, 384], sizes = [16, 128], strides = [1, 1]} : vector<16x768xf32> to vector<16x128xf32>
    %c48_123 = arith.constant 48 : index
    %c0_124 = arith.constant 0 : index
    %220 = vector.load %arg9[%c48_123, %c0_124] : memref<96x128xf32, #tpu.memory_space<vmem>>, vector<16x128xf32>
    tpu.vector_store %arg9[%c48_123, %c0_124], %219 {strides = array<i32>} : memref<96x128xf32, #tpu.memory_space<vmem>>, vector<16x128xf32>,
    %221 = vector.extract_strided_slice %212 {offsets = [0, 512], sizes = [16, 128], strides = [1, 1]} : vector<16x768xf32> to vector<16x128xf32>
    %c64_125 = arith.constant 64 : index
    %c0_126 = arith.constant 0 : index
    %222 = vector.load %arg9[%c64_125, %c0_126] : memref<96x128xf32, #tpu.memory_space<vmem>>, vector<16x128xf32>
    tpu.vector_store %arg9[%c64_125, %c0_126], %221 {strides = array<i32>} : memref<96x128xf32, #tpu.memory_space<vmem>>, vector<16x128xf32>,
    %223 = vector.extract_strided_slice %212 {offsets = [0, 640], sizes = [16, 128], strides = [1, 1]} : vector<16x768xf32> to vector<16x128xf32>
    %c80_127 = arith.constant 80 : index
    %c0_128 = arith.constant 0 : index
    %224 = vector.load %arg9[%c80_127, %c0_128] : memref<96x128xf32, #tpu.memory_space<vmem>>, vector<16x128xf32>
    tpu.vector_store %arg9[%c80_127, %c0_128], %223 {strides = array<i32>} : memref<96x128xf32, #tpu.memory_space<vmem>>, vector<16x128xf32>,
    %c0_129 = arith.constant 0 : index
    %c0_130 = arith.constant 0 : index
    %225 = vector.load %arg9[%c0_129, %c0_130] : memref<96x128xf32, #tpu.memory_space<vmem>>, vector<96x128xf32>
    %cst_131 = arith.constant dense<0.000000e+00> : vector<16x128xf32>
    %226 = tpu.matmul %1, %225, %cst_131 {dimension_numbers = #tpu.dot_dimension_numbers<[1], [0], [0], [1], [0, 0, 1, 1], [], []>} : vector<16x96xf32>, vector<96x128xf32>, vector<16x128xf32> -> vector<16x128xf32>
    %227 = vector.extract_strided_slice %226 {offsets = [0, 0], sizes = [16, 16], strides = [1, 1]} : vector<16x128xf32> to vector<16x16xf32>
    %228 = arith.addf %2, %227 : vector<16x16xf32>
    %cst_132 = arith.constant dense<0.000000e+00> : vector<16x16xf32>
    %229 = tpu.matmul %228, %5, %cst_132 {dimension_numbers = #tpu.dot_dimension_numbers<[1], [0], [0], [1], [0, 0, 1, 1], [], []>} : vector<16x16xf32>, vector<16x16xf32>, vector<16x16xf32> -> vector<16x16xf32>
    %cst_133 = arith.constant dense<0.000000e+00> : vector<16x16xf32>
    %230 = tpu.matmul %211, %8, %cst_133 {dimension_numbers = #tpu.dot_dimension_numbers<[1], [0], [0], [1], [0, 0, 1, 1], [], []>} : vector<16x16xf32>, vector<16x16xf32>, vector<16x16xf32> -> vector<16x16xf32>
    %231 = arith.addf %229, %230 : vector<16x16xf32>
    %232 = arith.addf %231, %14 : vector<16x16xf32>
    %233 = arith.negf %232 : vector<16x16xf32>
    %234 = math.exp %233 : vector<16x16xf32>
    %cst_134 = arith.constant 1.000000e+00 : f32
    %235 = vector.broadcast %cst_134 : f32 to vector<16x16xf32>
    %236 = arith.addf %235, %234 : vector<16x16xf32>
    %237 = arith.divf %235, %236 : vector<16x16xf32>
    %cst_135 = arith.constant dense<0.000000e+00> : vector<16x16xf32>
    %238 = tpu.matmul %228, %6, %cst_135 {dimension_numbers = #tpu.dot_dimension_numbers<[1], [0], [0], [1], [0, 0, 1, 1], [], []>} : vector<16x16xf32>, vector<16x16xf32>, vector<16x16xf32> -> vector<16x16xf32>
    %cst_136 = arith.constant dense<0.000000e+00> : vector<16x16xf32>
    %239 = tpu.matmul %211, %9, %cst_136 {dimension_numbers = #tpu.dot_dimension_numbers<[1], [0], [0], [1], [0, 0, 1, 1], [], []>} : vector<16x16xf32>, vector<16x16xf32>, vector<16x16xf32> -> vector<16x16xf32>
    %240 = arith.addf %238, %239 : vector<16x16xf32>
    %241 = arith.addf %240, %17 : vector<16x16xf32>
    %242 = arith.negf %241 : vector<16x16xf32>
    %243 = math.exp %242 : vector<16x16xf32>
    %cst_137 = arith.constant 1.000000e+00 : f32
    %244 = vector.broadcast %cst_137 : f32 to vector<16x16xf32>
    %245 = arith.addf %244, %243 : vector<16x16xf32>
    %246 = arith.divf %244, %245 : vector<16x16xf32>
    %cst_138 = arith.constant dense<0.000000e+00> : vector<16x16xf32>
    %247 = tpu.matmul %211, %10, %cst_138 {dimension_numbers = #tpu.dot_dimension_numbers<[1], [0], [0], [1], [0, 0, 1, 1], [], []>} : vector<16x16xf32>, vector<16x16xf32>, vector<16x16xf32> -> vector<16x16xf32>
    %248 = arith.addf %247, %23 : vector<16x16xf32>
    %cst_139 = arith.constant dense<0.000000e+00> : vector<16x16xf32>
    %249 = tpu.matmul %228, %7, %cst_139 {dimension_numbers = #tpu.dot_dimension_numbers<[1], [0], [0], [1], [0, 0, 1, 1], [], []>} : vector<16x16xf32>, vector<16x16xf32>, vector<16x16xf32> -> vector<16x16xf32>
    %250 = arith.addf %249, %20 : vector<16x16xf32>
    %251 = arith.mulf %237, %248 : vector<16x16xf32>
    %252 = arith.addf %250, %251 : vector<16x16xf32>
    %253 = math.tanh %252 : vector<16x16xf32>
    %cst_140 = arith.constant 1.000000e+00 : f32
    %254 = vector.broadcast %cst_140 : f32 to vector<16x16xf32>
    %255 = arith.subf %254, %246 : vector<16x16xf32>
    %256 = arith.mulf %255, %253 : vector<16x16xf32>
    %257 = arith.mulf %246, %211 : vector<16x16xf32>
    %258 = arith.addf %256, %257 : vector<16x16xf32>
    %259 = tpu.transpose %258, [1, 0] : vector<16x16xf32> -> vector<16x16xf32>
    %c0_141 = arith.constant 0 : index
    %c0_142 = arith.constant 0 : index
    %260 = vector.load %arg6[%c0_141, %c0_142] : memref<115x64xf32, #tpu.memory_space<vmem>>, vector<16x64xf32>
    %c16_143 = arith.constant 16 : index
    %c0_144 = arith.constant 0 : index
    %261 = vector.load %arg6[%c16_143, %c0_144] : memref<115x64xf32, #tpu.memory_space<vmem>>, vector<16x64xf32>
    %c32_145 = arith.constant 32 : index
    %c0_146 = arith.constant 0 : index
    %262 = vector.load %arg6[%c32_145, %c0_146] : memref<115x64xf32, #tpu.memory_space<vmem>>, vector<16x64xf32>
    %c48_147 = arith.constant 48 : index
    %c0_148 = arith.constant 0 : index
    %263 = vector.load %arg6[%c48_147, %c0_148] : memref<115x64xf32, #tpu.memory_space<vmem>>, vector<16x64xf32>
    %c64_149 = arith.constant 64 : index
    %c0_150 = arith.constant 0 : index
    %264 = vector.load %arg6[%c64_149, %c0_150] : memref<115x64xf32, #tpu.memory_space<vmem>>, vector<16x64xf32>
    %c80_151 = arith.constant 80 : index
    %c0_152 = arith.constant 0 : index
    %265 = vector.load %arg6[%c80_151, %c0_152] : memref<115x64xf32, #tpu.memory_space<vmem>>, vector<16x64xf32>
    %c96_153 = arith.constant 96 : index
    %c0_154 = arith.constant 0 : index
    %266 = vector.load %arg6[%c96_153, %c0_154] : memref<115x64xf32, #tpu.memory_space<vmem>>, vector<16x64xf32>
    %c112 = arith.constant 112 : index
    %c0_155 = arith.constant 0 : index
    %267 = vector.load %arg6[%c112, %c0_155] : memref<115x64xf32, #tpu.memory_space<vmem>>, vector<3x64xf32>
    %268 = vector.extract_strided_slice %267 {offsets = [0, 0], sizes = [1, 64], strides = [1, 1]} : vector<3x64xf32> to vector<1x64xf32>
    %269 = vector.shape_cast %268 : vector<1x64xf32> to vector<1x64xf32>
    %270 = vector.broadcast %269 : vector<1x64xf32> to vector<2x64xf32>
    %271 = vector.extract_strided_slice %267 {offsets = [1, 0], sizes = [1, 64], strides = [1, 1]} : vector<3x64xf32> to vector<1x64xf32>
    %272 = vector.shape_cast %271 : vector<1x64xf32> to vector<1x64xf32>
    %273 = vector.broadcast %272 : vector<1x64xf32> to vector<2x64xf32>
    %274 = vector.extract_strided_slice %267 {offsets = [2, 0], sizes = [1, 64], strides = [1, 1]} : vector<3x64xf32> to vector<1x64xf32>
    %275 = vector.shape_cast %274 : vector<1x64xf32> to vector<1x64xf32>
    %276 = vector.broadcast %275 : vector<1x64xf32> to vector<2x64xf32>
    %cst_156 = arith.constant 0.000000e+00 : f32
    %277 = vector.broadcast %cst_156 : f32 to vector<2x16xf32>
    %278 = arith.cmpf ogt, %3, %277 : vector<2x16xf32>
    %cst_157 = arith.constant 0.000000e+00 : f32
    %279 = vector.broadcast %cst_157 : f32 to vector<2x16xf32>
    %cst_158 = arith.constant 0.000000e+00 : f32
    %280 = vector.broadcast %cst_158 : f32 to vector<2x16xf32>
    %cst_159 = arith.constant 0.000000e+00 : f32
    %281 = vector.broadcast %cst_159 : f32 to vector<2x16xf32>
    %cst_160 = arith.constant 0.000000e+00 : f32
    %282 = vector.broadcast %cst_160 : f32 to vector<2x16xf32>
    %cst_161 = arith.constant 0.000000e+00 : f32
    %283 = vector.broadcast %cst_161 : f32 to vector<2x16xf32>
    %cst_162 = arith.constant 0.000000e+00 : f32
    %284 = vector.broadcast %cst_162 : f32 to vector<2x16xf32>
    %cst_163 = arith.constant 0.000000e+00 : f32
    %285 = vector.broadcast %cst_163 : f32 to vector<2x16xf32>
    %cst_164 = arith.constant 0.000000e+00 : f32
    %286 = vector.broadcast %cst_164 : f32 to vector<2x16xf32>
    %cst_165 = arith.constant dense<0.000000e+00> : vector<2x64xf32>
    %287 = tpu.matmul %285, %260, %cst_165 {dimension_numbers = #tpu.dot_dimension_numbers<[1], [0], [0], [1], [0, 0, 1, 1], [], []>} : vector<2x16xf32>, vector<16x64xf32>, vector<2x64xf32> -> vector<2x64xf32>
    %cst_166 = arith.constant dense<0.000000e+00> : vector<2x64xf32>
    %288 = tpu.matmul %286, %261, %cst_166 {dimension_numbers = #tpu.dot_dimension_numbers<[1], [0], [0], [1], [0, 0, 1, 1], [], []>} : vector<2x16xf32>, vector<16x64xf32>, vector<2x64xf32> -> vector<2x64xf32>
    %289 = arith.addf %287, %288 : vector<2x64xf32>
    %cst_167 = arith.constant dense<0.000000e+00> : vector<2x64xf32>
    %290 = tpu.matmul %279, %262, %cst_167 {dimension_numbers = #tpu.dot_dimension_numbers<[1], [0], [0], [1], [0, 0, 1, 1], [], []>} : vector<2x16xf32>, vector<16x64xf32>, vector<2x64xf32> -> vector<2x64xf32>
    %291 = arith.addf %289, %290 : vector<2x64xf32>
    %292 = arith.addf %291, %270 : vector<2x64xf32>
    %293 = vector.extract_strided_slice %292 {offsets = [0, 0], sizes = [2, 16], strides = [1, 1]} : vector<2x64xf32> to vector<2x16xf32>
    %294 = arith.negf %293 : vector<2x16xf32>
    %295 = math.exp %294 : vector<2x16xf32>
    %cst_168 = arith.constant 1.000000e+00 : f32
    %296 = vector.broadcast %cst_168 : f32 to vector<2x16xf32>
    %297 = arith.addf %296, %295 : vector<2x16xf32>
    %298 = arith.divf %296, %297 : vector<2x16xf32>
    %299 = vector.extract_strided_slice %292 {offsets = [0, 16], sizes = [2, 16], strides = [1, 1]} : vector<2x64xf32> to vector<2x16xf32>
    %300 = arith.negf %299 : vector<2x16xf32>
    %301 = math.exp %300 : vector<2x16xf32>
    %cst_169 = arith.constant 1.000000e+00 : f32
    %302 = vector.broadcast %cst_169 : f32 to vector<2x16xf32>
    %303 = arith.addf %302, %301 : vector<2x16xf32>
    %304 = arith.divf %302, %303 : vector<2x16xf32>
    %305 = vector.extract_strided_slice %292 {offsets = [0, 32], sizes = [2, 16], strides = [1, 1]} : vector<2x64xf32> to vector<2x16xf32>
    %306 = math.tanh %305 : vector<2x16xf32>
    %307 = vector.extract_strided_slice %292 {offsets = [0, 48], sizes = [2, 16], strides = [1, 1]} : vector<2x64xf32> to vector<2x16xf32>
    %308 = arith.negf %307 : vector<2x16xf32>
    %309 = math.exp %308 : vector<2x16xf32>
    %cst_170 = arith.constant 1.000000e+00 : f32
    %310 = vector.broadcast %cst_170 : f32 to vector<2x16xf32>
    %311 = arith.addf %310, %309 : vector<2x16xf32>
    %312 = arith.divf %310, %311 : vector<2x16xf32>
    %313 = arith.mulf %304, %282 : vector<2x16xf32>
    %314 = arith.mulf %298, %306 : vector<2x16xf32>
    %315 = arith.addf %313, %314 : vector<2x16xf32>
    %316 = math.tanh %315 : vector<2x16xf32>
    %317 = arith.mulf %312, %316 : vector<2x16xf32>
    %cst_171 = arith.constant dense<0.000000e+00> : vector<2x64xf32>
    %318 = tpu.matmul %317, %263, %cst_171 {dimension_numbers = #tpu.dot_dimension_numbers<[1], [0], [0], [1], [0, 0, 1, 1], [], []>} : vector<2x16xf32>, vector<16x64xf32>, vector<2x64xf32> -> vector<2x64xf32>
    %cst_172 = arith.constant dense<0.000000e+00> : vector<2x64xf32>
    %319 = tpu.matmul %280, %264, %cst_172 {dimension_numbers = #tpu.dot_dimension_numbers<[1], [0], [0], [1], [0, 0, 1, 1], [], []>} : vector<2x16xf32>, vector<16x64xf32>, vector<2x64xf32> -> vector<2x64xf32>
    %320 = arith.addf %318, %319 : vector<2x64xf32>
    %321 = arith.addf %320, %273 : vector<2x64xf32>
    %322 = vector.extract_strided_slice %321 {offsets = [0, 0], sizes = [2, 16], strides = [1, 1]} : vector<2x64xf32> to vector<2x16xf32>
    %323 = arith.negf %322 : vector<2x16xf32>
    %324 = math.exp %323 : vector<2x16xf32>
    %cst_173 = arith.constant 1.000000e+00 : f32
    %325 = vector.broadcast %cst_173 : f32 to vector<2x16xf32>
    %326 = arith.addf %325, %324 : vector<2x16xf32>
    %327 = arith.divf %325, %326 : vector<2x16xf32>
    %328 = vector.extract_strided_slice %321 {offsets = [0, 16], sizes = [2, 16], strides = [1, 1]} : vector<2x64xf32> to vector<2x16xf32>
    %329 = arith.negf %328 : vector<2x16xf32>
    %330 = math.exp %329 : vector<2x16xf32>
    %cst_174 = arith.constant 1.000000e+00 : f32
    %331 = vector.broadcast %cst_174 : f32 to vector<2x16xf32>
    %332 = arith.addf %331, %330 : vector<2x16xf32>
    %333 = arith.divf %331, %332 : vector<2x16xf32>
    %334 = vector.extract_strided_slice %321 {offsets = [0, 32], sizes = [2, 16], strides = [1, 1]} : vector<2x64xf32> to vector<2x16xf32>
    %335 = math.tanh %334 : vector<2x16xf32>
    %336 = vector.extract_strided_slice %321 {offsets = [0, 48], sizes = [2, 16], strides = [1, 1]} : vector<2x64xf32> to vector<2x16xf32>
    %337 = arith.negf %336 : vector<2x16xf32>
    %338 = math.exp %337 : vector<2x16xf32>
    %cst_175 = arith.constant 1.000000e+00 : f32
    %339 = vector.broadcast %cst_175 : f32 to vector<2x16xf32>
    %340 = arith.addf %339, %338 : vector<2x16xf32>
    %341 = arith.divf %339, %340 : vector<2x16xf32>
    %342 = arith.mulf %333, %283 : vector<2x16xf32>
    %343 = arith.mulf %327, %335 : vector<2x16xf32>
    %344 = arith.addf %342, %343 : vector<2x16xf32>
    %345 = math.tanh %344 : vector<2x16xf32>
    %346 = arith.mulf %341, %345 : vector<2x16xf32>
    %cst_176 = arith.constant dense<0.000000e+00> : vector<2x64xf32>
    %347 = tpu.matmul %346, %265, %cst_176 {dimension_numbers = #tpu.dot_dimension_numbers<[1], [0], [0], [1], [0, 0, 1, 1], [], []>} : vector<2x16xf32>, vector<16x64xf32>, vector<2x64xf32> -> vector<2x64xf32>
    %cst_177 = arith.constant dense<0.000000e+00> : vector<2x64xf32>
    %348 = tpu.matmul %281, %266, %cst_177 {dimension_numbers = #tpu.dot_dimension_numbers<[1], [0], [0], [1], [0, 0, 1, 1], [], []>} : vector<2x16xf32>, vector<16x64xf32>, vector<2x64xf32> -> vector<2x64xf32>
    %349 = arith.addf %347, %348 : vector<2x64xf32>
    %350 = arith.addf %349, %276 : vector<2x64xf32>
    %351 = vector.extract_strided_slice %350 {offsets = [0, 0], sizes = [2, 16], strides = [1, 1]} : vector<2x64xf32> to vector<2x16xf32>
    %352 = arith.negf %351 : vector<2x16xf32>
    %353 = math.exp %352 : vector<2x16xf32>
    %cst_178 = arith.constant 1.000000e+00 : f32
    %354 = vector.broadcast %cst_178 : f32 to vector<2x16xf32>
    %355 = arith.addf %354, %353 : vector<2x16xf32>
    %356 = arith.divf %354, %355 : vector<2x16xf32>
    %357 = vector.extract_strided_slice %350 {offsets = [0, 16], sizes = [2, 16], strides = [1, 1]} : vector<2x64xf32> to vector<2x16xf32>
    %358 = arith.negf %357 : vector<2x16xf32>
    %359 = math.exp %358 : vector<2x16xf32>
    %cst_179 = arith.constant 1.000000e+00 : f32
    %360 = vector.broadcast %cst_179 : f32 to vector<2x16xf32>
    %361 = arith.addf %360, %359 : vector<2x16xf32>
    %362 = arith.divf %360, %361 : vector<2x16xf32>
    %363 = vector.extract_strided_slice %350 {offsets = [0, 32], sizes = [2, 16], strides = [1, 1]} : vector<2x64xf32> to vector<2x16xf32>
    %364 = math.tanh %363 : vector<2x16xf32>
    %365 = vector.extract_strided_slice %350 {offsets = [0, 48], sizes = [2, 16], strides = [1, 1]} : vector<2x64xf32> to vector<2x16xf32>
    %366 = arith.negf %365 : vector<2x16xf32>
    %367 = math.exp %366 : vector<2x16xf32>
    %cst_180 = arith.constant 1.000000e+00 : f32
    %368 = vector.broadcast %cst_180 : f32 to vector<2x16xf32>
    %369 = arith.addf %368, %367 : vector<2x16xf32>
    %370 = arith.divf %368, %369 : vector<2x16xf32>
    %371 = arith.mulf %362, %284 : vector<2x16xf32>
    %372 = arith.mulf %356, %364 : vector<2x16xf32>
    %373 = arith.addf %371, %372 : vector<2x16xf32>
    %374 = math.tanh %373 : vector<2x16xf32>
    %375 = arith.mulf %370, %374 : vector<2x16xf32>
    %cst_181 = arith.constant dense<0.000000e+00> : vector<2x16xf32>
    %376 = tpu.matmul %375, %259, %cst_181 {dimension_numbers = #tpu.dot_dimension_numbers<[1], [0], [0], [1], [0, 0, 1, 1], [], []>} : vector<2x16xf32>, vector<16x16xf32>, vector<2x16xf32> -> vector<2x16xf32>
    %cst_182 = arith.constant -1.000000e+30 : f32
    %377 = vector.broadcast %cst_182 : f32 to vector<2x16xf32>
    %378 = arith.select %278, %376, %377 : vector<2x16xi1>, vector<2x16xf32>
    %cst_183 = arith.constant dense<0xFF800000> : vector<2xf32>
    %379 = vector.multi_reduction <maximumf>, %378, %cst_183 [1] : vector<2x16xf32> to vector<2xf32>
    %380 = vector.shape_cast %379 : vector<2xf32> to vector<2x1xf32>
    %381 = vector.broadcast %380 : vector<2x1xf32> to vector<2x16xf32>
    %382 = arith.subf %378, %381 : vector<2x16xf32>
    %383 = math.exp %382 : vector<2x16xf32>
    %cst_184 = arith.constant 0.000000e+00 : f32
    %384 = vector.broadcast %cst_184 : f32 to vector<2x16xf32>
    %385 = arith.select %278, %383, %384 : vector<2x16xi1>, vector<2x16xf32>
    %cst_185 = arith.constant dense<0.000000e+00> : vector<2xf32>
    %386 = vector.multi_reduction <add>, %385, %cst_185 [1] : vector<2x16xf32> to vector<2xf32>
    %387 = vector.shape_cast %386 : vector<2xf32> to vector<2x1xf32>
    %cst_186 = arith.constant 1.000000e-30 : f32
    %388 = vector.broadcast %cst_186 : f32 to vector<2x1xf32>
    %389 = arith.maximumf %387, %388 : vector<2x1xf32>
    %390 = tpu.reciprocal %389 : vector<2x1xf32> -> vector<2x1xf32>
    %391 = vector.broadcast %390 : vector<2x1xf32> to vector<2x16xf32>
    %392 = arith.mulf %385, %391 : vector<2x16xf32>
    %cst_187 = arith.constant dense<0.000000e+00> : vector<2x16xf32>
    %393 = tpu.matmul %392, %258, %cst_187 {dimension_numbers = #tpu.dot_dimension_numbers<[1], [0], [0], [1], [0, 0, 1, 1], [], []>} : vector<2x16xf32>, vector<16x16xf32>, vector<2x16xf32> -> vector<2x16xf32>
    %cst_188 = arith.constant dense<0.000000e+00> : vector<2x64xf32>
    %394 = tpu.matmul %375, %260, %cst_188 {dimension_numbers = #tpu.dot_dimension_numbers<[1], [0], [0], [1], [0, 0, 1, 1], [], []>} : vector<2x16xf32>, vector<16x64xf32>, vector<2x64xf32> -> vector<2x64xf32>
    %cst_189 = arith.constant dense<0.000000e+00> : vector<2x64xf32>
    %395 = tpu.matmul %393, %261, %cst_189 {dimension_numbers = #tpu.dot_dimension_numbers<[1], [0], [0], [1], [0, 0, 1, 1], [], []>} : vector<2x16xf32>, vector<16x64xf32>, vector<2x64xf32> -> vector<2x64xf32>
    %396 = arith.addf %394, %395 : vector<2x64xf32>
    %cst_190 = arith.constant dense<0.000000e+00> : vector<2x64xf32>
    %397 = tpu.matmul %317, %262, %cst_190 {dimension_numbers = #tpu.dot_dimension_numbers<[1], [0], [0], [1], [0, 0, 1, 1], [], []>} : vector<2x16xf32>, vector<16x64xf32>, vector<2x64xf32> -> vector<2x64xf32>
    %398 = arith.addf %396, %397 : vector<2x64xf32>
    %399 = arith.addf %398, %270 : vector<2x64xf32>
    %400 = vector.extract_strided_slice %399 {offsets = [0, 0], sizes = [2, 16], strides = [1, 1]} : vector<2x64xf32> to vector<2x16xf32>
    %401 = arith.negf %400 : vector<2x16xf32>
    %402 = math.exp %401 : vector<2x16xf32>
    %cst_191 = arith.constant 1.000000e+00 : f32
    %403 = vector.broadcast %cst_191 : f32 to vector<2x16xf32>
    %404 = arith.addf %403, %402 : vector<2x16xf32>
    %405 = arith.divf %403, %404 : vector<2x16xf32>
    %406 = vector.extract_strided_slice %399 {offsets = [0, 16], sizes = [2, 16], strides = [1, 1]} : vector<2x64xf32> to vector<2x16xf32>
    %407 = arith.negf %406 : vector<2x16xf32>
    %408 = math.exp %407 : vector<2x16xf32>
    %cst_192 = arith.constant 1.000000e+00 : f32
    %409 = vector.broadcast %cst_192 : f32 to vector<2x16xf32>
    %410 = arith.addf %409, %408 : vector<2x16xf32>
    %411 = arith.divf %409, %410 : vector<2x16xf32>
    %412 = vector.extract_strided_slice %399 {offsets = [0, 32], sizes = [2, 16], strides = [1, 1]} : vector<2x64xf32> to vector<2x16xf32>
    %413 = math.tanh %412 : vector<2x16xf32>
    %414 = vector.extract_strided_slice %399 {offsets = [0, 48], sizes = [2, 16], strides = [1, 1]} : vector<2x64xf32> to vector<2x16xf32>
    %415 = arith.negf %414 : vector<2x16xf32>
    %416 = math.exp %415 : vector<2x16xf32>
    %cst_193 = arith.constant 1.000000e+00 : f32
    %417 = vector.broadcast %cst_193 : f32 to vector<2x16xf32>
    %418 = arith.addf %417, %416 : vector<2x16xf32>
    %419 = arith.divf %417, %418 : vector<2x16xf32>
    %420 = arith.mulf %411, %315 : vector<2x16xf32>
    %421 = arith.mulf %405, %413 : vector<2x16xf32>
    %422 = arith.addf %420, %421 : vector<2x16xf32>
    %423 = math.tanh %422 : vector<2x16xf32>
    %424 = arith.mulf %419, %423 : vector<2x16xf32>
    %cst_194 = arith.constant dense<0.000000e+00> : vector<2x64xf32>
    %425 = tpu.matmul %424, %263, %cst_194 {dimension_numbers = #tpu.dot_dimension_numbers<[1], [0], [0], [1], [0, 0, 1, 1], [], []>} : vector<2x16xf32>, vector<16x64xf32>, vector<2x64xf32> -> vector<2x64xf32>
    %cst_195 = arith.constant dense<0.000000e+00> : vector<2x64xf32>
    %426 = tpu.matmul %346, %264, %cst_195 {dimension_numbers = #tpu.dot_dimension_numbers<[1], [0], [0], [1], [0, 0, 1, 1], [], []>} : vector<2x16xf32>, vector<16x64xf32>, vector<2x64xf32> -> vector<2x64xf32>
    %427 = arith.addf %425, %426 : vector<2x64xf32>
    %428 = arith.addf %427, %273 : vector<2x64xf32>
    %429 = vector.extract_strided_slice %428 {offsets = [0, 0], sizes = [2, 16], strides = [1, 1]} : vector<2x64xf32> to vector<2x16xf32>
    %430 = arith.negf %429 : vector<2x16xf32>
    %431 = math.exp %430 : vector<2x16xf32>
    %cst_196 = arith.constant 1.000000e+00 : f32
    %432 = vector.broadcast %cst_196 : f32 to vector<2x16xf32>
    %433 = arith.addf %432, %431 : vector<2x16xf32>
    %434 = arith.divf %432, %433 : vector<2x16xf32>
    %435 = vector.extract_strided_slice %428 {offsets = [0, 16], sizes = [2, 16], strides = [1, 1]} : vector<2x64xf32> to vector<2x16xf32>
    %436 = arith.negf %435 : vector<2x16xf32>
    %437 = math.exp %436 : vector<2x16xf32>
    %cst_197 = arith.constant 1.000000e+00 : f32
    %438 = vector.broadcast %cst_197 : f32 to vector<2x16xf32>
    %439 = arith.addf %438, %437 : vector<2x16xf32>
    %440 = arith.divf %438, %439 : vector<2x16xf32>
    %441 = vector.extract_strided_slice %428 {offsets = [0, 32], sizes = [2, 16], strides = [1, 1]} : vector<2x64xf32> to vector<2x16xf32>
    %442 = math.tanh %441 : vector<2x16xf32>
    %443 = vector.extract_strided_slice %428 {offsets = [0, 48], sizes = [2, 16], strides = [1, 1]} : vector<2x64xf32> to vector<2x16xf32>
    %444 = arith.negf %443 : vector<2x16xf32>
    %445 = math.exp %444 : vector<2x16xf32>
    %cst_198 = arith.constant 1.000000e+00 : f32
    %446 = vector.broadcast %cst_198 : f32 to vector<2x16xf32>
    %447 = arith.addf %446, %445 : vector<2x16xf32>
    %448 = arith.divf %446, %447 : vector<2x16xf32>
    %449 = arith.mulf %440, %344 : vector<2x16xf32>
    %450 = arith.mulf %434, %442 : vector<2x16xf32>
    %451 = arith.addf %449, %450 : vector<2x16xf32>
    %452 = math.tanh %451 : vector<2x16xf32>
    %453 = arith.mulf %448, %452 : vector<2x16xf32>
    %cst_199 = arith.constant dense<0.000000e+00> : vector<2x64xf32>
    %454 = tpu.matmul %453, %265, %cst_199 {dimension_numbers = #tpu.dot_dimension_numbers<[1], [0], [0], [1], [0, 0, 1, 1], [], []>} : vector<2x16xf32>, vector<16x64xf32>, vector<2x64xf32> -> vector<2x64xf32>
    %cst_200 = arith.constant dense<0.000000e+00> : vector<2x64xf32>
    %455 = tpu.matmul %375, %266, %cst_200 {dimension_numbers = #tpu.dot_dimension_numbers<[1], [0], [0], [1], [0, 0, 1, 1], [], []>} : vector<2x16xf32>, vector<16x64xf32>, vector<2x64xf32> -> vector<2x64xf32>
    %456 = arith.addf %454, %455 : vector<2x64xf32>
    %457 = arith.addf %456, %276 : vector<2x64xf32>
    %458 = vector.extract_strided_slice %457 {offsets = [0, 0], sizes = [2, 16], strides = [1, 1]} : vector<2x64xf32> to vector<2x16xf32>
    %459 = arith.negf %458 : vector<2x16xf32>
    %460 = math.exp %459 : vector<2x16xf32>
    %cst_201 = arith.constant 1.000000e+00 : f32
    %461 = vector.broadcast %cst_201 : f32 to vector<2x16xf32>
    %462 = arith.addf %461, %460 : vector<2x16xf32>
    %463 = arith.divf %461, %462 : vector<2x16xf32>
    %464 = vector.extract_strided_slice %457 {offsets = [0, 16], sizes = [2, 16], strides = [1, 1]} : vector<2x64xf32> to vector<2x16xf32>
    %465 = arith.negf %464 : vector<2x16xf32>
    %466 = math.exp %465 : vector<2x16xf32>
    %cst_202 = arith.constant 1.000000e+00 : f32
    %467 = vector.broadcast %cst_202 : f32 to vector<2x16xf32>
    %468 = arith.addf %467, %466 : vector<2x16xf32>
    %469 = arith.divf %467, %468 : vector<2x16xf32>
    %470 = vector.extract_strided_slice %457 {offsets = [0, 32], sizes = [2, 16], strides = [1, 1]} : vector<2x64xf32> to vector<2x16xf32>
    %471 = math.tanh %470 : vector<2x16xf32>
    %472 = vector.extract_strided_slice %457 {offsets = [0, 48], sizes = [2, 16], strides = [1, 1]} : vector<2x64xf32> to vector<2x16xf32>
    %473 = arith.negf %472 : vector<2x16xf32>
    %474 = math.exp %473 : vector<2x16xf32>
    %cst_203 = arith.constant 1.000000e+00 : f32
    %475 = vector.broadcast %cst_203 : f32 to vector<2x16xf32>
    %476 = arith.addf %475, %474 : vector<2x16xf32>
    %477 = arith.divf %475, %476 : vector<2x16xf32>
    %478 = arith.mulf %469, %373 : vector<2x16xf32>
    %479 = arith.mulf %463, %471 : vector<2x16xf32>
    %480 = arith.addf %478, %479 : vector<2x16xf32>
    %481 = math.tanh %480 : vector<2x16xf32>
    %482 = arith.mulf %477, %481 : vector<2x16xf32>
    %cst_204 = arith.constant dense<0.000000e+00> : vector<2x16xf32>
    %483 = tpu.matmul %482, %259, %cst_204 {dimension_numbers = #tpu.dot_dimension_numbers<[1], [0], [0], [1], [0, 0, 1, 1], [], []>} : vector<2x16xf32>, vector<16x16xf32>, vector<2x16xf32> -> vector<2x16xf32>
    %cst_205 = arith.constant -1.000000e+30 : f32
    %484 = vector.broadcast %cst_205 : f32 to vector<2x16xf32>
    %485 = arith.select %278, %483, %484 : vector<2x16xi1>, vector<2x16xf32>
    %cst_206 = arith.constant dense<0xFF800000> : vector<2xf32>
    %486 = vector.multi_reduction <maximumf>, %485, %cst_206 [1] : vector<2x16xf32> to vector<2xf32>
    %487 = vector.shape_cast %486 : vector<2xf32> to vector<2x1xf32>
    %488 = vector.broadcast %487 : vector<2x1xf32> to vector<2x16xf32>
    %489 = arith.subf %485, %488 : vector<2x16xf32>
    %490 = math.exp %489 : vector<2x16xf32>
    %cst_207 = arith.constant 0.000000e+00 : f32
    %491 = vector.broadcast %cst_207 : f32 to vector<2x16xf32>
    %492 = arith.select %278, %490, %491 : vector<2x16xi1>, vector<2x16xf32>
    %cst_208 = arith.constant dense<0.000000e+00> : vector<2xf32>
    %493 = vector.multi_reduction <add>, %492, %cst_208 [1] : vector<2x16xf32> to vector<2xf32>
    %494 = vector.shape_cast %493 : vector<2xf32> to vector<2x1xf32>
    %cst_209 = arith.constant 1.000000e-30 : f32
    %495 = vector.broadcast %cst_209 : f32 to vector<2x1xf32>
    %496 = arith.maximumf %494, %495 : vector<2x1xf32>
    %497 = tpu.reciprocal %496 : vector<2x1xf32> -> vector<2x1xf32>
    %498 = vector.broadcast %497 : vector<2x1xf32> to vector<2x16xf32>
    %499 = arith.mulf %492, %498 : vector<2x16xf32>
    %cst_210 = arith.constant dense<0.000000e+00> : vector<2x16xf32>
    %500 = tpu.matmul %499, %258, %cst_210 {dimension_numbers = #tpu.dot_dimension_numbers<[1], [0], [0], [1], [0, 0, 1, 1], [], []>} : vector<2x16xf32>, vector<16x16xf32>, vector<2x16xf32> -> vector<2x16xf32>
    %cst_211 = arith.constant dense<0.000000e+00> : vector<2x64xf32>
    %501 = tpu.matmul %482, %260, %cst_211 {dimension_numbers = #tpu.dot_dimension_numbers<[1], [0], [0], [1], [0, 0, 1, 1], [], []>} : vector<2x16xf32>, vector<16x64xf32>, vector<2x64xf32> -> vector<2x64xf32>
    %cst_212 = arith.constant dense<0.000000e+00> : vector<2x64xf32>
    %502 = tpu.matmul %500, %261, %cst_212 {dimension_numbers = #tpu.dot_dimension_numbers<[1], [0], [0], [1], [0, 0, 1, 1], [], []>} : vector<2x16xf32>, vector<16x64xf32>, vector<2x64xf32> -> vector<2x64xf32>
    %503 = arith.addf %501, %502 : vector<2x64xf32>
    %cst_213 = arith.constant dense<0.000000e+00> : vector<2x64xf32>
    %504 = tpu.matmul %424, %262, %cst_213 {dimension_numbers = #tpu.dot_dimension_numbers<[1], [0], [0], [1], [0, 0, 1, 1], [], []>} : vector<2x16xf32>, vector<16x64xf32>, vector<2x64xf32> -> vector<2x64xf32>
    %505 = arith.addf %503, %504 : vector<2x64xf32>
    %506 = arith.addf %505, %270 : vector<2x64xf32>
    %507 = vector.extract_strided_slice %506 {offsets = [0, 0], sizes = [2, 16], strides = [1, 1]} : vector<2x64xf32> to vector<2x16xf32>
    %508 = arith.negf %507 : vector<2x16xf32>
    %509 = math.exp %508 : vector<2x16xf32>
    %cst_214 = arith.constant 1.000000e+00 : f32
    %510 = vector.broadcast %cst_214 : f32 to vector<2x16xf32>
    %511 = arith.addf %510, %509 : vector<2x16xf32>
    %512 = arith.divf %510, %511 : vector<2x16xf32>
    %513 = vector.extract_strided_slice %506 {offsets = [0, 16], sizes = [2, 16], strides = [1, 1]} : vector<2x64xf32> to vector<2x16xf32>
    %514 = arith.negf %513 : vector<2x16xf32>
    %515 = math.exp %514 : vector<2x16xf32>
    %cst_215 = arith.constant 1.000000e+00 : f32
    %516 = vector.broadcast %cst_215 : f32 to vector<2x16xf32>
    %517 = arith.addf %516, %515 : vector<2x16xf32>
    %518 = arith.divf %516, %517 : vector<2x16xf32>
    %519 = vector.extract_strided_slice %506 {offsets = [0, 32], sizes = [2, 16], strides = [1, 1]} : vector<2x64xf32> to vector<2x16xf32>
    %520 = math.tanh %519 : vector<2x16xf32>
    %521 = vector.extract_strided_slice %506 {offsets = [0, 48], sizes = [2, 16], strides = [1, 1]} : vector<2x64xf32> to vector<2x16xf32>
    %522 = arith.negf %521 : vector<2x16xf32>
    %523 = math.exp %522 : vector<2x16xf32>
    %cst_216 = arith.constant 1.000000e+00 : f32
    %524 = vector.broadcast %cst_216 : f32 to vector<2x16xf32>
    %525 = arith.addf %524, %523 : vector<2x16xf32>
    %526 = arith.divf %524, %525 : vector<2x16xf32>
    %527 = arith.mulf %518, %422 : vector<2x16xf32>
    %528 = arith.mulf %512, %520 : vector<2x16xf32>
    %529 = arith.addf %527, %528 : vector<2x16xf32>
    %530 = math.tanh %529 : vector<2x16xf32>
    %531 = arith.mulf %526, %530 : vector<2x16xf32>
    %cst_217 = arith.constant dense<0.000000e+00> : vector<2x64xf32>
    %532 = tpu.matmul %531, %263, %cst_217 {dimension_numbers = #tpu.dot_dimension_numbers<[1], [0], [0], [1], [0, 0, 1, 1], [], []>} : vector<2x16xf32>, vector<16x64xf32>, vector<2x64xf32> -> vector<2x64xf32>
    %cst_218 = arith.constant dense<0.000000e+00> : vector<2x64xf32>
    %533 = tpu.matmul %453, %264, %cst_218 {dimension_numbers = #tpu.dot_dimension_numbers<[1], [0], [0], [1], [0, 0, 1, 1], [], []>} : vector<2x16xf32>, vector<16x64xf32>, vector<2x64xf32> -> vector<2x64xf32>
    %534 = arith.addf %532, %533 : vector<2x64xf32>
    %535 = arith.addf %534, %273 : vector<2x64xf32>
    %536 = vector.extract_strided_slice %535 {offsets = [0, 0], sizes = [2, 16], strides = [1, 1]} : vector<2x64xf32> to vector<2x16xf32>
    %537 = arith.negf %536 : vector<2x16xf32>
    %538 = math.exp %537 : vector<2x16xf32>
    %cst_219 = arith.constant 1.000000e+00 : f32
    %539 = vector.broadcast %cst_219 : f32 to vector<2x16xf32>
    %540 = arith.addf %539, %538 : vector<2x16xf32>
    %541 = arith.divf %539, %540 : vector<2x16xf32>
    %542 = vector.extract_strided_slice %535 {offsets = [0, 16], sizes = [2, 16], strides = [1, 1]} : vector<2x64xf32> to vector<2x16xf32>
    %543 = arith.negf %542 : vector<2x16xf32>
    %544 = math.exp %543 : vector<2x16xf32>
    %cst_220 = arith.constant 1.000000e+00 : f32
    %545 = vector.broadcast %cst_220 : f32 to vector<2x16xf32>
    %546 = arith.addf %545, %544 : vector<2x16xf32>
    %547 = arith.divf %545, %546 : vector<2x16xf32>
    %548 = vector.extract_strided_slice %535 {offsets = [0, 32], sizes = [2, 16], strides = [1, 1]} : vector<2x64xf32> to vector<2x16xf32>
    %549 = math.tanh %548 : vector<2x16xf32>
    %550 = vector.extract_strided_slice %535 {offsets = [0, 48], sizes = [2, 16], strides = [1, 1]} : vector<2x64xf32> to vector<2x16xf32>
    %551 = arith.negf %550 : vector<2x16xf32>
    %552 = math.exp %551 : vector<2x16xf32>
    %cst_221 = arith.constant 1.000000e+00 : f32
    %553 = vector.broadcast %cst_221 : f32 to vector<2x16xf32>
    %554 = arith.addf %553, %552 : vector<2x16xf32>
    %555 = arith.divf %553, %554 : vector<2x16xf32>
    %556 = arith.mulf %547, %451 : vector<2x16xf32>
    %557 = arith.mulf %541, %549 : vector<2x16xf32>
    %558 = arith.addf %556, %557 : vector<2x16xf32>
    %559 = math.tanh %558 : vector<2x16xf32>
    %560 = arith.mulf %555, %559 : vector<2x16xf32>
    %cst_222 = arith.constant dense<0.000000e+00> : vector<2x64xf32>
    %561 = tpu.matmul %560, %265, %cst_222 {dimension_numbers = #tpu.dot_dimension_numbers<[1], [0], [0], [1], [0, 0, 1, 1], [], []>} : vector<2x16xf32>, vector<16x64xf32>, vector<2x64xf32> -> vector<2x64xf32>
    %cst_223 = arith.constant dense<0.000000e+00> : vector<2x64xf32>
    %562 = tpu.matmul %482, %266, %cst_223 {dimension_numbers = #tpu.dot_dimension_numbers<[1], [0], [0], [1], [0, 0, 1, 1], [], []>} : vector<2x16xf32>, vector<16x64xf32>, vector<2x64xf32> -> vector<2x64xf32>
    %563 = arith.addf %561, %562 : vector<2x64xf32>
    %564 = arith.addf %563, %276 : vector<2x64xf32>
    %565 = vector.extract_strided_slice %564 {offsets = [0, 0], sizes = [2, 16], strides = [1, 1]} : vector<2x64xf32> to vector<2x16xf32>
    %566 = arith.negf %565 : vector<2x16xf32>
    %567 = math.exp %566 : vector<2x16xf32>
    %cst_224 = arith.constant 1.000000e+00 : f32
    %568 = vector.broadcast %cst_224 : f32 to vector<2x16xf32>
    %569 = arith.addf %568, %567 : vector<2x16xf32>
    %570 = arith.divf %568, %569 : vector<2x16xf32>
    %571 = vector.extract_strided_slice %564 {offsets = [0, 16], sizes = [2, 16], strides = [1, 1]} : vector<2x64xf32> to vector<2x16xf32>
    %572 = arith.negf %571 : vector<2x16xf32>
    %573 = math.exp %572 : vector<2x16xf32>
    %cst_225 = arith.constant 1.000000e+00 : f32
    %574 = vector.broadcast %cst_225 : f32 to vector<2x16xf32>
    %575 = arith.addf %574, %573 : vector<2x16xf32>
    %576 = arith.divf %574, %575 : vector<2x16xf32>
    %577 = vector.extract_strided_slice %564 {offsets = [0, 32], sizes = [2, 16], strides = [1, 1]} : vector<2x64xf32> to vector<2x16xf32>
    %578 = math.tanh %577 : vector<2x16xf32>
    %579 = vector.extract_strided_slice %564 {offsets = [0, 48], sizes = [2, 16], strides = [1, 1]} : vector<2x64xf32> to vector<2x16xf32>
    %580 = arith.negf %579 : vector<2x16xf32>
    %581 = math.exp %580 : vector<2x16xf32>
    %cst_226 = arith.constant 1.000000e+00 : f32
    %582 = vector.broadcast %cst_226 : f32 to vector<2x16xf32>
    %583 = arith.addf %582, %581 : vector<2x16xf32>
    %584 = arith.divf %582, %583 : vector<2x16xf32>
    %585 = arith.mulf %576, %480 : vector<2x16xf32>
    %586 = arith.mulf %570, %578 : vector<2x16xf32>
    %587 = arith.addf %585, %586 : vector<2x16xf32>
    %588 = math.tanh %587 : vector<2x16xf32>
    %589 = arith.mulf %584, %588 : vector<2x16xf32>
    %cst_227 = arith.constant dense<0.000000e+00> : vector<2x16xf32>
    %590 = tpu.matmul %589, %259, %cst_227 {dimension_numbers = #tpu.dot_dimension_numbers<[1], [0], [0], [1], [0, 0, 1, 1], [], []>} : vector<2x16xf32>, vector<16x16xf32>, vector<2x16xf32> -> vector<2x16xf32>
    %cst_228 = arith.constant -1.000000e+30 : f32
    %591 = vector.broadcast %cst_228 : f32 to vector<2x16xf32>
    %592 = arith.select %278, %590, %591 : vector<2x16xi1>, vector<2x16xf32>
    %cst_229 = arith.constant dense<0xFF800000> : vector<2xf32>
    %593 = vector.multi_reduction <maximumf>, %592, %cst_229 [1] : vector<2x16xf32> to vector<2xf32>
    %594 = vector.shape_cast %593 : vector<2xf32> to vector<2x1xf32>
    %595 = vector.broadcast %594 : vector<2x1xf32> to vector<2x16xf32>
    %596 = arith.subf %592, %595 : vector<2x16xf32>
    %597 = math.exp %596 : vector<2x16xf32>
    %cst_230 = arith.constant 0.000000e+00 : f32
    %598 = vector.broadcast %cst_230 : f32 to vector<2x16xf32>
    %599 = arith.select %278, %597, %598 : vector<2x16xi1>, vector<2x16xf32>
    %cst_231 = arith.constant dense<0.000000e+00> : vector<2xf32>
    %600 = vector.multi_reduction <add>, %599, %cst_231 [1] : vector<2x16xf32> to vector<2xf32>
    %601 = vector.shape_cast %600 : vector<2xf32> to vector<2x1xf32>
    %cst_232 = arith.constant 1.000000e-30 : f32
    %602 = vector.broadcast %cst_232 : f32 to vector<2x1xf32>
    %603 = arith.maximumf %601, %602 : vector<2x1xf32>
    %604 = tpu.reciprocal %603 : vector<2x1xf32> -> vector<2x1xf32>
    %605 = vector.broadcast %604 : vector<2x1xf32> to vector<2x16xf32>
    %606 = arith.mulf %599, %605 : vector<2x16xf32>
    %cst_233 = arith.constant dense<0.000000e+00> : vector<2x16xf32>
    %607 = tpu.matmul %606, %258, %cst_233 {dimension_numbers = #tpu.dot_dimension_numbers<[1], [0], [0], [1], [0, 0, 1, 1], [], []>} : vector<2x16xf32>, vector<16x16xf32>, vector<2x16xf32> -> vector<2x16xf32>
    %c0_234 = arith.constant 0 : index
    %c0_235 = arith.constant 0 : index
    %608 = vector.load %arg7[%c0_234, %c0_235] : memref<33x3xf32, #tpu.memory_space<vmem>>, vector<16x3xf32>
    %c16_236 = arith.constant 16 : index
    %c0_237 = arith.constant 0 : index
    %609 = vector.load %arg7[%c16_236, %c0_237] : memref<33x3xf32, #tpu.memory_space<vmem>>, vector<16x3xf32>
    %c32_238 = arith.constant 32 : index
    %c0_239 = arith.constant 0 : index
    %610 = vector.load %arg7[%c32_238, %c0_239] : memref<33x3xf32, #tpu.memory_space<vmem>>, vector<1x3xf32>
    %cst_240 = arith.constant dense<0.000000e+00> : vector<2x3xf32>
    %611 = tpu.matmul %589, %608, %cst_240 {dimension_numbers = #tpu.dot_dimension_numbers<[1], [0], [0], [1], [0, 0, 1, 1], [], []>} : vector<2x16xf32>, vector<16x3xf32>, vector<2x3xf32> -> vector<2x3xf32>
    %cst_241 = arith.constant dense<0.000000e+00> : vector<2x3xf32>
    %612 = tpu.matmul %607, %609, %cst_241 {dimension_numbers = #tpu.dot_dimension_numbers<[1], [0], [0], [1], [0, 0, 1, 1], [], []>} : vector<2x16xf32>, vector<16x3xf32>, vector<2x3xf32> -> vector<2x3xf32>
    %613 = arith.addf %611, %612 : vector<2x3xf32>
    %614 = vector.broadcast %610 : vector<1x3xf32> to vector<2x3xf32>
    %615 = arith.addf %613, %614 : vector<2x3xf32>
    %c0_242 = arith.constant 0 : index
    %c0_243 = arith.constant 0 : index
    %616 = vector.load %arg8[%c0_242, %c0_243] : memref<2x3xf32, #tpu.memory_space<vmem>>, vector<2x3xf32>
    tpu.vector_store %arg8[%c0_242, %c0_243], %615 {strides = array<i32>} : memref<2x3xf32, #tpu.memory_space<vmem>>, vector<2x3xf32>,
    return
  }
}

</mosaic_0001>

<bundles_post_ra>
// kernel: tpu_custom_call.1
= control target key start
LH: loop header
LB: loop body
LE: loop exit
PB: predicated region body
PF: predicated region fallthrough
CT: control target
= control target key end

     0   :  { %v7919_v4 = vmov 0.0   ;;  %vm78_vm0 = vcmask 130048   ;;  %s9141_s0 = inlined_call_operand.vmem [shape: f32[16,96], index: 0, kind: input, shape index: {}]   ;;  %s9142_s1 = inlined_call_operand.vmem [shape: f32[16,16], index: 1, kind: input, shape index: {}]   ;;  %s9143_s2 = inlined_call_operand.vmem [shape: f32[16,16], index: 2, kind: input, shape index: {}]   ;;  %s9144_s3 = inlined_call_operand.vmem [shape: f32[2,16], index: 3, kind: input, shape index: {}]   ;;  %s9145_s4 = inlined_call_operand.vmem [shape: f32[16,768], index: 4, kind: input, shape index: {}]   ;;  %s9146_s5 = inlined_call_operand.vmem [shape: f32[104,16], index: 5, kind: input, shape index: {}]   ;;  %s9147_s6 = inlined_call_operand.vmem [shape: f32[115,64], index: 6, kind: input, shape index: {}]   ;;  %s9148_s7 = inlined_call_operand.vmem [shape: f32[33,3], index: 7, kind: input, shape index: {}]   ;;  %s9149_s8 = inlined_call_operand.hbm [shape: f32[2,3], index: 8, kind: output, shape index: {}]  }
   0x1   :  { %v7974_v0 = vld [vmem:[%s9145_s4 + $0x38] sm:$0xff]  ;;  %v7979_v1 = vld [vmem:[%s9145_s4 + $0x30] sm:$0xff]  ;;  %v7984_v2 = vld [vmem:[%s9145_s4 + $0x8] sm:$0xff]  ;;  %149 = vmatprep.mubr.f32.mxu0 %v7919_v4  ;;  %226 = vmatprep.mubr.f32.mxu1 %v7919_v4 }
   0x2   :  { %113 = vmatprep.subr.mxu0 %v7974_v0  ;;  %v7990_v3 = vld [vmem:[%s9145_s4] sm:$0xff]  ;;  %v8002_v6 = vld [vmem:[%s9145_s4 + $0x58] sm:$0xff]  ;;  %v8009_v7 = vld [vmem:[%s9145_s4 + $0x50] sm:$0xff] }
   0x3   :  { %114 = vmatpush1.msra.mxu0 %v7979_v1  ;;  %v7997_v5 = vld [vmem:[%s9142_s1] sm:$0xff]  ;;  %v8014_v8 = vld [vmem:[%s9145_s4 + $0x48] sm:$0xff] }
   0x4   :  { %115 = vmatprep.subr.mxu0 %v7984_v2  ;;  %v8020_v9 = vld [vmem:[%s9145_s4 + $0x28] sm:$0xff]  ;;  %190 = vmatprep.subr.mxu1 %v8014_v8  ;;  %v8026_v10 = vld [vmem:[%s9145_s4 + $0x40] sm:$0xff] }
   0x5   :  { %116 = vmatpush1.msra.mxu0 %v7990_v3 }
   0x6   :  { %13 = vsyncpa [#allocation4], 0  ;;  %6693 = vmatmul.mubr.msk.f32.vlgmr.msra.gmra.mxu0 %vm78_vm0, %v7997_v5  ;;  %267 = vmatprep.subr.mxu0 %v8002_v6  ;;  %v8034_v11 = vld [vmem:[%s9145_s4 + $0x20] sm:$0xff]  ;;  %v8039_v12 = vld [vmem:[%s9145_s4 + $0x18] sm:$0xff]  ;;  %vm340_vm1 = vcmask 785408   ;;  %v62_v47 = vlaneseq  ;;  %vm7920_vm2 = vmmov 0  }
   0x7   :  { %268 = vmatpush1.msra.mxu0 %v8009_v7  ;;  %155 = vmatprep.mubr.f32.mxu0 %v7919_v4  ;;  %v8046_v13 = vld [vmem:[%s9142_s1 + $0x8] sm:$0xff]  ;;  %v8051_v14 = vld [vmem:[%s9145_s4 + $0x10] sm:$0xff]  ;;  %v8076_v15 = vld [vmem:[%s9141_s0] sm:$0xff]  ;;  %s7921_s23 = smov 96   ;;  %s7923_s27 = smov 32   ;;  %vm4955_vm4 = vcmask 123904  }
   0x8   :  { %269 = vmatprep.subr.mxu0 %v8020_v9  ;;  %191 = vmatpush1.msra.mxu1 %v8026_v10  ;;  %v8083_v16 = vld [vmem:[%s9146_s5 + $0x38] sm:$0xff]  ;;  %v8088_v17 = vld [vmem:[%s9146_s5 + $0x30] sm:$0xff]  ;;  %v8099_v30 = vld [vmem:[%s9141_s0 + $0x8] sm:$0xff]  ;;  %v8210_v48 = vshrl.u32 %v62_v47, 7  ;;  %s7924_s28 = smov 80   ;;  %s7925_s18 = smov [#allocation3]  }
   0x9   :  { %270 = vmatpush1.msra.mxu0 %v8034_v11  ;;  %192 = vmatprep.subr.mxu1 %v8039_v12  ;;  %v8108_v31 = vld [vmem:[%s9146_s5 + $0x8] sm:$0xff]  ;;  %v8115_v32 = vld [vmem:[%s9146_s5] sm:$0xff]  ;;  %v8128_v34 = vld [vmem:[%s9146_s5 + $0x58] sm:$0xff]  ;;  %s6685_s19 = sshll.u32 %s7925_s18, 4  ;;  %vm6677_vm5 = vcmask 17408   ;;  %s6686_s19 = int_to_ptr.vmem [resolvable:$true] %s6685_s19 }
   0xa   :  { %6694 = vmatmul.mubr.msk.f32.gmra.mxu0 %vm78_vm0, %v8046_v13  ;;  %193 = vmatpush1.msra.mxu1 %v8051_v14  ;;  %v8122_v33 = vld [vmem:[%s9146_s5 + $0x48] sm:$0xff]  ;;  %v8133_v35 = vld [vmem:[%s9146_s5 + $0x50] sm:$0xff]  ;;  %v8150_v37 = vld [vmem:[%s9143_s2] sm:$0xff]  ;;  %v64_v50 = vsub.s32 0, %v8210_v48  ;;  %v68_v62 = vsub.s32 1, %v8210_v48  ;;  %s7897_s20 = scalar_lea.vmem %s6686_s19, 32  ;;  %p7902_p1 = scmp.lt.s32.totalorder %s6686_s19, %s6686_s19 }
   0xb   :  { %303 = vmatprep.mubr.f32.mxu0 %v7919_v4  ;;  %6695 = vmatmul.mubr.msk.f32.vlgmr.msra.gmra.mxu1 %vm78_vm0, %v7997_v5  ;;  %v8155_v38 = vld [vmem:[%s9143_s2 + $0x8] sm:$0xff]  ;;  %v8163_v42 = vld [vmem:[%s9146_s5 + $0x40] sm:$0xff]  ;;  %v8172_v43 = vld [vmem:[%s9146_s5 + $0x18] sm:$0xff]  ;;  %p7898_p0 = scmp.ne.s32.totalorder %s6686_s19, %s7897_s20  ;;  %p7903_p2 = scmp.lt.s32.totalorder %s7897_s20, %s7897_s20 }
   0xc   :  { %232 = vmatprep.mubr.f32.mxu1 %v7919_v4  ;;  %7157 = vmatprep.subr.mxu0 %v8083_v16  ;;  %v8179_v44 = vld [vmem:[%s9146_s5 + $0x10] sm:$0xff]  ;;  %v8189_v45 = vld [vmem:[%s9146_s5 + $0x28] sm:$0xff]  ;;  %v8196_v46 = vld [vmem:[%s9146_s5 + $0x20] sm:$0xff] }
   0xd   :  { %v61_v51 = vld [vmem:[%s9146_s5 + $0x60] sm:$0xff]  ;;  %p7904_p3 = por %p7903_p2, %p7902_p1 }
   0xe   :  { %6697 = vmatmul.mubr.msk.f32.vlgmr.msra.gmra.mxu0 %vm78_vm0, %v7997_v5  ;;  %v8218_v53 = vrot.slane %v61_v51, %v64_v50 }
   0xf   :  { %309 = vmatprep.mubr.f32.mxu0 %v7919_v4  ;;  %6696 = vmatmul.mubr.msk.f32.gmra.mxu1 %vm78_vm0, %v8046_v13  ;;  %p7905_p4 = pnand %p7904_p3, %p7898_p0 }
  0x10   :  { %7154 = vmatprep.mubr.msk.f32.mxu1 %vm340_vm1, %v8076_v15  ;;  %7158 = vmatpush3.msra.mxu0 %v8083_v16 }
  0x11   :  { %7159 = vmatprep.subr.mxu0 %v8088_v17 }
  0x12   :  { %6698 = vmatmul.mubr.msk.f32.gmra.mxu0 %vm78_vm0, %v8046_v13 }
  0x13   :  { %7161 = vmatprep.mubr.msk.f32.mxu0 %vm78_vm0, %v7997_v5  ;;  %7160 = vmatpush3.msra.mxu0 %v8088_v17 }
  0x14   :  { %7164 = vmatprep.subr.mxu0 %v8108_v31 }
  0x16   :  { %7162 = vmatmul.mubr.msk.f32.vlgmr.msra.gmra.mxu0 %vm78_vm0, %v8046_v13 }
  0x17   :  { %7165 = vmatpush3.msra.mxu0 %v8108_v31 }
  0x18   :  { %7166 = vmatprep.subr.mxu0 %v8115_v32 }
  0x19   :  { %7167 = vmatpush3.msra.mxu0 %v8115_v32 }
  0x1a   :  { %7171 = vmatprep.subr.mxu0 %v8122_v33 }
  0xc6   :  { %v151_v18 = vpop.f32.mrf.mxu0 }
  0xc8   :  { %v153_v19 = vpop.f32.mrf.mxu0 }
  0xca   :  { %v157_v20 = vpop.f32.mrf.mxu0 }
  0xcb   :  { %v228_v24 = vpop.f32.mrf.mxu1 }
  0xcc   :  { %v159_v21 = vpop.f32.mrf.mxu0 }
  0xcd   :  { %v230_v27 = vpop.f32.mrf.mxu1 }
  0xce   :  { %v305_v22 = vpop.f32.mrf.mxu0 }
  0xcf   :  { %v234_v28 = vpop.f32.mrf.mxu1 }
  0xd0   :  { %v307_v23 = vpop.f32.mrf.mxu0 }
  0xd1   :  { %v236_v29 = vpop.f32.mrf.mxu1 }
  0xd2   :  { %v311_v25 = vpop.f32.mrf.mxu0 }
  0xd4   :  { %v313_v26 = vpop.f32.mrf.mxu0 }
  0xd5   :  { %7130 = vmatprep.subr.mxu1 %v313_v26 }
  0xd6   :  { %7131 = vmatpush3.msra.mxu1 %v313_v26  ;;  %v7163_v49 = vpop.f32.mrf.mxu0 }
  0xd7   :  { %7132 = vmatprep.subr.mxu1 %v307_v23 }
  0xd8   :  { %7133 = vmatpush3.msra.mxu1 %v307_v23  ;;  %v490_v52 = vpop.f32.mrf.mxu0 }
  0xd9   :  { %7134 = vmatprep.subr.mxu1 %v311_v25 }
  0xda   :  { %7135 = vmatpush3.msra.mxu1 %v311_v25 }
  0xdb   :  { %7136 = vmatprep.subr.mxu1 %v305_v22 }
  0xdc   :  { %7137 = vmatpush3.msra.mxu1 %v305_v22 }
  0xdd   :  { %7138 = vmatprep.subr.mxu1 %v236_v29 }
  0xde   :  { %7139 = vmatpush3.msra.mxu1 %v236_v29 }
  0xdf   :  { %7140 = vmatprep.subr.mxu1 %v230_v27 }
  0xe0   :  { %7141 = vmatpush3.msra.mxu1 %v230_v27 }
  0xe1   :  { %7142 = vmatprep.subr.mxu1 %v234_v28 }
  0xe2   :  { %7143 = vmatpush3.msra.mxu1 %v234_v28 }
  0xe3   :  { %7144 = vmatprep.subr.mxu1 %v228_v24 }
  0xe4   :  { %7145 = vmatpush3.msra.mxu1 %v228_v24 }
  0xe5   :  { %7146 = vmatprep.subr.mxu1 %v159_v21 }
  0xe6   :  { %7147 = vmatpush3.msra.mxu1 %v159_v21 }
  0xe7   :  { %7148 = vmatprep.subr.mxu1 %v153_v19 }
  0xe8   :  { %7149 = vmatpush3.msra.mxu1 %v153_v19 }
  0xe9   :  { %7150 = vmatprep.subr.mxu1 %v157_v20 }
  0xea   :  { %7151 = vmatpush3.msra.mxu1 %v157_v20  ;;  %v8225_v20 = vrot.slane %v61_v51, %v68_v62 }
  0xeb   :  { %7152 = vmatprep.subr.mxu1 %v151_v18 }
  0xec   :  { %7153 = vmatpush3.msra.mxu1 %v151_v18 }
  0xed   :  { %7155 = vmatmul.mubr.msk.f32.vlgmr.msra.gmra.mxu1 %vm340_vm1, %v8099_v30  ;;  %7185 = vmatprep.subr.mxu1 %v8128_v34 }
  0xee   :  { %7189 = vmatprep.mubr.msk.f32.mxu1 %vm78_vm0, %v7997_v5  ;;  %7186 = vmatpush3.msra.mxu1 %v8128_v34 }
  0xef   :  { %7187 = vmatprep.subr.mxu1 %v8133_v35 }
  0xf0   :  { %7188 = vmatpush3.msra.mxu1 %v8133_v35 }
  0xf1   :  { %7190 = vmatmul.mubr.msk.f32.vlgmr.msra.gmra.mxu1 %vm78_vm0, %v8046_v13  ;;  %956 = vmatprep.subr.mxu1 %v7974_v0 }
  0xf2   :  { %957 = vmatpush1.msra.mxu1 %v7979_v1  ;;  %992 = vmatprep.mubr.f32.mxu1 %v7919_v4 }
  0xf3   :  { %958 = vmatprep.subr.mxu1 %v7984_v2 }
  0xf4   :  { %959 = vmatpush1.msra.mxu1 %v7990_v3 }
  0xf5   :  { %1110 = vmatprep.subr.mxu1 %v8002_v6 }
 0x1ad   :  { %v7156_v36 = vpop.f32.mrf.mxu1 }
 0x1ae   :  { %v423_v41 = vadd.f32 %v7156_v36, %v8155_v38 }
 0x1af   :  { %v413_v39 = vpop.f32.mrf.mxu1 }
 0x1b0   :  { %v422_v40 = vadd.f32 %v413_v39, %v8150_v37 }
 0x1b2   :  { %7168 = vmatprep.mubr.msk.f32.mxu0 %vm78_vm0, %v422_v40 }
 0x1b3   :  { %7169 = vmatmul.mubr.msk.f32.vlgmr.msra.gmra.mxu0 %vm78_vm0, %v423_v41 }
 0x1b4   :  { %7172 = vmatpush3.msra.mxu0 %v8122_v33  ;;  %7175 = vmatprep.mubr.msk.f32.mxu0 %vm78_vm0, %v7997_v5 }
 0x1b5   :  { %7173 = vmatprep.subr.mxu0 %v8163_v42 }
 0x1b6   :  { %7174 = vmatpush3.msra.mxu0 %v8163_v42 }
 0x1b7   :  { %7176 = vmatmul.mubr.msk.f32.vlgmr.msra.gmra.mxu0 %vm78_vm0, %v8046_v13  ;;  %7178 = vmatprep.subr.mxu0 %v8172_v43 }
 0x1b8   :  { %7179 = vmatpush3.msra.mxu0 %v8172_v43  ;;  %7182 = vmatprep.mubr.msk.f32.mxu0 %vm78_vm0, %v422_v40 }
 0x1b9   :  { %7180 = vmatprep.subr.mxu0 %v8179_v44 }
 0x1ba   :  { %7181 = vmatpush3.msra.mxu0 %v8179_v44 }
 0x1bb   :  { %7183 = vmatmul.mubr.msk.f32.vlgmr.msra.gmra.mxu0 %vm78_vm0, %v423_v41  ;;  %7192 = vmatprep.subr.mxu0 %v8189_v45 }
 0x1bc   :  { %7193 = vmatpush3.msra.mxu0 %v8189_v45  ;;  %7196 = vmatprep.mubr.msk.f32.mxu0 %vm78_vm0, %v422_v40  ;;  %v76_v40 = vsub.s32 3, %v8210_v48 }
 0x1bd   :  { %7194 = vmatprep.subr.mxu0 %v8196_v46 }
 0x1be   :  { %7195 = vmatpush3.msra.mxu0 %v8196_v46  ;;  %v8231_v47 = vrot.slane %v61_v51, %v76_v40 }
 0x1bf   :  { %7197 = vmatmul.mubr.msk.f32.vlgmr.msra.gmra.mxu0 %vm78_vm0, %v423_v41  ;;  %1033 = vmatprep.subr.mxu0 %v8014_v8  ;;  %v72_v41 = vsub.s32 2, %v8210_v48 }
 0x1c0   :  { %1034 = vmatpush1.msra.mxu0 %v8026_v10  ;;  %1069 = vmatprep.mubr.f32.mxu0 %v7919_v4 }
 0x1c1   :  { %1035 = vmatprep.subr.mxu0 %v8039_v12 }
 0x1c2   :  { %1036 = vmatpush1.msra.mxu0 %v8051_v14 }
 0x273   :  { %v7170_v54 = vpop.f32.mrf.mxu0 }
 0x274   :  { %v577_v55 = vadd.f32 %v7170_v54, %v7163_v49  ;;  %v7191_v49 = vpop.f32.mrf.mxu1 }
 0x275   :  { %v571_v56 = vpop.f32.mrf.mxu0 }
 0x276   :  { %v581_v57 = vadd.f32 %v577_v55, %v8218_v53  ;;  %v572_v58 = vadd.f32 %v571_v56, %v490_v52  ;;  %v8235_v55 = vrot.slane %v61_v51, %v72_v41  ;;  %v830_v56 = vadd.f32 %v7191_v49, %v8231_v47 }
 0x277   :  { %v7177_v59 = vpop.f32.mrf.mxu0 }
 0x278   :  { %v6706_v60 = vmul.f32 -1.442695, %v581_v57  ;;  %v580_v61 = vadd.f32 %v572_v58, %v8218_v53  ;;  %v824_v58 = vpop.f32.mrf.mxu1 }
 0x279   :  { %v660_v63 = vpop.f32.mrf.mxu0 }
 0x27a   :  { %7685 = vpow2.f32 %v6706_v60  ;;  %v6705_v18 = vmul.f32 -1.442695, %v580_v61 }
 0x27b   :  { %v7184_v19 = vpop.f32.mrf.mxu0 }
 0x27c   :  { %7687 = vpow2.f32 %v6705_v18  ;;  %v741_v21 = vadd.f32 %v7184_v19, %v7177_v59 }
 0x27d   :  { %v735_v22 = vpop.f32.mrf.mxu0 }
 0x27e   :  { %v736_v23 = vadd.f32 %v735_v22, %v660_v63  ;;  %v745_v24 = vadd.f32 %v741_v21, %v8225_v20  ;;  %v825_v21 = vadd.f32 %v824_v58, %v8231_v47 }
 0x27f   :  { %v7198_v54 = vpop.f32.mrf.mxu0 }
 0x280   :  { %v744_v25 = vadd.f32 %v736_v23, %v8225_v20  ;;  %v6712_v27 = vmul.f32 -1.442695, %v745_v24  ;;  %v905_v18 = vadd.f32 %v7198_v54, %v8235_v55 }
 0x281   :  { %v899_v61 = vpop.f32.mrf.mxu0 }
 0x282   :  { %v6711_v26 = vmul.f32 -1.442695, %v744_v25  ;;  %v900_v23 = vadd.f32 %v899_v61, %v8235_v55 }
 0x284   :  { %7689 = vpow2.f32 %v6711_v26 }
 0x285   :  { %7691 = vpow2.f32 %v6712_v27 }
 0x287   :  { %v7686_v28 = vpop.eup %7685 }
 0x288   :  { %v589_v29 = vadd.f32 1.0, %v7686_v28 }
 0x289   :  { %v7688_v36 = vpop.eup %7687 }
 0x28a   :  { %7693 = vrcp.f32 %v589_v29  ;;  %v588_v39 = vadd.f32 1.0, %v7688_v36 }
 0x28c   :  { %7695 = vrcp.f32 %v588_v39 }
 0x291   :  { %v7690_v52 = vpop.eup %7689 }
 0x292   :  { %v7692_v57 = vpop.eup %7691  ;;  %v752_v59 = vadd.f32 1.0, %v7690_v52 }
 0x293   :  { %v753_v63 = vadd.f32 1.0, %v7692_v57 }
 0x294   :  { %7697 = vrcp.f32 %v752_v59 }
 0x295   :  { %7699 = vrcp.f32 %v753_v63 }
 0x297   :  { %v7694_v60 = vpop.eup %7693 }
 0x298   :  { %v909_v19 = vmul.f32 %v7694_v60, %v830_v56 }
 0x299   :  { %v7696_v22 = vpop.eup %7695 }
 0x29a   :  { %v911_v24 = vadd.f32 %v909_v19, %v905_v18  ;;  %v908_v51 = vmul.f32 %v7696_v22, %v825_v21 }
 0x29c   :  { %v910_v25 = vadd.f32 %v908_v51, %v900_v23  ;;  %7701 = vtanh.f32 %v911_v24 }
 0x29e   :  { %7703 = vtanh.f32 %v910_v25 }
 0x2a1   :  { %v7698_v26 = vpop.eup %7697 }
 0x2a2   :  { %v7700_v27 = vpop.eup %7699  ;;  %v914_v29 = vsub.f32 1.0, %v7698_v26  ;;  %v918_v39 = vmul.f32 %v7698_v26, %v7997_v5 }
 0x2a3   :  { %v915_v40 = vsub.f32 1.0, %v7700_v27  ;;  %v919_v56 = vmul.f32 %v7700_v27, %v8046_v13 }
 0x2a9   :  { %v7702_v28 = vpop.eup %7701 }
 0x2aa   :  { %v917_v52 = vmul.f32 %v7702_v28, %v915_v40 }
 0x2ab   :  { %v7704_v36 = vpop.eup %7703 }
 0x2ac   :  { %v916_v49 = vmul.f32 %v7704_v36, %v914_v29  ;;  %v8251_v57 = vadd.f32 %v919_v56, %v917_v52 }
 0x2ae   :  { %v8242_v54 = vadd.f32 %v918_v39, %v916_v49 }
 0x2b0   :  { %6717 = vmatmul.mubr.msk.f32.vlgmr.msra.gmra.mxu1 %vm78_vm0, %v8242_v54  ;;  %6719 = vmatmul.mubr.msk.f32.vlgmr.msra.gmra.mxu0 %vm78_vm0, %v8242_v54 }
 0x2b1   :  { %1111 = vmatpush1.msra.mxu1 %v8009_v7  ;;  %998 = vmatprep.mubr.f32.mxu1 %v7919_v4 }
 0x2b2   :  { %1075 = vmatprep.mubr.f32.mxu0 %v7919_v4  ;;  %1112 = vmatprep.subr.mxu1 %v8020_v9 }
 0x2b3   :  { %1113 = vmatpush1.msra.mxu1 %v8034_v11 }
 0x2b4   :  { %6718 = vmatmul.mubr.msk.f32.gmra.mxu1 %vm78_vm0, %v8251_v57  ;;  %6720 = vmatmul.mubr.msk.f32.gmra.mxu0 %vm78_vm0, %v8251_v57 }
 0x2b5   :  { %1146 = vmatprep.mubr.f32.mxu1 %v7919_v4  ;;  %7226 = vmatprep.subr.mxu1 %v8083_v16 }
 0x2b6   :  { %7223 = vmatprep.mubr.msk.f32.mxu0 %vm340_vm1, %v8076_v15 }
 0x2b8   :  { %6721 = vmatmul.mubr.msk.f32.vlgmr.msra.gmra.mxu1 %vm78_vm0, %v8242_v54 }
 0x2b9   :  { %1152 = vmatprep.mubr.f32.mxu1 %v7919_v4  ;;  %7227 = vmatpush3.msra.mxu1 %v8083_v16 }
 0x2ba   :  { %7228 = vmatprep.subr.mxu1 %v8088_v17 }
 0x2bb   :  { %7229 = vmatpush3.msra.mxu1 %v8088_v17 }
 0x2bc   :  { %6722 = vmatmul.mubr.msk.f32.gmra.mxu1 %vm78_vm0, %v8251_v57  ;;  %7233 = vmatprep.subr.mxu1 %v8108_v31 }
 0x2bd   :  { %7230 = vmatprep.mubr.msk.f32.mxu1 %vm78_vm0, %v8242_v54 }
 0x2c0   :  { %7231 = vmatmul.mubr.msk.f32.vlgmr.msra.gmra.mxu1 %vm78_vm0, %v8251_v57 }
 0x2c1   :  { %7234 = vmatpush3.msra.mxu1 %v8108_v31 }
 0x2c2   :  { %7235 = vmatprep.subr.mxu1 %v8115_v32 }
 0x2c3   :  { %7236 = vmatpush3.msra.mxu1 %v8115_v32 }
 0x2c4   :  { %7240 = vmatprep.subr.mxu1 %v8122_v33 }
 0x370   :  { %v994_v5 = vpop.f32.mrf.mxu1  ;;  %v1071_v61 = vpop.f32.mrf.mxu0 }
 0x372   :  { %v996_v13 = vpop.f32.mrf.mxu1  ;;  %v1073_v19 = vpop.f32.mrf.mxu0 }
 0x374   :  { %v1000_v58 = vpop.f32.mrf.mxu1  ;;  %v1077_v22 = vpop.f32.mrf.mxu0 }
 0x376   :  { %v1002_v59 = vpop.f32.mrf.mxu1  ;;  %v1079_v23 = vpop.f32.mrf.mxu0 }
 0x378   :  { %v1148_v60 = vpop.f32.mrf.mxu1 }
 0x37a   :  { %v1150_v63 = vpop.f32.mrf.mxu1 }
 0x37c   :  { %v1154_v18 = vpop.f32.mrf.mxu1 }
 0x37e   :  { %v1156_v21 = vpop.f32.mrf.mxu1 }
 0x37f   :  { %7199 = vmatprep.subr.mxu0 %v1156_v21 }
 0x380   :  { %7200 = vmatpush3.msra.mxu0 %v1156_v21  ;;  %v7232_v27 = vpop.f32.mrf.mxu1 }
 0x381   :  { %7201 = vmatprep.subr.mxu0 %v1150_v63 }
 0x382   :  { %7202 = vmatpush3.msra.mxu0 %v1150_v63  ;;  %v1326_v28 = vpop.f32.mrf.mxu1 }
 0x383   :  { %7203 = vmatprep.subr.mxu0 %v1154_v18 }
 0x384   :  { %7204 = vmatpush3.msra.mxu0 %v1154_v18 }
 0x385   :  { %7205 = vmatprep.subr.mxu0 %v1148_v60 }
 0x386   :  { %7206 = vmatpush3.msra.mxu0 %v1148_v60 }
 0x387   :  { %7207 = vmatprep.subr.mxu0 %v1079_v23 }
 0x388   :  { %7208 = vmatpush3.msra.mxu0 %v1079_v23 }
 0x389   :  { %7209 = vmatprep.subr.mxu0 %v1073_v19 }
 0x38a   :  { %7210 = vmatpush3.msra.mxu0 %v1073_v19 }
 0x38b   :  { %7211 = vmatprep.subr.mxu0 %v1077_v22 }
 0x38c   :  { %7212 = vmatpush3.msra.mxu0 %v1077_v22 }
 0x38d   :  { %7213 = vmatprep.subr.mxu0 %v1071_v61 }
 0x38e   :  { %7214 = vmatpush3.msra.mxu0 %v1071_v61 }
 0x38f   :  { %7215 = vmatprep.subr.mxu0 %v1002_v59 }
 0x390   :  { %7216 = vmatpush3.msra.mxu0 %v1002_v59 }
 0x391   :  { %7217 = vmatprep.subr.mxu0 %v996_v13 }
 0x392   :  { %7218 = vmatpush3.msra.mxu0 %v996_v13 }
 0x393   :  { %7219 = vmatprep.subr.mxu0 %v1000_v58 }
 0x394   :  { %7220 = vmatpush3.msra.mxu0 %v1000_v58 }
 0x395   :  { %7221 = vmatprep.subr.mxu0 %v994_v5 }
 0x396   :  { %7222 = vmatpush3.msra.mxu0 %v994_v5 }
 0x397   :  { %7224 = vmatmul.mubr.msk.f32.vlgmr.msra.gmra.mxu0 %vm340_vm1, %v8099_v30  ;;  %7254 = vmatprep.subr.mxu0 %v8128_v34 }
 0x398   :  { %7255 = vmatpush3.msra.mxu0 %v8128_v34  ;;  %7258 = vmatprep.mubr.msk.f32.mxu0 %vm78_vm0, %v8242_v54 }
 0x399   :  { %7256 = vmatprep.subr.mxu0 %v8133_v35 }
 0x39a   :  { %7257 = vmatpush3.msra.mxu0 %v8133_v35 }
 0x39b   :  { %7259 = vmatmul.mubr.msk.f32.vlgmr.msra.gmra.mxu0 %vm78_vm0, %v8251_v57  ;;  %1792 = vmatprep.subr.mxu0 %v7974_v0 }
 0x39c   :  { %1793 = vmatpush1.msra.mxu0 %v7979_v1  ;;  %1828 = vmatprep.mubr.f32.mxu0 %v7919_v4 }
 0x39d   :  { %1794 = vmatprep.subr.mxu0 %v7984_v2 }
 0x39e   :  { %1795 = vmatpush1.msra.mxu0 %v7990_v3 }
 0x39f   :  { %1946 = vmatprep.subr.mxu0 %v8002_v6 }
 0x457   :  { %v7225_v24 = vpop.f32.mrf.mxu0 }
 0x458   :  { %v1259_v26 = vadd.f32 %v7225_v24, %v8155_v38 }
 0x459   :  { %v1249_v51 = vpop.f32.mrf.mxu0 }
 0x45a   :  { %v1258_v25 = vadd.f32 %v1249_v51, %v8150_v37 }
 0x45c   :  { %7237 = vmatprep.mubr.msk.f32.mxu1 %vm78_vm0, %v1258_v25 }
 0x45d   :  { %7238 = vmatmul.mubr.msk.f32.vlgmr.msra.gmra.mxu1 %vm78_vm0, %v1259_v26 }
 0x45e   :  { %7241 = vmatpush3.msra.mxu1 %v8122_v33  ;;  %7244 = vmatprep.mubr.msk.f32.mxu1 %vm78_vm0, %v8242_v54 }
 0x45f   :  { %7242 = vmatprep.subr.mxu1 %v8163_v42 }
 0x460   :  { %7243 = vmatpush3.msra.mxu1 %v8163_v42 }
 0x461   :  { %7245 = vmatmul.mubr.msk.f32.vlgmr.msra.gmra.mxu1 %vm78_vm0, %v8251_v57  ;;  %7247 = vmatprep.subr.mxu1 %v8172_v43 }
 0x462   :  { %7248 = vmatpush3.msra.mxu1 %v8172_v43  ;;  %7251 = vmatprep.mubr.msk.f32.mxu1 %vm78_vm0, %v1258_v25 }
 0x463   :  { %7249 = vmatprep.subr.mxu1 %v8179_v44 }
 0x464   :  { %7250 = vmatpush3.msra.mxu1 %v8179_v44 }
 0x465   :  { %7252 = vmatmul.mubr.msk.f32.vlgmr.msra.gmra.mxu1 %vm78_vm0, %v1259_v26  ;;  %7261 = vmatprep.subr.mxu1 %v8189_v45 }
 0x466   :  { %7262 = vmatpush3.msra.mxu1 %v8189_v45  ;;  %7265 = vmatprep.mubr.msk.f32.mxu1 %vm78_vm0, %v1258_v25 }
 0x467   :  { %7263 = vmatprep.subr.mxu1 %v8196_v46 }
 0x468   :  { %7264 = vmatpush3.msra.mxu1 %v8196_v46 }
 0x469   :  { %7266 = vmatmul.mubr.msk.f32.vlgmr.msra.gmra.mxu1 %vm78_vm0, %v1259_v26  ;;  %1869 = vmatprep.subr.mxu1 %v8014_v8  ;;  %v7260_v26 = vpop.f32.mrf.mxu0 }
 0x46a   :  { %1870 = vmatpush1.msra.mxu1 %v8026_v10  ;;  %1905 = vmatprep.mubr.f32.mxu1 %v7919_v4 }
 0x46b   :  { %1871 = vmatprep.subr.mxu1 %v8039_v12 }
 0x46c   :  { %1872 = vmatpush1.msra.mxu1 %v8051_v14 }
 0x51d   :  { %v7239_v29 = vpop.f32.mrf.mxu1 }
 0x51e   :  { %v1413_v36 = vadd.f32 %v7239_v29, %v7232_v27 }
 0x51f   :  { %v1407_v39 = vpop.f32.mrf.mxu1 }
 0x520   :  { %v1417_v40 = vadd.f32 %v1413_v36, %v8218_v53  ;;  %v1408_v49 = vadd.f32 %v1407_v39, %v1326_v28  ;;  %v1660_v36 = vpop.f32.mrf.mxu0  ;;  %v1666_v39 = vadd.f32 %v7260_v26, %v8231_v47 }
 0x521   :  { %v7246_v52 = vpop.f32.mrf.mxu1 }
 0x522   :  { %v6730_v56 = vmul.f32 -1.442695, %v1417_v40  ;;  %v1416_v5 = vadd.f32 %v1408_v49, %v8218_v53 }
 0x523   :  { %v1496_v13 = vpop.f32.mrf.mxu1 }
 0x524   :  { %7705 = vpow2.f32 %v6730_v56  ;;  %v6729_v58 = vmul.f32 -1.442695, %v1416_v5  ;;  %v1661_v56 = vadd.f32 %v1660_v36, %v8231_v47 }
 0x525   :  { %v7253_v59 = vpop.f32.mrf.mxu1 }
 0x526   :  { %7707 = vpow2.f32 %v6729_v58  ;;  %v1577_v60 = vadd.f32 %v7253_v59, %v7246_v52 }
 0x527   :  { %v1571_v61 = vpop.f32.mrf.mxu1 }
 0x528   :  { %v1572_v63 = vadd.f32 %v1571_v61, %v1496_v13  ;;  %v1581_v18 = vadd.f32 %v1577_v60, %v8225_v20 }
 0x529   :  { %v7267_v28 = vpop.f32.mrf.mxu1 }
 0x52a   :  { %v1580_v19 = vadd.f32 %v1572_v63, %v8225_v20  ;;  %v6736_v22 = vmul.f32 -1.442695, %v1581_v18  ;;  %v1741_v13 = vadd.f32 %v7267_v28, %v8235_v55 }
 0x52b   :  { %v1735_v52 = vpop.f32.mrf.mxu1 }
 0x52c   :  { %v6735_v21 = vmul.f32 -1.442695, %v1580_v19  ;;  %v1736_v61 = vadd.f32 %v1735_v52, %v8235_v55 }
 0x52e   :  { %7709 = vpow2.f32 %v6735_v21 }
 0x52f   :  { %7711 = vpow2.f32 %v6736_v22 }
 0x531   :  { %v7706_v23 = vpop.eup %7705 }
 0x532   :  { %v1425_v24 = vadd.f32 1.0, %v7706_v23 }
 0x533   :  { %v7708_v51 = vpop.eup %7707 }
 0x534   :  { %7713 = vrcp.f32 %v1425_v24  ;;  %v1424_v25 = vadd.f32 1.0, %v7708_v51 }
 0x536   :  { %7715 = vrcp.f32 %v1424_v25 }
 0x53b   :  { %v7710_v27 = vpop.eup %7709 }
 0x53c   :  { %v7712_v29 = vpop.eup %7711  ;;  %v1588_v40 = vadd.f32 1.0, %v7710_v27 }
 0x53d   :  { %v1589_v5 = vadd.f32 1.0, %v7712_v29 }
 0x53e   :  { %7717 = vrcp.f32 %v1588_v40 }
 0x53f   :  { %7719 = vrcp.f32 %v1589_v5 }
 0x541   :  { %v7714_v49 = vpop.eup %7713 }
 0x542   :  { %v1745_v58 = vmul.f32 %v7714_v49, %v1666_v39 }
 0x543   :  { %v7716_v59 = vpop.eup %7715 }
 0x544   :  { %v1747_v60 = vadd.f32 %v1745_v58, %v1741_v13  ;;  %v1744_v63 = vmul.f32 %v7716_v59, %v1661_v56 }
 0x546   :  { %v1746_v18 = vadd.f32 %v1744_v63, %v1736_v61  ;;  %7721 = vtanh.f32 %v1747_v60 }
 0x548   :  { %7723 = vtanh.f32 %v1746_v18 }
 0x54b   :  { %v7718_v19 = vpop.eup %7717 }
 0x54c   :  { %v7720_v21 = vpop.eup %7719  ;;  %v1750_v23 = vsub.f32 1.0, %v7718_v19  ;;  %v1754_v26 = vmul.f32 %v7718_v19, %v8242_v54 }
 0x54d   :  { %v1751_v51 = vsub.f32 1.0, %v7720_v21  ;;  %v1755_v29 = vmul.f32 %v7720_v21, %v8251_v57 }
 0x553   :  { %v7722_v22 = vpop.eup %7721 }
 0x554   :  { %v1753_v27 = vmul.f32 %v7722_v22, %v1751_v51 }
 0x555   :  { %v7724_v24 = vpop.eup %7723 }
 0x556   :  { %v1752_v25 = vmul.f32 %v7724_v24, %v1750_v23  ;;  %v8343_v36 = vadd.f32 %v1755_v29, %v1753_v27 }
 0x558   :  { %v8334_v28 = vadd.f32 %v1754_v26, %v1752_v25 }
 0x55a   :  { %6741 = vmatmul.mubr.msk.f32.vlgmr.msra.gmra.mxu0 %vm78_vm0, %v8334_v28  ;;  %6743 = vmatmul.mubr.msk.f32.vlgmr.msra.gmra.mxu1 %vm78_vm0, %v8334_v28 }
 0x55b   :  { %1947 = vmatpush1.msra.mxu0 %v8009_v7  ;;  %1834 = vmatprep.mubr.f32.mxu0 %v7919_v4 }
 0x55c   :  { %1911 = vmatprep.mubr.f32.mxu1 %v7919_v4  ;;  %1948 = vmatprep.subr.mxu0 %v8020_v9 }
 0x55d   :  { %1949 = vmatpush1.msra.mxu0 %v8034_v11 }
 0x55e   :  { %6742 = vmatmul.mubr.msk.f32.gmra.mxu0 %vm78_vm0, %v8343_v36  ;;  %6744 = vmatmul.mubr.msk.f32.gmra.mxu1 %vm78_vm0, %v8343_v36 }
 0x55f   :  { %1982 = vmatprep.mubr.f32.mxu0 %v7919_v4  ;;  %7295 = vmatprep.subr.mxu0 %v8083_v16 }
 0x560   :  { %7292 = vmatprep.mubr.msk.f32.mxu1 %vm340_vm1, %v8076_v15 }
 0x562   :  { %6745 = vmatmul.mubr.msk.f32.vlgmr.msra.gmra.mxu0 %vm78_vm0, %v8334_v28 }
 0x563   :  { %1988 = vmatprep.mubr.f32.mxu0 %v7919_v4  ;;  %7296 = vmatpush3.msra.mxu0 %v8083_v16 }
 0x564   :  { %7297 = vmatprep.subr.mxu0 %v8088_v17 }
 0x565   :  { %7298 = vmatpush3.msra.mxu0 %v8088_v17 }
 0x566   :  { %6746 = vmatmul.mubr.msk.f32.gmra.mxu0 %vm78_vm0, %v8343_v36  ;;  %7302 = vmatprep.subr.mxu0 %v8108_v31 }
 0x567   :  { %7299 = vmatprep.mubr.msk.f32.mxu0 %vm78_vm0, %v8334_v28 }
 0x56a   :  { %7300 = vmatmul.mubr.msk.f32.vlgmr.msra.gmra.mxu0 %vm78_vm0, %v8343_v36 }
 0x56b   :  { %7303 = vmatpush3.msra.mxu0 %v8108_v31 }
 0x56c   :  { %7304 = vmatprep.subr.mxu0 %v8115_v32 }
 0x56d   :  { %7305 = vmatpush3.msra.mxu0 %v8115_v32 }
 0x56e   :  { %7309 = vmatprep.subr.mxu0 %v8122_v33 }
 0x61a   :  { %v1830_v7 = vpop.f32.mrf.mxu0  ;;  %v1907_v17 = vpop.f32.mrf.mxu1 }
 0x61c   :  { %v1832_v9 = vpop.f32.mrf.mxu0  ;;  %v1909_v39 = vpop.f32.mrf.mxu1 }
 0x61e   :  { %v1836_v11 = vpop.f32.mrf.mxu0  ;;  %v1913_v49 = vpop.f32.mrf.mxu1 }
 0x620   :  { %v1838_v15 = vpop.f32.mrf.mxu0  ;;  %v1915_v52 = vpop.f32.mrf.mxu1 }
 0x622   :  { %v1984_v16 = vpop.f32.mrf.mxu0 }
 0x624   :  { %v1986_v54 = vpop.f32.mrf.mxu0 }
 0x626   :  { %v1990_v57 = vpop.f32.mrf.mxu0 }
 0x628   :  { %v1992_v40 = vpop.f32.mrf.mxu0 }
 0x629   :  { %7268 = vmatprep.subr.mxu1 %v1992_v40 }
 0x62a   :  { %7269 = vmatpush3.msra.mxu1 %v1992_v40 }
 0x62b   :  { %7270 = vmatprep.subr.mxu1 %v1986_v54 }
 0x62c   :  { %7271 = vmatpush3.msra.mxu1 %v1986_v54 }
 0x62d   :  { %7272 = vmatprep.subr.mxu1 %v1990_v57 }
 0x62e   :  { %7273 = vmatpush3.msra.mxu1 %v1990_v57 }
 0x62f   :  { %7274 = vmatprep.subr.mxu1 %v1984_v16 }
 0x630   :  { %7275 = vmatpush3.msra.mxu1 %v1984_v16 }
 0x631   :  { %7276 = vmatprep.subr.mxu1 %v1915_v52 }
 0x632   :  { %7277 = vmatpush3.msra.mxu1 %v1915_v52 }
 0x633   :  { %7278 = vmatprep.subr.mxu1 %v1909_v39 }
 0x634   :  { %7279 = vmatpush3.msra.mxu1 %v1909_v39 }
 0x635   :  { %7280 = vmatprep.subr.mxu1 %v1913_v49 }
 0x636   :  { %7281 = vmatpush3.msra.mxu1 %v1913_v49 }
 0x637   :  { %7282 = vmatprep.subr.mxu1 %v1907_v17 }
 0x638   :  { %7283 = vmatpush3.msra.mxu1 %v1907_v17 }
 0x639   :  { %7284 = vmatprep.subr.mxu1 %v1838_v15 }
 0x63a   :  { %7285 = vmatpush3.msra.mxu1 %v1838_v15 }
 0x63b   :  { %7286 = vmatprep.subr.mxu1 %v1832_v9 }
 0x63c   :  { %7287 = vmatpush3.msra.mxu1 %v1832_v9 }
 0x63d   :  { %7288 = vmatprep.subr.mxu1 %v1836_v11 }
 0x63e   :  { %7289 = vmatpush3.msra.mxu1 %v1836_v11 }
 0x63f   :  { %7290 = vmatprep.subr.mxu1 %v1830_v7 }
 0x640   :  { %7291 = vmatpush3.msra.mxu1 %v1830_v7 }
 0x641   :  { %7293 = vmatmul.mubr.msk.f32.vlgmr.msra.gmra.mxu1 %vm340_vm1, %v8099_v30  ;;  %7323 = vmatprep.subr.mxu1 %v8128_v34 }
 0x642   :  { %7324 = vmatpush3.msra.mxu1 %v8128_v34  ;;  %7327 = vmatprep.mubr.msk.f32.mxu1 %vm78_vm0, %v8334_v28 }
 0x643   :  { %7325 = vmatprep.subr.mxu1 %v8133_v35 }
 0x644   :  { %7326 = vmatpush3.msra.mxu1 %v8133_v35 }
 0x645   :  { %7328 = vmatmul.mubr.msk.f32.vlgmr.msra.gmra.mxu1 %vm78_vm0, %v8343_v36  ;;  %2628 = vmatprep.subr.mxu1 %v7974_v0  ;;  %v7301_v0 = vpop.f32.mrf.mxu0 }
 0x646   :  { %2629 = vmatpush1.msra.mxu1 %v7979_v1  ;;  %2664 = vmatprep.mubr.f32.mxu1 %v7919_v4 }
 0x647   :  { %2630 = vmatprep.subr.mxu1 %v7984_v2  ;;  %v2162_v1 = vpop.f32.mrf.mxu0 }
 0x648   :  { %2631 = vmatpush1.msra.mxu1 %v7990_v3 }
 0x649   :  { %2782 = vmatprep.subr.mxu1 %v8002_v6 }
 0x701   :  { %v7294_v30 = vpop.f32.mrf.mxu1 }
 0x702   :  { %v2095_v35 = vadd.f32 %v7294_v30, %v8155_v38 }
 0x703   :  { %v2085_v34 = vpop.f32.mrf.mxu1 }
 0x704   :  { %v2094_v56 = vadd.f32 %v2085_v34, %v8150_v37 }
 0x705   :  { %v7329_v19 = vpop.f32.mrf.mxu1 }
 0x706   :  { %7306 = vmatprep.mubr.msk.f32.mxu0 %vm78_vm0, %v2094_v56  ;;  %v2502_v51 = vadd.f32 %v7329_v19, %v8231_v47  ;;  %v7882_v19 = vld [vmem:[%s9145_s4 + $0x58] sm:$0xff] }
 0x707   :  { %7307 = vmatmul.mubr.msk.f32.vlgmr.msra.gmra.mxu0 %vm78_vm0, %v2095_v35  ;;  %v2496_v24 = vpop.f32.mrf.mxu1 }
 0x708   :  { %7310 = vmatpush3.msra.mxu0 %v8122_v33  ;;  %7313 = vmatprep.mubr.msk.f32.mxu0 %vm78_vm0, %v8334_v28  ;;  %v2497_v29 = vadd.f32 %v2496_v24, %v8231_v47 }
 0x709   :  { %7311 = vmatprep.subr.mxu0 %v8163_v42 }
 0x70a   :  { %7312 = vmatpush3.msra.mxu0 %v8163_v42 }
 0x70b   :  { %7314 = vmatmul.mubr.msk.f32.vlgmr.msra.gmra.mxu0 %vm78_vm0, %v8343_v36  ;;  %7316 = vmatprep.subr.mxu0 %v8172_v43 }
 0x70c   :  { %7317 = vmatpush3.msra.mxu0 %v8172_v43  ;;  %7320 = vmatprep.mubr.msk.f32.mxu0 %vm78_vm0, %v2094_v56 }
 0x70d   :  { %7318 = vmatprep.subr.mxu0 %v8179_v44 }
 0x70e   :  { %7319 = vmatpush3.msra.mxu0 %v8179_v44 }
 0x70f   :  { %7321 = vmatmul.mubr.msk.f32.vlgmr.msra.gmra.mxu0 %vm78_vm0, %v2095_v35  ;;  %7330 = vmatprep.subr.mxu0 %v8189_v45 }
 0x710   :  { %7331 = vmatpush3.msra.mxu0 %v8189_v45  ;;  %7334 = vmatprep.mubr.msk.f32.mxu0 %vm78_vm0, %v2094_v56 }
 0x711   :  { %7332 = vmatprep.subr.mxu0 %v8196_v46 }
 0x712   :  { %7333 = vmatpush3.msra.mxu0 %v8196_v46 }
 0x713   :  { %7335 = vmatmul.mubr.msk.f32.vlgmr.msra.gmra.mxu0 %vm78_vm0, %v2095_v35  ;;  %2705 = vmatprep.subr.mxu0 %v8014_v8 }
 0x714   :  { %2706 = vmatpush1.msra.mxu0 %v8026_v10  ;;  %2741 = vmatprep.mubr.f32.mxu0 %v7919_v4 }
 0x715   :  { %2707 = vmatprep.subr.mxu0 %v8039_v12 }
 0x716   :  { %2708 = vmatpush1.msra.mxu0 %v8051_v14 }
 0x7c7   :  { %v7308_v2 = vpop.f32.mrf.mxu0 }
 0x7c8   :  { %v2249_v3 = vadd.f32 %v7308_v2, %v7301_v0 }
 0x7c9   :  { %v2243_v6 = vpop.f32.mrf.mxu0 }
 0x7ca   :  { %v2253_v37 = vadd.f32 %v2249_v3, %v8218_v53  ;;  %v2244_v38 = vadd.f32 %v2243_v6, %v2162_v1  ;;  %v8436_v3 = vld [vmem:[%s9145_s4 + $0x50] sm:$0xff]  ;;  %v8452_v6 = vld [vmem:[%s9145_s4 + $0x20] sm:$0xff] }
 0x7cb   :  { %v7315_v42 = vpop.f32.mrf.mxu0 }
 0x7cc   :  { %v6754_v43 = vmul.f32 -1.442695, %v2253_v37  ;;  %v2252_v8 = vadd.f32 %v2244_v38, %v8218_v53  ;;  %v8463_v37 = vld [vmem:[%s9146_s5 + $0x38] sm:$0xff]  ;;  %v8469_v38 = vld [vmem:[%s9141_s0] sm:$0xff] }
 0x7cd   :  { %v2332_v44 = vpop.f32.mrf.mxu0 }
 0x7ce   :  { %7725 = vpow2.f32 %v6754_v43  ;;  %v6753_v10 = vmul.f32 -1.442695, %v2252_v8 }
 0x7cf   :  { %v7322_v45 = vpop.f32.mrf.mxu0 }
 0x7d0   :  { %7727 = vpow2.f32 %v6753_v10  ;;  %v2413_v12 = vadd.f32 %v7322_v45, %v7315_v42  ;;  %v8480_v42 = vld [vmem:[%s9146_s5 + $0x30] sm:$0xff] }
 0x7d1   :  { %v2407_v46 = vpop.f32.mrf.mxu0 }
 0x7d2   :  { %v2408_v14 = vadd.f32 %v2407_v46, %v2332_v44  ;;  %v2417_v5 = vadd.f32 %v2413_v12, %v8225_v20 }
 0x7d3   :  { %v7336_v22 = vpop.f32.mrf.mxu0 }
 0x7d4   :  { %v2416_v13 = vadd.f32 %v2408_v14, %v8225_v20  ;;  %v6760_v59 = vmul.f32 -1.442695, %v2417_v5  ;;  %v2577_v9 = vadd.f32 %v7336_v22, %v8235_v55 }
 0x7d5   :  { %v2571_v27 = vpop.f32.mrf.mxu0 }
 0x7d6   :  { %v6759_v58 = vmul.f32 -1.442695, %v2416_v13  ;;  %v2572_v17 = vadd.f32 %v2571_v27, %v8235_v55  ;;  %v8561_v27 = vld [vmem:[%s9146_s5 + $0x40] sm:$0xff] }
 0x7d8   :  { %7729 = vpow2.f32 %v6759_v58  ;;  %v8505_v58 = vld [vmem:[%s9146_s5 + $0x58] sm:$0xff] }
 0x7d9   :  { %7731 = vpow2.f32 %v6760_v59  ;;  %v8514_v59 = vld [vmem:[%s9146_s5 + $0x50] sm:$0xff] }
 0x7db   :  { %v7726_v60 = vpop.eup %7725 }
 0x7dc   :  { %v2261_v61 = vadd.f32 1.0, %v7726_v60  ;;  %v7878_v60 = vld [vmem:[%s9145_s4 + $0x38] sm:$0xff] }
 0x7dd   :  { %v7728_v63 = vpop.eup %7727 }
 0x7de   :  { %7733 = vrcp.f32 %v2261_v61  ;;  %v2260_v18 = vadd.f32 1.0, %v7728_v63  ;;  %v7879_v61 = vld [vmem:[%s9145_s4 + $0x30] sm:$0xff]  ;;  %v7880_v63 = vld [vmem:[%s9145_s4 + $0x8] sm:$0xff] }
 0x7e0   :  { %7735 = vrcp.f32 %v2260_v18  ;;  %v7881_v18 = vld [vmem:[%s9145_s4] sm:$0xff] }
 0x7e5   :  { %v7730_v21 = vpop.eup %7729 }
 0x7e6   :  { %v7732_v23 = vpop.eup %7731  ;;  %v2424_v25 = vadd.f32 1.0, %v7730_v21 }
 0x7e7   :  { %v2425_v7 = vadd.f32 1.0, %v7732_v23  ;;  %v8539_v23 = vld [vmem:[%s9143_s2] sm:$0xff] }
 0x7e8   :  { %7737 = vrcp.f32 %v2424_v25 }
 0x7e9   :  { %7739 = vrcp.f32 %v2425_v7  ;;  %v8578_v7 = vld [vmem:[%s9146_s5 + $0x10] sm:$0xff] }
 0x7eb   :  { %v7734_v26 = vpop.eup %7733 }
 0x7ec   :  { %v2581_v11 = vmul.f32 %v7734_v26, %v2502_v51  ;;  %v8545_v51 = vld [vmem:[%s9143_s2 + $0x8] sm:$0xff] }
 0x7ed   :  { %v7736_v15 = vpop.eup %7735  ;;  %v8553_v26 = vld [vmem:[%s9146_s5 + $0x48] sm:$0xff] }
 0x7ee   :  { %v2583_v16 = vadd.f32 %v2581_v11, %v2577_v9  ;;  %v2580_v54 = vmul.f32 %v7736_v15, %v2497_v29  ;;  %v8570_v29 = vld [vmem:[%s9146_s5 + $0x18] sm:$0xff]  ;;  %v8586_v9 = vld [vmem:[%s9146_s5 + $0x28] sm:$0xff]  ;;  %v8594_v11 = vld [vmem:[%s9146_s5 + $0x20] sm:$0xff] }
 0x7ef   :  { %v7891_v15 = vld [vmem:[%s9145_s4 + $0x48] sm:$0xff] }
 0x7f0   :  { %v2582_v57 = vadd.f32 %v2580_v54, %v2572_v17  ;;  %7741 = vtanh.f32 %v2583_v16  ;;  %v7892_v16 = vld [vmem:[%s9145_s4 + $0x40] sm:$0xff]  ;;  %v7893_v17 = vld [vmem:[%s9145_s4 + $0x18] sm:$0xff]  ;;  %v7894_v54 = vld [vmem:[%s9145_s4 + $0x10] sm:$0xff] }
 0x7f2   :  { %7743 = vtanh.f32 %v2582_v57 }
 0x7f5   :  { %v7738_v39 = vpop.eup %7737 }
 0x7f6   :  { %v7740_v40 = vpop.eup %7739  ;;  %v2586_v52 = vsub.f32 1.0, %v7738_v39  ;;  %v2590_v35 = vmul.f32 %v7738_v39, %v8334_v28 }
 0x7f7   :  { %v2587_v34 = vsub.f32 1.0, %v7740_v40  ;;  %v2591_v2 = vmul.f32 %v7740_v40, %v8343_v36  ;;  %v8446_v36 = vld [vmem:[%s9145_s4 + $0x28] sm:$0xff]  ;;  %s7922_s4 = smov 16  }
 0x7fd   :  { %v7742_v49 = vpop.eup %7741 }
 0x7fe   :  { %v2589_v0 = vmul.f32 %v7742_v49, %v2587_v34 }
 0x7ff   :  { %v7744_v30 = vpop.eup %7743 }
 0x800   :  { %v2588_v56 = vmul.f32 %v7744_v30, %v2586_v52  ;;  %v8440_v28 = vadd.f32 %v2591_v2, %v2589_v0 }
 0x802   :  { %v8426_v1 = vadd.f32 %v2590_v35, %v2588_v56 }
 0x804   :  { %6765 = vmatmul.mubr.msk.f32.vlgmr.msra.gmra.mxu1 %vm78_vm0, %v8426_v1  ;;  %6767 = vmatmul.mubr.msk.f32.vlgmr.msra.gmra.mxu0 %vm78_vm0, %v8426_v1 }
 0x805   :  { %2783 = vmatpush1.msra.mxu1 %v8436_v3  ;;  %2670 = vmatprep.mubr.f32.mxu1 %v7919_v4 }
 0x806   :  { %2747 = vmatprep.mubr.f32.mxu0 %v7919_v4  ;;  %2784 = vmatprep.subr.mxu1 %v8446_v36 }
 0x807   :  { %2785 = vmatpush1.msra.mxu1 %v8452_v6 }
 0x808   :  { %6766 = vmatmul.mubr.msk.f32.gmra.mxu1 %vm78_vm0, %v8440_v28  ;;  %6768 = vmatmul.mubr.msk.f32.gmra.mxu0 %vm78_vm0, %v8440_v28 }
 0x809   :  { %2818 = vmatprep.mubr.f32.mxu1 %v7919_v4  ;;  %7364 = vmatprep.subr.mxu1 %v8463_v37 }
 0x80a   :  { %7361 = vmatprep.mubr.msk.f32.mxu0 %vm340_vm1, %v8469_v38 }
 0x80c   :  { %6769 = vmatmul.mubr.msk.f32.vlgmr.msra.gmra.mxu1 %vm78_vm0, %v8426_v1 }
 0x80d   :  { %2824 = vmatprep.mubr.f32.mxu1 %v7919_v4  ;;  %7365 = vmatpush3.msra.mxu1 %v8463_v37 }
 0x80e   :  { %7366 = vmatprep.subr.mxu1 %v8480_v42 }
 0x80f   :  { %7367 = vmatpush3.msra.mxu1 %v8480_v42 }
 0x810   :  { %6770 = vmatmul.mubr.msk.f32.gmra.mxu1 %vm78_vm0, %v8440_v28  ;;  %7371 = vmatprep.subr.mxu1 %v8108_v31 }
 0x811   :  { %7368 = vmatprep.mubr.msk.f32.mxu1 %vm78_vm0, %v8426_v1 }
 0x814   :  { %7369 = vmatmul.mubr.msk.f32.vlgmr.msra.gmra.mxu1 %vm78_vm0, %v8440_v28 }
 0x815   :  { %7372 = vmatpush3.msra.mxu1 %v8108_v31 }
 0x816   :  { %7373 = vmatprep.subr.mxu1 %v8115_v32 }
 0x817   :  { %7374 = vmatpush3.msra.mxu1 %v8115_v32 }
 0x818   :  { %7378 = vmatprep.subr.mxu1 %v8122_v33  ;;  %v8498_v33 = vld [vmem:[%s9141_s0 + $0x8] sm:$0xff] }
 0x8c4   :  { %v2666_v43 = vpop.f32.mrf.mxu1  ;;  %v2743_v12 = vpop.f32.mrf.mxu0 }
 0x8c6   :  { %v2668_v8 = vpop.f32.mrf.mxu1  ;;  %v2745_v5 = vpop.f32.mrf.mxu0 }
 0x8c8   :  { %v2672_v44 = vpop.f32.mrf.mxu1  ;;  %v2749_v31 = vpop.f32.mrf.mxu0 }
 0x8ca   :  { %v2674_v10 = vpop.f32.mrf.mxu1  ;;  %v2751_v32 = vpop.f32.mrf.mxu0 }
 0x8cc   :  { %v2820_v45 = vpop.f32.mrf.mxu1 }
 0x8ce   :  { %v2822_v46 = vpop.f32.mrf.mxu1 }
 0x8d0   :  { %v2826_v14 = vpop.f32.mrf.mxu1 }
 0x8d2   :  { %v2828_v13 = vpop.f32.mrf.mxu1 }
 0x8d3   :  { %7337 = vmatprep.subr.mxu0 %v2828_v13 }
 0x8d4   :  { %7338 = vmatpush3.msra.mxu0 %v2828_v13  ;;  %v7370_v57 = vpop.f32.mrf.mxu1 }
 0x8d5   :  { %7339 = vmatprep.subr.mxu0 %v2822_v46 }
 0x8d6   :  { %7340 = vmatpush3.msra.mxu0 %v2822_v46  ;;  %v2998_v39 = vpop.f32.mrf.mxu1 }
 0x8d7   :  { %7341 = vmatprep.subr.mxu0 %v2826_v14 }
 0x8d8   :  { %7342 = vmatpush3.msra.mxu0 %v2826_v14 }
 0x8d9   :  { %7343 = vmatprep.subr.mxu0 %v2820_v45 }
 0x8da   :  { %7344 = vmatpush3.msra.mxu0 %v2820_v45 }
 0x8db   :  { %7345 = vmatprep.subr.mxu0 %v2751_v32 }
 0x8dc   :  { %7346 = vmatpush3.msra.mxu0 %v2751_v32 }
 0x8dd   :  { %7347 = vmatprep.subr.mxu0 %v2745_v5 }
 0x8de   :  { %7348 = vmatpush3.msra.mxu0 %v2745_v5 }
 0x8df   :  { %7349 = vmatprep.subr.mxu0 %v2749_v31 }
 0x8e0   :  { %7350 = vmatpush3.msra.mxu0 %v2749_v31 }
 0x8e1   :  { %7351 = vmatprep.subr.mxu0 %v2743_v12 }
 0x8e2   :  { %7352 = vmatpush3.msra.mxu0 %v2743_v12 }
 0x8e3   :  { %7353 = vmatprep.subr.mxu0 %v2674_v10 }
 0x8e4   :  { %7354 = vmatpush3.msra.mxu0 %v2674_v10 }
 0x8e5   :  { %7355 = vmatprep.subr.mxu0 %v2668_v8 }
 0x8e6   :  { %7356 = vmatpush3.msra.mxu0 %v2668_v8 }
 0x8e7   :  { %7357 = vmatprep.subr.mxu0 %v2672_v44 }
 0x8e8   :  { %7358 = vmatpush3.msra.mxu0 %v2672_v44 }
 0x8e9   :  { %7359 = vmatprep.subr.mxu0 %v2666_v43 }
 0x8ea   :  { %7360 = vmatpush3.msra.mxu0 %v2666_v43 }
 0x8eb   :  { %7362 = vmatmul.mubr.msk.f32.vlgmr.msra.gmra.mxu0 %vm340_vm1, %v8498_v33  ;;  %7392 = vmatprep.subr.mxu0 %v8505_v58 }
 0x8ec   :  { %7393 = vmatpush3.msra.mxu0 %v8505_v58  ;;  %7396 = vmatprep.mubr.msk.f32.mxu0 %vm78_vm0, %v8426_v1 }
 0x8ed   :  { %7394 = vmatprep.subr.mxu0 %v8514_v59 }
 0x8ee   :  { %7395 = vmatpush3.msra.mxu0 %v8514_v59 }
 0x8ef   :  { %7397 = vmatmul.mubr.msk.f32.vlgmr.msra.gmra.mxu0 %vm78_vm0, %v8440_v28  ;;  %3464 = vmatprep.subr.mxu0 %v7878_v60 }
 0x8f0   :  { %3465 = vmatpush1.msra.mxu0 %v7879_v61  ;;  %3500 = vmatprep.mubr.f32.mxu0 %v7919_v4 }
 0x8f1   :  { %3466 = vmatprep.subr.mxu0 %v7880_v63 }
 0x8f2   :  { %3467 = vmatpush1.msra.mxu0 %v7881_v18 }
 0x8f3   :  { %3618 = vmatprep.subr.mxu0 %v7882_v19 }
 0x9ab   :  { %v7363_v21 = vpop.f32.mrf.mxu0 }
 0x9ac   :  { %v2931_v25 = vadd.f32 %v8545_v51, %v7363_v21 }
 0x9ad   :  { %v2921_v22 = vpop.f32.mrf.mxu0 }
 0x9ae   :  { %v2930_v24 = vadd.f32 %v8539_v23, %v2921_v22 }
 0x9af   :  { %v7398_v61 = vpop.f32.mrf.mxu0 }
 0x9b0   :  { %7375 = vmatprep.mubr.msk.f32.mxu1 %vm78_vm0, %v2930_v24  ;;  %v3338_v22 = vadd.f32 %v7398_v61, %v8231_v47  ;;  %v8702_v61 = vld [vmem:[%s9147_s6 + $0x20] sm:$0xff] }
 0x9b1   :  { %7376 = vmatmul.mubr.msk.f32.vlgmr.msra.gmra.mxu1 %vm78_vm0, %v2931_v25  ;;  %v3332_v21 = vpop.f32.mrf.mxu0 }
 0x9b2   :  { %7379 = vmatpush3.msra.mxu1 %v8553_v26  ;;  %7382 = vmatprep.mubr.msk.f32.mxu1 %vm78_vm0, %v8426_v1 }
 0x9b3   :  { %7380 = vmatprep.subr.mxu1 %v8561_v27 }
 0x9b4   :  { %7381 = vmatpush3.msra.mxu1 %v8561_v27 }
 0x9b5   :  { %7383 = vmatmul.mubr.msk.f32.vlgmr.msra.gmra.mxu1 %vm78_vm0, %v8440_v28  ;;  %7385 = vmatprep.subr.mxu1 %v8570_v29 }
 0x9b6   :  { %7386 = vmatpush3.msra.mxu1 %v8570_v29  ;;  %7389 = vmatprep.mubr.msk.f32.mxu1 %vm78_vm0, %v2930_v24 }
 0x9b7   :  { %7387 = vmatprep.subr.mxu1 %v8578_v7 }
 0x9b8   :  { %7388 = vmatpush3.msra.mxu1 %v8578_v7 }
 0x9b9   :  { %7390 = vmatmul.mubr.msk.f32.vlgmr.msra.gmra.mxu1 %vm78_vm0, %v2931_v25  ;;  %7399 = vmatprep.subr.mxu1 %v8586_v9 }
 0x9ba   :  { %7400 = vmatpush3.msra.mxu1 %v8586_v9  ;;  %7403 = vmatprep.mubr.msk.f32.mxu1 %vm78_vm0, %v2930_v24 }
 0x9bb   :  { %7401 = vmatprep.subr.mxu1 %v8594_v11 }
 0x9bc   :  { %7402 = vmatpush3.msra.mxu1 %v8594_v11 }
 0x9bd   :  { %7404 = vmatmul.mubr.msk.f32.vlgmr.msra.gmra.mxu1 %vm78_vm0, %v2931_v25  ;;  %3541 = vmatprep.subr.mxu1 %v7891_v15 }
 0x9be   :  { %3542 = vmatpush1.msra.mxu1 %v7892_v16  ;;  %3577 = vmatprep.mubr.f32.mxu1 %v7919_v4  ;;  %v3333_v16 = vadd.f32 %v3332_v21, %v8231_v47 }
 0x9bf   :  { %3543 = vmatprep.subr.mxu1 %v7893_v17 }
 0x9c0   :  { %3544 = vmatpush1.msra.mxu1 %v7894_v54 }
 0xa71   :  { %v7377_v40 = vpop.f32.mrf.mxu1 }
 0xa72   :  { %v3085_v49 = vadd.f32 %v7377_v40, %v7370_v57 }
 0xa73   :  { %v3079_v52 = vpop.f32.mrf.mxu1 }
 0xa74   :  { %v3089_v30 = vadd.f32 %v3085_v49, %v8218_v53  ;;  %v3080_v34 = vadd.f32 %v3079_v52, %v2998_v39 }
 0xa75   :  { %v7384_v56 = vpop.f32.mrf.mxu1 }
 0xa76   :  { %v6778_v35 = vmul.f32 -1.442695, %v3089_v30  ;;  %v3088_v0 = vadd.f32 %v3080_v34, %v8218_v53 }
 0xa77   :  { %v3168_v2 = vpop.f32.mrf.mxu1 }
 0xa78   :  { %7745 = vpow2.f32 %v6778_v35  ;;  %v6777_v43 = vmul.f32 -1.442695, %v3088_v0 }
 0xa79   :  { %v7391_v8 = vpop.f32.mrf.mxu1 }
 0xa7a   :  { %7747 = vpow2.f32 %v6777_v43  ;;  %v3249_v44 = vadd.f32 %v7391_v8, %v7384_v56 }
 0xa7b   :  { %v3243_v10 = vpop.f32.mrf.mxu1 }
 0xa7c   :  { %v3244_v45 = vadd.f32 %v3243_v10, %v3168_v2  ;;  %v3253_v12 = vadd.f32 %v3249_v44, %v8225_v20 }
 0xa7d   :  { %v7405_v18 = vpop.f32.mrf.mxu1 }
 0xa7e   :  { %v3252_v46 = vadd.f32 %v3244_v45, %v8225_v20  ;;  %v6784_v5 = vmul.f32 -1.442695, %v3253_v12  ;;  %v3413_v54 = vadd.f32 %v7405_v18, %v8235_v55 }
 0xa7f   :  { %v3407_v15 = vpop.f32.mrf.mxu1 }
 0xa80   :  { %v6783_v14 = vmul.f32 -1.442695, %v3252_v46  ;;  %v3408_v49 = vadd.f32 %v3407_v15, %v8235_v55  ;;  %v8783_v15 = vld [vmem:[%s9147_s6 + $0x60] sm:$0xff] }
 0xa82   :  { %7749 = vpow2.f32 %v6783_v14 }
 0xa83   :  { %7751 = vpow2.f32 %v6784_v5 }
 0xa85   :  { %v7746_v13 = vpop.eup %7745 }
 0xa86   :  { %v3097_v31 = vadd.f32 1.0, %v7746_v13 }
 0xa87   :  { %v7748_v32 = vpop.eup %7747 }
 0xa88   :  { %7753 = vrcp.f32 %v3097_v31  ;;  %v3096_v60 = vadd.f32 1.0, %v7748_v32 }
 0xa8a   :  { %7755 = vrcp.f32 %v3096_v60 }
 0xa8f   :  { %v7750_v63 = vpop.eup %7749 }
 0xa90   :  { %v7752_v19 = vpop.eup %7751  ;;  %v3260_v24 = vadd.f32 1.0, %v7750_v63 }
 0xa91   :  { %v3261_v17 = vadd.f32 1.0, %v7752_v19 }
 0xa92   :  { %7757 = vrcp.f32 %v3260_v24  ;;  %v8766_v24 = vld [vmem:[%s9147_s6 + $0x40] sm:$0xff] }
 0xa93   :  { %7759 = vrcp.f32 %v3261_v17 }
 0xa95   :  { %v7754_v25 = vpop.eup %7753 }
 0xa96   :  { %v3417_v57 = vmul.f32 %v7754_v25, %v3338_v22  ;;  %v8759_v22 = vld [vmem:[%s9147_s6 + $0x48] sm:$0xff] }
 0xa97   :  { %v7756_v39 = vpop.eup %7755  ;;  %v8774_v25 = vld [vmem:[%s9147_s6 + $0x68] sm:$0xff] }
 0xa98   :  { %v3419_v40 = vadd.f32 %v3417_v57, %v3413_v54  ;;  %v3416_v52 = vmul.f32 %v7756_v39, %v3333_v16 }
 0xa9a   :  { %v3418_v30 = vadd.f32 %v3416_v52, %v3408_v49  ;;  %7761 = vtanh.f32 %v3419_v40 }
 0xa9c   :  { %7763 = vtanh.f32 %v3418_v30 }
 0xa9f   :  { %v7758_v34 = vpop.eup %7757 }
 0xaa0   :  { %v7760_v56 = vpop.eup %7759  ;;  %v3422_v0 = vsub.f32 1.0, %v7758_v34  ;;  %v3426_v44 = vmul.f32 %v7758_v34, %v8426_v1  ;;  %v7895_v1 = vld [vmem:[%s9146_s5 + $0x8] sm:$0xff] }
 0xaa1   :  { %v3423_v43 = vsub.f32 1.0, %v7760_v56  ;;  %v3427_v12 = vmul.f32 %v7760_v56, %v8440_v28 }
 0xaa7   :  { %v7762_v35 = vpop.eup %7761 }
 0xaa8   :  { %v3425_v10 = vmul.f32 %v7762_v35, %v3423_v43 }
 0xaa9   :  { %v7764_v2 = vpop.eup %7763 }
 0xaaa   :  { %v3424_v8 = vmul.f32 %v7764_v2, %v3422_v0  ;;  %v8630_v46 = vadd.f32 %v3427_v12, %v3425_v10 }
 0xaac   :  { %v8621_v45 = vadd.f32 %v3426_v44, %v3424_v8 }
 0xaae   :  { %6789 = vmatmul.mubr.msk.f32.vlgmr.msra.gmra.mxu0 %vm78_vm0, %v8621_v45  ;;  %6791 = vmatmul.mubr.msk.f32.vlgmr.msra.gmra.mxu1 %vm78_vm0, %v8621_v45 }
 0xaaf   :  { %3619 = vmatpush1.msra.mxu0 %v8436_v3  ;;  %3506 = vmatprep.mubr.f32.mxu0 %v7919_v4  ;;  %v7896_v3 = vld [vmem:[%s9146_s5] sm:$0xff] }
 0xab0   :  { %3583 = vmatprep.mubr.f32.mxu1 %v7919_v4  ;;  %3620 = vmatprep.subr.mxu0 %v8446_v36 }
 0xab1   :  { %3621 = vmatpush1.msra.mxu0 %v8452_v6 }
 0xab2   :  { %6790 = vmatmul.mubr.msk.f32.gmra.mxu0 %vm78_vm0, %v8630_v46  ;;  %6792 = vmatmul.mubr.msk.f32.gmra.mxu1 %vm78_vm0, %v8630_v46 }
 0xab3   :  { %3654 = vmatprep.mubr.f32.mxu0 %v7919_v4  ;;  %7433 = vmatprep.subr.mxu0 %v8463_v37 }
 0xab4   :  { %7430 = vmatprep.mubr.msk.f32.mxu1 %vm340_vm1, %v8469_v38 }
 0xab6   :  { %6793 = vmatmul.mubr.msk.f32.vlgmr.msra.gmra.mxu0 %vm78_vm0, %v8621_v45 }
 0xab7   :  { %3660 = vmatprep.mubr.f32.mxu0 %v7919_v4  ;;  %7434 = vmatpush3.msra.mxu0 %v8463_v37 }
 0xab8   :  { %7435 = vmatprep.subr.mxu0 %v8480_v42 }
 0xab9   :  { %7436 = vmatpush3.msra.mxu0 %v8480_v42 }
 0xaba   :  { %6794 = vmatmul.mubr.msk.f32.gmra.mxu0 %vm78_vm0, %v8630_v46  ;;  %7440 = vmatprep.subr.mxu0 %v7895_v1 }
 0xabb   :  { %7437 = vmatprep.mubr.msk.f32.mxu0 %vm78_vm0, %v8621_v45 }
 0xabe   :  { %7438 = vmatmul.mubr.msk.f32.vlgmr.msra.gmra.mxu0 %vm78_vm0, %v8630_v46 }
 0xabf   :  { %7441 = vmatpush3.msra.mxu0 %v7895_v1 }
 0xac0   :  { %7442 = vmatprep.subr.mxu0 %v7896_v3 }
 0xac1   :  { %7443 = vmatpush3.msra.mxu0 %v7896_v3 }
 0xac2   :  { %7447 = vmatprep.subr.mxu0 %v8553_v26 }
 0xb6e   :  { %v3502_v28 = vpop.f32.mrf.mxu0  ;;  %v3579_v42 = vpop.f32.mrf.mxu1 }
 0xb70   :  { %v3504_v36 = vpop.f32.mrf.mxu0  ;;  %v3581_v13 = vpop.f32.mrf.mxu1 }
 0xb72   :  { %v3508_v6 = vpop.f32.mrf.mxu0  ;;  %v3585_v32 = vpop.f32.mrf.mxu1 }
 0xb74   :  { %v3510_v37 = vpop.f32.mrf.mxu0  ;;  %v3587_v60 = vpop.f32.mrf.mxu1 }
 0xb76   :  { %v3656_v38 = vpop.f32.mrf.mxu0 }
 0xb78   :  { %v3658_v14 = vpop.f32.mrf.mxu0 }
 0xb7a   :  { %v3662_v5 = vpop.f32.mrf.mxu0 }
 0xb7c   :  { %v3664_v31 = vpop.f32.mrf.mxu0 }
 0xb7d   :  { %7406 = vmatprep.subr.mxu1 %v3664_v31 }
 0xb7e   :  { %7407 = vmatpush3.msra.mxu1 %v3664_v31  ;;  %v7439_v16 = vpop.f32.mrf.mxu0 }
 0xb7f   :  { %7408 = vmatprep.subr.mxu1 %v3658_v14 }
 0xb80   :  { %7409 = vmatpush3.msra.mxu1 %v3658_v14  ;;  %v3834_v17 = vpop.f32.mrf.mxu0 }
 0xb81   :  { %7410 = vmatprep.subr.mxu1 %v3662_v5 }
 0xb82   :  { %7411 = vmatpush3.msra.mxu1 %v3662_v5 }
 0xb83   :  { %7412 = vmatprep.subr.mxu1 %v3656_v38 }
 0xb84   :  { %7413 = vmatpush3.msra.mxu1 %v3656_v38 }
 0xb85   :  { %7414 = vmatprep.subr.mxu1 %v3587_v60 }
 0xb86   :  { %7415 = vmatpush3.msra.mxu1 %v3587_v60 }
 0xb87   :  { %7416 = vmatprep.subr.mxu1 %v3581_v13 }
 0xb88   :  { %7417 = vmatpush3.msra.mxu1 %v3581_v13 }
 0xb89   :  { %7418 = vmatprep.subr.mxu1 %v3585_v32 }
 0xb8a   :  { %7419 = vmatpush3.msra.mxu1 %v3585_v32 }
 0xb8b   :  { %7420 = vmatprep.subr.mxu1 %v3579_v42 }
 0xb8c   :  { %7421 = vmatpush3.msra.mxu1 %v3579_v42 }
 0xb8d   :  { %7422 = vmatprep.subr.mxu1 %v3510_v37 }
 0xb8e   :  { %7423 = vmatpush3.msra.mxu1 %v3510_v37 }
 0xb8f   :  { %7424 = vmatprep.subr.mxu1 %v3504_v36 }
 0xb90   :  { %7425 = vmatpush3.msra.mxu1 %v3504_v36 }
 0xb91   :  { %7426 = vmatprep.subr.mxu1 %v3508_v6 }
 0xb92   :  { %7427 = vmatpush3.msra.mxu1 %v3508_v6 }
 0xb93   :  { %7428 = vmatprep.subr.mxu1 %v3502_v28 }
 0xb94   :  { %7429 = vmatpush3.msra.mxu1 %v3502_v28  ;;  %v8797_v28 = vld [vmem:[%s9147_s6 + $0x70] sm:$0x7] }
 0xb95   :  { %7431 = vmatmul.mubr.msk.f32.vlgmr.msra.gmra.mxu1 %vm340_vm1, %v8498_v33  ;;  %7461 = vmatprep.subr.mxu1 %v8505_v58  ;;  %v8676_v33 = vld [vmem:[%s9147_s6 + $0x18] sm:$0xff]  ;;  %v8802_v37 = vrot.slane %v8797_v28, %v64_v50 }
 0xb96   :  { %7462 = vmatpush3.msra.mxu1 %v8505_v58  ;;  %7465 = vmatprep.mubr.msk.f32.mxu1 %vm78_vm0, %v8621_v45  ;;  %v8683_v58 = vld [vmem:[%s9147_s6 + $0x10] sm:$0xff] }
 0xb97   :  { %7463 = vmatprep.subr.mxu1 %v8514_v59 }
 0xb98   :  { %7464 = vmatpush3.msra.mxu1 %v8514_v59  ;;  %v8693_v59 = vld [vmem:[%s9147_s6 + $0x28] sm:$0xff] }
 0xb99   :  { %7466 = vmatmul.mubr.msk.f32.vlgmr.msra.gmra.mxu1 %vm78_vm0, %v8630_v46  ;;  %7475 = vmatprep.subr.mxu1 %v7919_v4 }
 0xb9a   :  { %7476 = vmatpush3.msra.mxu1 %v8676_v33  ;;  %7479 = vmatprep.mubr.msk.f32.mxu1 %vm7920_vm2, %v7919_v4 }
 0xb9b   :  { %7477 = vmatprep.subr.mxu1 %v7919_v4 }
 0xb9c   :  { %7478 = vmatpush3.msra.mxu1 %v8683_v58 }
 0xb9d   :  { %7480 = vmatmul.mubr.f32.vlgmr.msra.gmra.mxu1 %v7919_v4  ;;  %7489 = vmatprep.subr.mxu1 %v7919_v4 }
 0xb9e   :  { %7490 = vmatpush3.msra.mxu1 %v8693_v59  ;;  %7493 = vmatprep.mubr.msk.f32.mxu1 %vm7920_vm2, %v7919_v4 }
 0xb9f   :  { %7491 = vmatprep.subr.mxu1 %v7919_v4 }
 0xba0   :  { %7492 = vmatpush3.msra.mxu1 %v8702_v61 }
 0xba1   :  { %7494 = vmatmul.mubr.f32.vlgmr.msra.gmra.mxu1 %v7919_v4  ;;  %7503 = vmatprep.subr.mxu1 %v7919_v4 }
 0xba2   :  { %7507 = vmatprep.mubr.msk.f32.mxu1 %vm7920_vm2, %v7919_v4 }
 0xc55   :  { %v7432_v63 = vpop.f32.mrf.mxu1 }
 0xc56   :  { %v3767_v21 = vadd.f32 %v8545_v51, %v7432_v63  ;;  %v8741_v51 = vld [vmem:[%s9147_s6] sm:$0xff] }
 0xc57   :  { %v3757_v18 = vpop.f32.mrf.mxu1 }
 0xc58   :  { %v3766_v19 = vadd.f32 %v8539_v23, %v3757_v18  ;;  %v8733_v23 = vld [vmem:[%s9147_s6 + $0x8] sm:$0xff] }
 0xc5a   :  { %7444 = vmatprep.mubr.msk.f32.mxu0 %vm78_vm0, %v3766_v19 }
 0xc5b   :  { %7445 = vmatmul.mubr.msk.f32.vlgmr.msra.gmra.mxu0 %vm78_vm0, %v3767_v21 }
 0xc5c   :  { %7448 = vmatpush3.msra.mxu0 %v8553_v26  ;;  %7451 = vmatprep.mubr.msk.f32.mxu0 %vm78_vm0, %v8621_v45  ;;  %v8752_v26 = vpop.f32.mrf.mxu1 }
 0xc5d   :  { %7449 = vmatprep.subr.mxu0 %v8561_v27  ;;  %v4174_v18 = vadd.f32 %v8752_v26, %v8231_v47 }
 0xc5e   :  { %7450 = vmatpush3.msra.mxu0 %v8561_v27  ;;  %v8754_v27 = vpop.f32.mrf.mxu1 }
 0xc5f   :  { %7452 = vmatmul.mubr.msk.f32.vlgmr.msra.gmra.mxu0 %vm78_vm0, %v8630_v46  ;;  %7454 = vmatprep.subr.mxu0 %v8570_v29 }
 0xc60   :  { %7455 = vmatpush3.msra.mxu0 %v8570_v29  ;;  %7458 = vmatprep.mubr.msk.f32.mxu0 %vm78_vm0, %v3766_v19  ;;  %v4363_v29 = vpop.f32.mrf.mxu1 }
 0xc61   :  { %7456 = vmatprep.subr.mxu0 %v8578_v7 }
 0xc62   :  { %7457 = vmatpush3.msra.mxu0 %v8578_v7  ;;  %v7481_v7 = vpop.f32.mrf.mxu1 }
 0xc63   :  { %7459 = vmatmul.mubr.msk.f32.vlgmr.msra.gmra.mxu0 %vm78_vm0, %v3767_v21  ;;  %7468 = vmatprep.subr.mxu0 %v8586_v9 }
 0xc64   :  { %7469 = vmatpush3.msra.mxu0 %v8586_v9  ;;  %7472 = vmatprep.mubr.msk.f32.mxu0 %vm78_vm0, %v3766_v19  ;;  %v4503_v9 = vpop.f32.mrf.mxu1 }
 0xc65   :  { %7470 = vmatprep.subr.mxu0 %v8594_v11 }
 0xc66   :  { %7471 = vmatpush3.msra.mxu0 %v8594_v11  ;;  %v7495_v11 = vpop.f32.mrf.mxu1 }
 0xc67   :  { %7473 = vmatmul.mubr.msk.f32.vlgmr.msra.gmra.mxu0 %vm78_vm0, %v3767_v21  ;;  %7482 = vmatprep.subr.mxu0 %v7919_v4 }
 0xc68   :  { %7483 = vmatpush3.msra.mxu0 %v8733_v23  ;;  %7486 = vmatprep.mubr.msk.f32.mxu0 %vm7920_vm2, %v7919_v4 }
 0xc69   :  { %7484 = vmatprep.subr.mxu0 %v7919_v4 }
 0xc6a   :  { %7485 = vmatpush3.msra.mxu0 %v8741_v51 }
 0xc6b   :  { %7487 = vmatmul.mubr.f32.vlgmr.msra.gmra.mxu0 %v7919_v4  ;;  %7496 = vmatprep.subr.mxu0 %v7919_v4 }
 0xc6c   :  { %7500 = vmatprep.mubr.msk.f32.mxu0 %vm7920_vm2, %v7919_v4  ;;  %7497 = vmatpush3.msra.mxu0 %v8759_v22 }
 0xc6d   :  { %7498 = vmatprep.subr.mxu0 %v7919_v4 }
 0xc6e   :  { %7499 = vmatpush3.msra.mxu0 %v8766_v24 }
 0xc6f   :  { %7510 = vmatprep.subr.mxu0 %v7919_v4  ;;  %7501 = vmatmul.mubr.f32.vlgmr.msra.gmra.mxu0 %v7919_v4 }
 0xc70   :  { %7511 = vmatpush3.msra.mxu0 %v8774_v25  ;;  %7514 = vmatprep.mubr.msk.f32.mxu0 %vm7920_vm2, %v7919_v4 }
 0xc71   :  { %7512 = vmatprep.subr.mxu0 %v7919_v4 }
 0xc72   :  { %7513 = vmatpush3.msra.mxu0 %v8783_v15 }
 0xc73   :  { %7524 = vmatprep.subr.mxu0 %v7919_v4  ;;  %7515 = vmatmul.mubr.f32.vlgmr.msra.gmra.mxu0 %v7919_v4 }
 0xc74   :  { %7528 = vmatprep.mubr.msk.f32.mxu0 %vm7920_vm2, %v7919_v4 }
 0xd1b   :  { %v7446_v54 = vpop.f32.mrf.mxu0 }
 0xd1c   :  { %v3921_v57 = vadd.f32 %v7446_v54, %v7439_v16 }
 0xd1d   :  { %v3915_v39 = vpop.f32.mrf.mxu0 }
 0xd1e   :  { %v3925_v40 = vadd.f32 %v3921_v57, %v8218_v53  ;;  %v3916_v49 = vadd.f32 %v3915_v39, %v3834_v17 }
 0xd1f   :  { %v7453_v52 = vpop.f32.mrf.mxu0 }
 0xd20   :  { %v6802_v30 = vmul.f32 -1.442695, %v3925_v40  ;;  %v3924_v34 = vadd.f32 %v3916_v49, %v8218_v53 }
 0xd21   :  { %v4004_v56 = vpop.f32.mrf.mxu0 }
 0xd22   :  { %7765 = vpow2.f32 %v6802_v30  ;;  %v6801_v35 = vmul.f32 -1.442695, %v3924_v34 }
 0xd23   :  { %v7460_v0 = vpop.f32.mrf.mxu0 }
 0xd24   :  { %7767 = vpow2.f32 %v6801_v35  ;;  %v4085_v2 = vadd.f32 %v7460_v0, %v7453_v52 }
 0xd25   :  { %v4079_v43 = vpop.f32.mrf.mxu0 }
 0xd26   :  { %v4089_v8 = vadd.f32 %v4085_v2, %v8225_v20  ;;  %v4080_v44 = vadd.f32 %v4079_v43, %v4004_v56 }
 0xd27   :  { %v7474_v10 = vpop.f32.mrf.mxu0 }
 0xd28   :  { %v6808_v12 = vmul.f32 -1.442695, %v4089_v8  ;;  %v4088_v1 = vadd.f32 %v4080_v44, %v8225_v20  ;;  %v4249_v7 = vadd.f32 %v7474_v10, %v8235_v55 }
 0xd29   :  { %v4243_v3 = vpop.f32.mrf.mxu0 }
 0xd2a   :  { %v6807_v53 = vmul.f32 -1.442695, %v4088_v1  ;;  %7769 = vpow2.f32 %v6808_v12  ;;  %v4244_v17 = vadd.f32 %v4243_v3, %v8235_v55  ;;  %v8831_v1 = vld [vmem:[%s9147_s6 + $0x38] sm:$0xff]  ;;  %v8836_v3 = vld [vmem:[%s9147_s6 + $0x30] sm:$0xff] }
 0xd2b   :  { %v4433_v36 = vpop.f32.mrf.mxu0  ;;  %7504 = vmatpush3.msra.mxu1 %v8831_v1 }
 0xd2c   :  { %v4434_v6 = vadd.f32 %v4433_v36, %v4363_v29  ;;  %7771 = vpow2.f32 %v6807_v53  ;;  %v4169_v29 = vadd.f32 %v8754_v27, %v8231_v47  ;;  %7505 = vmatprep.subr.mxu1 %v7919_v4 }
 0xd2d   :  { %v7488_v38 = vpop.f32.mrf.mxu0  ;;  %7506 = vmatpush3.msra.mxu1 %v8836_v3 }
 0xd2e   :  { %v4507_v42 = vadd.f32 %v4503_v9, %v4434_v6  ;;  %7517 = vmatprep.subr.mxu1 %v7919_v4 }
 0xd2f   :  { %v7766_v14 = vpop.eup %7765  ;;  %v4599_v36 = vpop.f32.mrf.mxu0 }
 0xd30   :  { %v3933_v20 = vadd.f32 1.0, %v7766_v14  ;;  %v4508_v5 = vadd.f32 %v4507_v42, %v8802_v37 }
 0xd31   :  { %v7768_v13 = vpop.eup %7767  ;;  %v7502_v6 = vpop.f32.mrf.mxu0 }
 0xd32   :  { %7773 = vrcp.f32 %v3933_v20  ;;  %v3932_v31 = vadd.f32 1.0, %v7768_v13  ;;  %v6813_v0 = vmul.f32 -1.442695, %v4508_v5  ;;  %v8853_v20 = vrot.slane %v8797_v28, %v68_v62 }
 0xd33   :  { %7775 = vtanh.f32 %v4508_v5 }
 0xd34   :  { %7777 = vrcp.f32 %v3932_v31 }
 0xd37   :  { %v7770_v32 = vpop.eup %7769 }
 0xd38   :  { %v4097_v63 = vadd.f32 1.0, %v7770_v32 }
 0xd39   :  { %v7772_v60 = vpop.eup %7771 }
 0xd3a   :  { %v4096_v50 = vadd.f32 1.0, %v7772_v60  ;;  %7779 = vrcp.f32 %v4097_v63 }
 0xd3c   :  { %7781 = vrcp.f32 %v4096_v50 }
 0xd3f   :  { %v7774_v19 = vpop.eup %7773 }
 0xd40   :  { %v7776_v21 = vpop.eup %7775  ;;  %v4253_v9 = vmul.f32 %v7774_v19, %v4174_v18 }
 0xd41   :  { %v7778_v11 = vpop.eup %7777  ;;  %4518 = vrot.lane.b32.xlu0 %v7776_v21, %s7921_s23 }
 0xd42   :  { %v4255_v16 = vadd.f32 %v4253_v9, %v4249_v7  ;;  %v4252_v54 = vmul.f32 %v7778_v11, %v4169_v29  ;;  %v8864_v11 = vld [vmem:[%s9147_s6 + $0x58] sm:$0xff] }
 0xd44   :  { %7783 = vtanh.f32 %v4255_v16  ;;  %v4254_v26 = vadd.f32 %v4252_v54, %v4244_v17  ;;  %v8869_v16 = vld [vmem:[%s9147_s6 + $0x50] sm:$0xff]  ;;  %v4769_v54 = vpop.f32.mrf.mxu0 }
 0xd46   :  { %7785 = vtanh.f32 %v4254_v26  ;;  %v7516_v26 = vpop.f32.mrf.mxu0 }
 0xd47   :  { %v7780_v57 = vpop.eup %7779  ;;  %7787 = vpow2.f32 %v6813_v0 }
 0xd48   :  { %v4259_v40 = vsub.f32 1.0, %v7780_v57  ;;  %v4263_v52 = vmul.f32 %v7780_v57, %v8630_v46 }
 0xd49   :  { %v7782_v39 = vpop.eup %7781 }
 0xd4a   :  { %v4258_v49 = vsub.f32 1.0, %v7782_v39  ;;  %v4262_v55 = vmul.f32 %v7782_v39, %v8621_v45 }
 0xd51   :  { %v7784_v47 = vpop.eup %7783 }
 0xd52   :  { %v4261_v27 = vmul.f32 %v7784_v47, %v4259_v40  ;;  %v8887_v47 = vrot.slane %v8797_v28, %v72_v41 }
 0xd53   :  { %v7786_v30 = vpop.eup %7785 }
 0xd54   :  { %v4260_v34 = vmul.f32 %v7786_v30, %v4258_v49  ;;  %v8813_v56 = vadd.f32 %v4263_v52, %v4261_v27  ;;  %v7788_v46 = vpop.eup %7787 }
 0xd55   :  { %v4512_v2 = vadd.f32 1.0, %v7788_v46 }
 0xd56   :  { %7525 = vmatpush3.xpose.msk.msra.mxu0 %vm78_vm0, %v8813_v56  ;;  %v8819_v35 = vadd.f32 %v4262_v55, %v4260_v34 }
 0xd57   :  { %7526 = vmatprep.subr.mxu0 %v7919_v4  ;;  %7789 = vrcp.f32 %v4512_v2 }
 0xd5a   :  { %7527 = vmatpush3.xpose.msk.msra.mxu0 %vm78_vm0, %v8819_v35 }
 0xd5b   :  { %7545 = vmatprep.subr.mxu0 %v7919_v4 }
 0xd64   :  { %v7790_v43 = vpop.eup %7789 }
 0xd65   :  { %v4516_v45 = vmul.f32 0.0, %v7790_v43 }
 0xdb3   :  { %v4519_v8 = vpop.permute.xlu0 %4518 }
 0xdb4   :  { %v4521_v44 = vmul.f32 %v7790_v43, %v4519_v8 }
 0xdb6   :  { %4523 = vrot.lane.b32.xlu0 %v4521_v44, %s7922_s4 }
 0xe28   :  { %v4524_v10 = vpop.permute.xlu0 %4523 }
 0xe29   :  { %v8825_v12 = vadd.f32 %v4524_v10, %v4516_v45 }
 0xe2b   :  { %7791 = vtanh.f32 %v8825_v12 }
 0xe38   :  { %v7792_v53 = vpop.eup %7791 }
 0xe39   :  { %4529 = vrot.lane.b32.xlu1 %v7792_v53, %s7923_s27 }
 0xeab   :  { %v4530_v38 = vpop.permute.xlu1 %4529 }
 0xeac   :  { %v4532_v42 = vmul.f32 %v7790_v43, %v4530_v38 }
 0xeae   :  { %4604 = vrot.lane.b32.xlu1 %v4532_v42, %s7924_s28 }
 0xf20   :  { %v8844_v14 = vpop.permute.xlu1 %4604 }
 0xf21   :  { %7508 = vmatmul.mubr.msk.f32.vlgmr.msra.gmra.mxu1 %vm78_vm0, %v8844_v14 }
 0xf22   :  { %7521 = vmatprep.mubr.msk.f32.mxu1 %vm7920_vm2, %v7919_v4  ;;  %7518 = vmatpush3.msra.mxu1 %v8864_v11 }
 0xf23   :  { %7519 = vmatprep.subr.mxu1 %v7919_v4 }
 0xf24   :  { %7520 = vmatpush3.msra.mxu1 %v8869_v16 }
 0xf25   :  { %7531 = vmatprep.subr.mxu1 %v7919_v4 }
 0xfe1   :  { %v4674_v5 = vpop.f32.mrf.mxu1 }
 0xfe2   :  { %v4675_v13 = vadd.f32 %v4674_v5, %v4599_v36  ;;  %v8930_v36 = vld [vmem:[%s9144_s3] sm:$0x3] }
 0xfe3   :  { %v7509_v31 = vpop.f32.mrf.mxu1  ;;  %vm4293_vm3 = vcmp.gt.f32.partialorder %v8930_v36, 0.0  ;;  %v6526_v36 = vld [vmem:[%s9148_s7 + $0x10] sm:$0xff] }
 0xfe4   :  { %v4678_v32 = vadd.f32 %v4675_v13, %v8853_v20 }
 0xfe6   :  { %7793 = vtanh.f32 %v4678_v32  ;;  %v6815_v63 = vmul.f32 -1.442695, %v4678_v32 }
 0xfe8   :  { %7795 = vpow2.f32 %v6815_v63 }
 0xff3   :  { %v7794_v60 = vpop.eup %7793 }
 0xff4   :  { %4688 = vrot.lane.b32.xlu0 %v7794_v60, %s7921_s23 }
 0xff5   :  { %v7796_v18 = vpop.eup %7795 }
 0xff6   :  { %v4682_v50 = vadd.f32 1.0, %v7796_v18 }
 0xff8   :  { %7797 = vrcp.f32 %v4682_v50 }
0x1005   :  { %v7798_v19 = vpop.eup %7797 }
0x1006   :  { %v4686_v62 = vmul.f32 0.0, %v7798_v19 }
0x1066   :  { %v4689_v21 = vpop.permute.xlu0 %4688 }
0x1067   :  { %v4691_v29 = vmul.f32 %v7798_v19, %v4689_v21 }
0x1069   :  { %4693 = vrot.lane.b32.xlu1 %v4691_v29, %s7922_s4 }
0x10db   :  { %v4694_v7 = vpop.permute.xlu1 %4693 }
0x10dc   :  { %v8858_v9 = vadd.f32 %v4694_v7, %v4686_v62 }
0x10de   :  { %7799 = vtanh.f32 %v8858_v9 }
0x10eb   :  { %v7800_v17 = vpop.eup %7799 }
0x10ec   :  { %4699 = vrot.lane.b32.xlu0 %v7800_v17, %s7923_s27 }
0x115e   :  { %v4700_v57 = vpop.permute.xlu0 %4699 }
0x115f   :  { %v4702_v39 = vmul.f32 %v7798_v19, %v4700_v57 }
0x1161   :  { %4774 = vrot.lane.b32.xlu1 %v4702_v39, %s7924_s28 }
0x11d3   :  { %v4775_v40 = vpop.permute.xlu1 %4774 }
0x11d4   :  { %7522 = vmatmul.mubr.msk.f32.vlgmr.msra.gmra.mxu1 %vm78_vm0, %v4775_v40 }
0x11d5   :  { %7532 = vmatpush3.msra.mxu1 %v8813_v56  ;;  %7535 = vmatprep.mubr.msk.f32.mxu1 %vm7920_vm2, %v7919_v4 }
0x11d6   :  { %7533 = vmatprep.subr.mxu1 %v7919_v4 }
0x11d7   :  { %7534 = vmatpush3.msra.mxu1 %v8819_v35 }
0x11d8   :  { %7538 = vmatprep.subr.mxu1 %v7919_v4 }
0x1294   :  { %v4844_v27 = vpop.f32.mrf.mxu1 }
0x1295   :  { %v4845_v49 = vadd.f32 %v4844_v27, %v4769_v54 }
0x1296   :  { %v7523_v52 = vpop.f32.mrf.mxu1 }
0x1297   :  { %v4848_v30 = vadd.f32 %v4845_v49, %v8887_v47 }
0x1299   :  { %7801 = vtanh.f32 %v4848_v30  ;;  %v6817_v55 = vmul.f32 -1.442695, %v4848_v30 }
0x129b   :  { %7803 = vpow2.f32 %v6817_v55 }
0x12a6   :  { %v7802_v34 = vpop.eup %7801 }
0x12a7   :  { %4858 = vrot.lane.b32.xlu0 %v7802_v34, %s7921_s23 }
0x12a8   :  { %v7804_v0 = vpop.eup %7803 }
0x12a9   :  { %v4852_v46 = vadd.f32 1.0, %v7804_v0 }
0x12ab   :  { %7805 = vrcp.f32 %v4852_v46 }
0x12b8   :  { %v7806_v2 = vpop.eup %7805 }
0x12b9   :  { %v4856_v41 = vmul.f32 0.0, %v7806_v2 }
0x1319   :  { %v4859_v43 = vpop.permute.xlu0 %4858 }
0x131a   :  { %v4861_v48 = vmul.f32 %v7806_v2, %v4859_v43 }
0x131c   :  { %4863 = vrot.lane.b32.xlu1 %v4861_v48, %s7922_s4 }
0x138e   :  { %v4864_v28 = vpop.permute.xlu1 %4863 }
0x138f   :  { %v8892_v8 = vadd.f32 %v4864_v28, %v4856_v41 }
0x1391   :  { %7807 = vtanh.f32 %v8892_v8 }
0x139e   :  { %v7808_v44 = vpop.eup %7807 }
0x139f   :  { %4869 = vrot.lane.b32.xlu0 %v7808_v44, %s7923_s27 }
0x1411   :  { %v4870_v45 = vpop.permute.xlu0 %4869 }
0x1412   :  { %v4872_v10 = vmul.f32 %v7806_v2, %v4870_v45 }
0x1414   :  { %4874 = vrot.lane.b32.xlu1 %v4872_v10, %s7924_s28 }
0x1486   :  { %v4875_v53 = vpop.permute.xlu1 %4874 }
0x1487   :  { %7529 = vmatmul.mubr.msk.f32.vlgmr.msra.gmra.mxu0 %vm78_vm0, %v4875_v53 }
0x1488   :  { %7546 = vmatpush3.msra.mxu0 %v8733_v23  ;;  %7549 = vmatprep.mubr.msk.f32.mxu0 %vm7920_vm2, %v7919_v4 }
0x1489   :  { %7547 = vmatprep.subr.mxu0 %v7919_v4 }
0x148a   :  { %7548 = vmatpush3.msra.mxu0 %v8741_v51 }
0x148b   :  { %7559 = vmatprep.subr.mxu0 %v7919_v4  ;;  %7550 = vmatmul.mubr.msk.f32.vlgmr.msra.gmra.mxu0 %vm78_vm0, %v4875_v53 }
0x148c   :  { %7560 = vmatpush3.msra.mxu0 %v8759_v22  ;;  %7563 = vmatprep.mubr.msk.f32.mxu0 %vm7920_vm2, %v7919_v4 }
0x148d   :  { %7561 = vmatprep.subr.mxu0 %v7919_v4 }
0x148e   :  { %7562 = vmatpush3.msra.mxu0 %v8766_v24 }
0x148f   :  { %7573 = vmatprep.subr.mxu0 %v7919_v4  ;;  %7564 = vmatmul.mubr.msk.f32.vlgmr.msra.gmra.mxu0 %vm78_vm0, %v4775_v40 }
0x1490   :  { %7574 = vmatpush3.msra.mxu0 %v8774_v25  ;;  %7577 = vmatprep.mubr.msk.f32.mxu0 %vm7920_vm2, %v7919_v4 }
0x1491   :  { %7575 = vmatprep.subr.mxu0 %v7919_v4 }
0x1492   :  { %7576 = vmatpush3.msra.mxu0 %v8783_v15 }
0x1493   :  { %7587 = vmatprep.subr.mxu0 %v7919_v4  ;;  %7578 = vmatmul.mubr.msk.f32.vlgmr.msra.gmra.mxu0 %vm78_vm0, %v4875_v53 }
0x1494   :  { %7588 = vmatpush3.xpose.msk.msra.mxu0 %vm78_vm0, %v8813_v56  ;;  %7591 = vmatprep.mubr.msk.f32.mxu0 %vm7920_vm2, %v7919_v4 }
0x1495   :  { %7589 = vmatprep.subr.mxu0 %v7919_v4 }
0x1498   :  { %7590 = vmatpush3.xpose.msk.msra.mxu0 %vm78_vm0, %v8819_v35 }
0x1499   :  { %7608 = vmatprep.subr.mxu0 %v7919_v4 }
0x1547   :  { %v4950_v6 = vpop.f32.mrf.mxu0 }
0x1548   :  { %v4954_v38 = vsel %vm4293_vm3, %v4950_v6, -1e+30 }
0x1549   :  { %v7530_v42 = vpop.f32.mrf.mxu0  ;;  %v4956_v5 = vsel %vm4955_vm4, %v4954_v38, -inf }
0x154a   :  { %4957 = vmax.xlane.f32.xlu0 %v4956_v5 }
0x154b   :  { %v5181_v13 = vpop.f32.mrf.mxu0 }
0x154d   :  { %v7551_v31 = vpop.f32.mrf.mxu0 }
0x154f   :  { %v8936_v32 = vpop.f32.mrf.mxu0 }
0x1551   :  { %v7565_v60 = vpop.f32.mrf.mxu0 }
0x1553   :  { %v8938_v63 = vpop.f32.mrf.mxu0 }
0x1555   :  { %v7579_v18 = vpop.f32.mrf.mxu0 }
0x15d3   :  { %v4958_v50 = vpop.xlane.xlu0 %4957 }
0x15d4   :  { %v4959_v19 = vsub.f32 %v4954_v38, %v4958_v50 }
0x15d6   :  { %v4960_v21 = vmul.f32 1.442695, %v4959_v19 }
0x15d8   :  { %7809 = vpow2.f32 %v4960_v21 }
0x15e5   :  { %v7810_v29 = vpop.eup %7809 }
0x15e6   :  { %v4962_v62 = vsel %vm4293_vm3, %v7810_v29, 0.0 }
0x15e7   :  { %v4963_v7 = vsel %vm4955_vm4, %v4962_v62, 0.0 }
0x15e8   :  { %4964 = vadd.xlane.f32.xlu1 %v4963_v7 }
0x1671   :  { %v4965_v17 = vpop.xlane.xlu1 %4964 }
0x1672   :  { %v4966_v54 = vmax.f32 %v4965_v17, 1e-30 }
0x1674   :  { %7811 = vrcp.f32 %v4966_v54 }
0x1681   :  { %v7812_v26 = vpop.eup %7811 }
0x1682   :  { %v4968_v57 = vmul.f32 %v7812_v26, %v4962_v62 }
0x1684   :  { %7536 = vmatmul.mubr.msk.f32.vlgmr.msra.gmra.mxu1 %vm78_vm0, %v4968_v57 }
0x1685   :  { %7539 = vmatpush3.msra.mxu1 %v8676_v33  ;;  %7542 = vmatprep.mubr.msk.f32.mxu1 %vm7920_vm2, %v7919_v4 }
0x1686   :  { %7540 = vmatprep.subr.mxu1 %v7919_v4 }
0x1687   :  { %7541 = vmatpush3.msra.mxu1 %v8683_v58 }
0x1688   :  { %7552 = vmatprep.subr.mxu1 %v7919_v4 }
0x1744   :  { %v5038_v39 = vpop.f32.mrf.mxu1 }
0x1745   :  { %7543 = vmatmul.mubr.msk.f32.vlgmr.msra.gmra.mxu1 %vm78_vm0, %v5038_v39 }
0x1746   :  { %v7537_v40 = vpop.f32.mrf.mxu1  ;;  %7553 = vmatpush3.msra.mxu1 %v8693_v59  ;;  %7556 = vmatprep.mubr.msk.f32.mxu1 %vm7920_vm2, %v7919_v4 }
0x1747   :  { %7554 = vmatprep.subr.mxu1 %v7919_v4 }
0x1748   :  { %7555 = vmatpush3.msra.mxu1 %v8702_v61 }
0x1749   :  { %7557 = vmatmul.mubr.msk.f32.vlgmr.msra.gmra.mxu1 %vm78_vm0, %v8844_v14  ;;  %7566 = vmatprep.subr.mxu1 %v7919_v4 }
0x174a   :  { %7567 = vmatpush3.msra.mxu1 %v8831_v1  ;;  %7570 = vmatprep.mubr.msk.f32.mxu1 %vm7920_vm2, %v7919_v4 }
0x174b   :  { %7568 = vmatprep.subr.mxu1 %v7919_v4 }
0x174c   :  { %7569 = vmatpush3.msra.mxu1 %v8836_v3 }
0x174d   :  { %7580 = vmatprep.subr.mxu1 %v7919_v4 }
0x1805   :  { %v5111_v27 = vpop.f32.mrf.mxu1 }
0x1806   :  { %v5182_v52 = vadd.f32 %v5181_v13, %v5111_v27 }
0x1807   :  { %v7544_v49 = vpop.f32.mrf.mxu1 }
0x1809   :  { %v5251_v30 = vpop.f32.mrf.mxu1 }
0x180a   :  { %v5255_v34 = vadd.f32 %v5251_v30, %v5182_v52 }
0x180b   :  { %v7558_v55 = vpop.f32.mrf.mxu1 }
0x180c   :  { %v5256_v14 = vadd.f32 %v5255_v34, %v8802_v37 }
0x180e   :  { %7813 = vtanh.f32 %v5256_v14  ;;  %v6825_v46 = vmul.f32 -1.442695, %v5256_v14 }
0x1810   :  { %7815 = vpow2.f32 %v6825_v46 }
0x181b   :  { %v7814_v0 = vpop.eup %7813 }
0x181c   :  { %5266 = vrot.lane.b32.xlu0 %v7814_v0, %s7921_s23 }
0x181d   :  { %v7816_v2 = vpop.eup %7815 }
0x181e   :  { %v5260_v43 = vadd.f32 1.0, %v7816_v2 }
0x1820   :  { %7817 = vrcp.f32 %v5260_v43 }
0x182d   :  { %v7818_v48 = vpop.eup %7817 }
0x182e   :  { %v5264_v44 = vmul.f32 %v7818_v48, %v8825_v12 }
0x188e   :  { %v5267_v41 = vpop.permute.xlu0 %5266 }
0x188f   :  { %v5269_v28 = vmul.f32 %v7818_v48, %v5267_v41 }
0x1891   :  { %5271 = vrot.lane.b32.xlu1 %v5269_v28, %s7922_s4 }
0x1903   :  { %v5272_v45 = vpop.permute.xlu1 %5271 }
0x1904   :  { %v8969_v10 = vadd.f32 %v5272_v45, %v5264_v44 }
0x1906   :  { %7819 = vtanh.f32 %v8969_v10 }
0x1913   :  { %v7820_v53 = vpop.eup %7819 }
0x1914   :  { %5277 = vrot.lane.b32.xlu0 %v7820_v53, %s7923_s27 }
0x1986   :  { %v5278_v6 = vpop.permute.xlu0 %5277 }
0x1987   :  { %v5280_v38 = vmul.f32 %v7818_v48, %v5278_v6 }
0x1989   :  { %5352 = vrot.lane.b32.xlu1 %v5280_v38, %s7924_s28 }
0x19fb   :  { %v8974_v42 = vpop.permute.xlu1 %5352 }
0x19fc   :  { %7571 = vmatmul.mubr.msk.f32.vlgmr.msra.gmra.mxu1 %vm78_vm0, %v8974_v42 }
0x19fd   :  { %7581 = vmatpush3.msra.mxu1 %v8864_v11  ;;  %7584 = vmatprep.mubr.msk.f32.mxu1 %vm7920_vm2, %v7919_v4 }
0x19fe   :  { %7582 = vmatprep.subr.mxu1 %v7919_v4 }
0x19ff   :  { %7583 = vmatpush3.msra.mxu1 %v8869_v16 }
0x1a00   :  { %7594 = vmatprep.subr.mxu1 %v7919_v4 }
0x1abc   :  { %v5422_v12 = vpop.f32.mrf.mxu1 }
0x1abd   :  { %v5423_v5 = vadd.f32 %v5422_v12, %v8936_v32 }
0x1abe   :  { %v7572_v13 = vpop.f32.mrf.mxu1 }
0x1abf   :  { %v5426_v31 = vadd.f32 %v5423_v5, %v8853_v20 }
0x1ac1   :  { %7821 = vtanh.f32 %v5426_v31  ;;  %v6828_v18 = vmul.f32 -1.442695, %v5426_v31 }
0x1ac3   :  { %7823 = vpow2.f32 %v6828_v18 }
0x1ace   :  { %v7822_v60 = vpop.eup %7821 }
0x1acf   :  { %5436 = vrot.lane.b32.xlu0 %v7822_v60, %s7921_s23 }
0x1ad0   :  { %v7824_v50 = vpop.eup %7823 }
0x1ad1   :  { %v5430_v19 = vadd.f32 1.0, %v7824_v50 }
0x1ad3   :  { %7825 = vrcp.f32 %v5430_v19 }
0x1ae0   :  { %v7826_v21 = vpop.eup %7825 }
0x1ae1   :  { %v5434_v7 = vmul.f32 %v7826_v21, %v8858_v9 }
0x1b41   :  { %v5437_v29 = vpop.permute.xlu0 %5436 }
0x1b42   :  { %v5439_v62 = vmul.f32 %v7826_v21, %v5437_v29 }
0x1b44   :  { %5441 = vrot.lane.b32.xlu1 %v5439_v62, %s7922_s4 }
0x1bb6   :  { %v5442_v32 = vpop.permute.xlu1 %5441 }
0x1bb7   :  { %v8989_v17 = vadd.f32 %v5442_v32, %v5434_v7 }
0x1bb9   :  { %7827 = vtanh.f32 %v8989_v17 }
0x1bc6   :  { %v7828_v54 = vpop.eup %7827 }
0x1bc7   :  { %5447 = vrot.lane.b32.xlu0 %v7828_v54, %s7923_s27 }
0x1c39   :  { %v5448_v26 = vpop.permute.xlu0 %5447 }
0x1c3a   :  { %v5450_v57 = vmul.f32 %v7826_v21, %v5448_v26 }
0x1c3c   :  { %5522 = vrot.lane.b32.xlu1 %v5450_v57, %s7924_s28 }
0x1cae   :  { %v5523_v39 = vpop.permute.xlu1 %5522 }
0x1caf   :  { %7585 = vmatmul.mubr.msk.f32.vlgmr.msra.gmra.mxu1 %vm78_vm0, %v5523_v39 }
0x1cb0   :  { %7595 = vmatpush3.msra.mxu1 %v8813_v56  ;;  %7598 = vmatprep.mubr.msk.f32.mxu1 %vm7920_vm2, %v7919_v4 }
0x1cb1   :  { %7596 = vmatprep.subr.mxu1 %v7919_v4 }
0x1cb2   :  { %7597 = vmatpush3.msra.mxu1 %v8819_v35 }
0x1cb3   :  { %7601 = vmatprep.subr.mxu1 %v7919_v4 }
0x1d6f   :  { %v5592_v9 = vpop.f32.mrf.mxu1 }
0x1d70   :  { %v5593_v40 = vadd.f32 %v5592_v9, %v8938_v63 }
0x1d71   :  { %v7586_v27 = vpop.f32.mrf.mxu1 }
0x1d72   :  { %v5596_v49 = vadd.f32 %v5593_v40, %v8887_v47 }
0x1d74   :  { %7829 = vtanh.f32 %v5596_v49  ;;  %v6831_v30 = vmul.f32 -1.442695, %v5596_v49 }
0x1d76   :  { %7831 = vpow2.f32 %v6831_v30 }
0x1d81   :  { %v7830_v52 = vpop.eup %7829 }
0x1d82   :  { %5606 = vrot.lane.b32.xlu0 %v7830_v52, %s7921_s23 }
0x1d83   :  { %v7832_v34 = vpop.eup %7831 }
0x1d84   :  { %v5600_v55 = vadd.f32 1.0, %v7832_v34 }
0x1d86   :  { %7833 = vrcp.f32 %v5600_v55 }
0x1d93   :  { %v7834_v14 = vpop.eup %7833 }
0x1d94   :  { %v5604_v2 = vmul.f32 %v7834_v14, %v8892_v8 }
0x1df4   :  { %v5607_v0 = vpop.permute.xlu0 %5606 }
0x1df5   :  { %v5609_v46 = vmul.f32 %v7834_v14, %v5607_v0 }
0x1df7   :  { %5611 = vrot.lane.b32.xlu1 %v5609_v46, %s7922_s4 }
0x1e69   :  { %v5612_v63 = vpop.permute.xlu1 %5611 }
0x1e6a   :  { %v9006_v43 = vadd.f32 %v5612_v63, %v5604_v2 }
0x1e6c   :  { %7835 = vtanh.f32 %v9006_v43 }
0x1e79   :  { %v7836_v48 = vpop.eup %7835 }
0x1e7a   :  { %5617 = vrot.lane.b32.xlu0 %v7836_v48, %s7923_s27 }
0x1eec   :  { %v5618_v41 = vpop.permute.xlu0 %5617 }
0x1eed   :  { %v5620_v28 = vmul.f32 %v7834_v14, %v5618_v41 }
0x1eef   :  { %5622 = vrot.lane.b32.xlu1 %v5620_v28, %s7924_s28 }
0x1f61   :  { %v5623_v44 = vpop.permute.xlu1 %5622 }
0x1f62   :  { %7592 = vmatmul.mubr.msk.f32.vlgmr.msra.gmra.mxu0 %vm78_vm0, %v5623_v44 }
0x1f63   :  { %7609 = vmatpush3.msra.mxu0 %v8733_v23  ;;  %7612 = vmatprep.mubr.msk.f32.mxu0 %vm7920_vm2, %v7919_v4 }
0x1f64   :  { %7610 = vmatprep.subr.mxu0 %v7919_v4 }
0x1f65   :  { %7611 = vmatpush3.msra.mxu0 %v8741_v51 }
0x1f66   :  { %7622 = vmatprep.subr.mxu0 %v7919_v4  ;;  %7613 = vmatmul.mubr.msk.f32.vlgmr.msra.gmra.mxu0 %vm78_vm0, %v5623_v44 }
0x1f67   :  { %7623 = vmatpush3.msra.mxu0 %v8759_v22  ;;  %7626 = vmatprep.mubr.msk.f32.mxu0 %vm7920_vm2, %v7919_v4 }
0x1f68   :  { %7624 = vmatprep.subr.mxu0 %v7919_v4 }
0x1f69   :  { %7625 = vmatpush3.msra.mxu0 %v8766_v24 }
0x1f6a   :  { %7636 = vmatprep.subr.mxu0 %v7919_v4  ;;  %7627 = vmatmul.mubr.msk.f32.vlgmr.msra.gmra.mxu0 %vm78_vm0, %v5523_v39 }
0x1f6b   :  { %7637 = vmatpush3.msra.mxu0 %v8774_v25  ;;  %7640 = vmatprep.mubr.msk.f32.mxu0 %vm7920_vm2, %v7919_v4 }
0x1f6c   :  { %7638 = vmatprep.subr.mxu0 %v7919_v4 }
0x1f6d   :  { %7639 = vmatpush3.msra.mxu0 %v8783_v15 }
0x1f6e   :  { %7650 = vmatprep.subr.mxu0 %v7919_v4  ;;  %7641 = vmatmul.mubr.msk.f32.vlgmr.msra.gmra.mxu0 %vm78_vm0, %v5623_v44 }
0x1f6f   :  { %7651 = vmatpush3.xpose.msk.msra.mxu0 %vm78_vm0, %v8813_v56  ;;  %7654 = vmatprep.mubr.msk.f32.mxu0 %vm7920_vm2, %v7919_v4 }
0x1f70   :  { %7652 = vmatprep.subr.mxu0 %v7919_v4 }
0x1f73   :  { %7653 = vmatpush3.xpose.msk.msra.mxu0 %vm78_vm0, %v8819_v35 }
0x1f74   :  { %7671 = vmatprep.subr.mxu0 %v7919_v4 }
0x2022   :  { %v5692_v23 = vpop.f32.mrf.mxu0 }
0x2023   :  { %v5696_v51 = vsel %vm4293_vm3, %v5692_v23, -1e+30 }
0x2024   :  { %v7593_v22 = vpop.f32.mrf.mxu0  ;;  %v5697_v24 = vsel %vm4955_vm4, %v5696_v51, -inf }
0x2025   :  { %5698 = vmax.xlane.f32.xlu0 %v5697_v24 }
0x2026   :  { %v5922_v25 = vpop.f32.mrf.mxu0 }
0x2028   :  { %v7614_v15 = vpop.f32.mrf.mxu0 }
0x202a   :  { %v9044_v8 = vpop.f32.mrf.mxu0 }
0x202c   :  { %v7628_v45 = vpop.f32.mrf.mxu0 }
0x202e   :  { %v9046_v53 = vpop.f32.mrf.mxu0 }
0x2030   :  { %v7642_v6 = vpop.f32.mrf.mxu0 }
0x20ae   :  { %v5699_v38 = vpop.xlane.xlu0 %5698 }
0x20af   :  { %v5700_v12 = vsub.f32 %v5696_v51, %v5699_v38 }
0x20b1   :  { %v5701_v5 = vmul.f32 1.442695, %v5700_v12 }
0x20b3   :  { %7837 = vpow2.f32 %v5701_v5 }
0x20c0   :  { %v7838_v13 = vpop.eup %7837 }
0x20c1   :  { %v5703_v31 = vsel %vm4293_vm3, %v7838_v13, 0.0 }
0x20c2   :  { %v5704_v60 = vsel %vm4955_vm4, %v5703_v31, 0.0 }
0x20c3   :  { %5705 = vadd.xlane.f32.xlu1 %v5704_v60 }
0x214c   :  { %v5706_v18 = vpop.xlane.xlu1 %5705 }
0x214d   :  { %v5707_v50 = vmax.f32 %v5706_v18, 1e-30 }
0x214f   :  { %7839 = vrcp.f32 %v5707_v50  ;;  %v6525_v50 = vld [vmem:[%s9148_s7 + $0x8] sm:$0xff] }
0x215c   :  { %v7840_v19 = vpop.eup %7839 }
0x215d   :  { %v5709_v21 = vmul.f32 %v7840_v19, %v5703_v31 }
0x215f   :  { %7599 = vmatmul.mubr.msk.f32.vlgmr.msra.gmra.mxu1 %vm78_vm0, %v5709_v21 }
0x2160   :  { %7602 = vmatpush3.msra.mxu1 %v8676_v33  ;;  %7605 = vmatprep.mubr.msk.f32.mxu1 %vm7920_vm2, %v7919_v4 }
0x2161   :  { %7603 = vmatprep.subr.mxu1 %v7919_v4 }
0x2162   :  { %7604 = vmatpush3.msra.mxu1 %v8683_v58 }
0x2163   :  { %7615 = vmatprep.subr.mxu1 %v7919_v4 }
0x221f   :  { %v5779_v29 = vpop.f32.mrf.mxu1 }
0x2220   :  { %7606 = vmatmul.mubr.msk.f32.vlgmr.msra.gmra.mxu1 %vm78_vm0, %v5779_v29 }
0x2221   :  { %v7600_v62 = vpop.f32.mrf.mxu1  ;;  %7616 = vmatpush3.msra.mxu1 %v8693_v59  ;;  %7619 = vmatprep.mubr.msk.f32.mxu1 %vm7920_vm2, %v7919_v4 }
0x2222   :  { %7617 = vmatprep.subr.mxu1 %v7919_v4 }
0x2223   :  { %7618 = vmatpush3.msra.mxu1 %v8702_v61 }
0x2224   :  { %7620 = vmatmul.mubr.msk.f32.vlgmr.msra.gmra.mxu1 %vm78_vm0, %v8974_v42  ;;  %7629 = vmatprep.subr.mxu1 %v7919_v4 }
0x2225   :  { %7630 = vmatpush3.msra.mxu1 %v8831_v1  ;;  %7633 = vmatprep.mubr.msk.f32.mxu1 %vm7920_vm2, %v7919_v4 }
0x2226   :  { %7631 = vmatprep.subr.mxu1 %v7919_v4 }
0x2227   :  { %7632 = vmatpush3.msra.mxu1 %v8836_v3 }
0x2228   :  { %7643 = vmatprep.subr.mxu1 %v7919_v4 }
0x22e0   :  { %v5852_v33 = vpop.f32.mrf.mxu1 }
0x22e1   :  { %v5923_v59 = vadd.f32 %v5922_v25, %v5852_v33 }
0x22e2   :  { %v7607_v58 = vpop.f32.mrf.mxu1 }
0x22e4   :  { %v5992_v61 = vpop.f32.mrf.mxu1 }
0x22e5   :  { %v5996_v7 = vadd.f32 %v5992_v61, %v5923_v59 }
0x22e6   :  { %v7621_v32 = vpop.f32.mrf.mxu1 }
0x22e7   :  { %v5997_v42 = vadd.f32 %v5996_v7, %v8802_v37 }
0x22e9   :  { %7841 = vtanh.f32 %v5997_v42  ;;  %v6839_v1 = vmul.f32 -1.442695, %v5997_v42 }
0x22eb   :  { %7843 = vpow2.f32 %v6839_v1 }
0x22f6   :  { %v7842_v54 = vpop.eup %7841 }
0x22f7   :  { %6007 = vrot.lane.b32.xlu0 %v7842_v54, %s7921_s23 }
0x22f8   :  { %v7844_v26 = vpop.eup %7843 }
0x22f9   :  { %v6001_v57 = vadd.f32 1.0, %v7844_v26 }
0x22fb   :  { %7845 = vrcp.f32 %v6001_v57 }
0x2308   :  { %v7846_v3 = vpop.eup %7845 }
0x2309   :  { %v6005_v40 = vmul.f32 %v7846_v3, %v8969_v10 }
0x2369   :  { %v6008_v39 = vpop.permute.xlu0 %6007 }
0x236a   :  { %v6010_v9 = vmul.f32 %v7846_v3, %v6008_v39 }
0x236c   :  { %6012 = vrot.lane.b32.xlu1 %v6010_v9, %s7922_s4  ;;  %v6527_v9 = vld [vmem:[%s9148_s7 + $0x18] sm:$0xff] }
0x23de   :  { %v6013_v27 = vpop.permute.xlu1 %6012 }
0x23df   :  { %v6015_v49 = vadd.f32 %v6013_v27, %v6005_v40 }
0x23e1   :  { %7847 = vtanh.f32 %v6015_v49  ;;  %v6852_v49 = vld [vmem:[%s9148_s7 + $0x20] ss:$0 sm:$0xff] }
0x23ee   :  { %v7848_v37 = vpop.eup %7847 }
0x23ef   :  { %6018 = vrot.lane.b32.xlu0 %v7848_v37, %s7923_s27 }
0x2461   :  { %v6019_v52 = vpop.permute.xlu0 %6018 }
0x2462   :  { %v6021_v30 = vmul.f32 %v7846_v3, %v6019_v52 }
0x2464   :  { %6093 = vrot.lane.b32.xlu1 %v6021_v30, %s7924_s28 }
0x24d6   :  { %v6094_v34 = vpop.permute.xlu1 %6093 }
0x24d7   :  { %7634 = vmatmul.mubr.msk.f32.vlgmr.msra.gmra.mxu1 %vm78_vm0, %v6094_v34 }
0x24d8   :  { %7644 = vmatpush3.msra.mxu1 %v8864_v11  ;;  %7647 = vmatprep.mubr.msk.f32.mxu1 %vm7920_vm2, %v7919_v4 }
0x24d9   :  { %7645 = vmatprep.subr.mxu1 %v7919_v4 }
0x24da   :  { %7646 = vmatpush3.msra.mxu1 %v8869_v16 }
0x24db   :  { %7657 = vmatprep.subr.mxu1 %v7919_v4 }
0x2597   :  { %v6163_v10 = vpop.f32.mrf.mxu1 }
0x2598   :  { %v6164_v55 = vadd.f32 %v6163_v10, %v9044_v8 }
0x2599   :  { %v7635_v14 = vpop.f32.mrf.mxu1 }
0x259a   :  { %v6167_v0 = vadd.f32 %v6164_v55, %v8853_v20 }
0x259c   :  { %7849 = vtanh.f32 %v6167_v0  ;;  %v6842_v11 = vmul.f32 -1.442695, %v6167_v0 }
0x259e   :  { %7851 = vpow2.f32 %v6842_v11 }
0x25a9   :  { %v7850_v46 = vpop.eup %7849 }
0x25aa   :  { %6177 = vrot.lane.b32.xlu0 %v7850_v46, %s7921_s23 }
0x25ab   :  { %v7852_v2 = vpop.eup %7851 }
0x25ac   :  { %v6171_v63 = vadd.f32 1.0, %v7852_v2 }
0x25ae   :  { %7853 = vrcp.f32 %v6171_v63 }
0x25bb   :  { %v7854_v48 = vpop.eup %7853 }
0x25bc   :  { %v6175_v28 = vmul.f32 %v7854_v48, %v8989_v17 }
0x261c   :  { %v6178_v41 = vpop.permute.xlu0 %6177 }
0x261d   :  { %v6180_v16 = vmul.f32 %v7854_v48, %v6178_v41 }
0x261f   :  { %6182 = vrot.lane.b32.xlu1 %v6180_v16, %s7922_s4 }
0x2691   :  { %v6183_v44 = vpop.permute.xlu1 %6182 }
0x2692   :  { %v6185_v23 = vadd.f32 %v6183_v44, %v6175_v28 }
0x2694   :  { %7855 = vtanh.f32 %v6185_v23 }
0x26a1   :  { %v7856_v20 = vpop.eup %7855 }
0x26a2   :  { %6188 = vrot.lane.b32.xlu0 %v7856_v20, %s7923_s27 }
0x2714   :  { %v6189_v51 = vpop.permute.xlu0 %6188 }
0x2715   :  { %v6191_v22 = vmul.f32 %v7854_v48, %v6189_v51 }
0x2717   :  { %6263 = vrot.lane.b32.xlu1 %v6191_v22, %s7924_s28 }
0x2789   :  { %v6264_v24 = vpop.permute.xlu1 %6263 }
0x278a   :  { %7648 = vmatmul.mubr.msk.f32.vlgmr.msra.gmra.mxu1 %vm78_vm0, %v6264_v24 }
0x278b   :  { %7658 = vmatpush3.msra.mxu1 %v8813_v56  ;;  %7661 = vmatprep.mubr.msk.f32.mxu1 %vm7920_vm2, %v7919_v4 }
0x278c   :  { %7659 = vmatprep.subr.mxu1 %v7919_v4 }
0x278d   :  { %7660 = vmatpush3.msra.mxu1 %v8819_v35 }
0x278e   :  { %7664 = vmatprep.subr.mxu1 %v7919_v4 }
0x284a   :  { %v6333_v17 = vpop.f32.mrf.mxu1 }
0x284b   :  { %v6334_v25 = vadd.f32 %v6333_v17, %v9046_v53 }
0x284c   :  { %v7649_v15 = vpop.f32.mrf.mxu1 }
0x284d   :  { %v6337_v8 = vadd.f32 %v6334_v25, %v8887_v47 }
0x284f   :  { %7857 = vtanh.f32 %v6337_v8  ;;  %v6845_v56 = vmul.f32 -1.442695, %v6337_v8 }
0x2851   :  { %7859 = vpow2.f32 %v6845_v56 }
0x285c   :  { %v7858_v45 = vpop.eup %7857 }
0x285d   :  { %6347 = vrot.lane.b32.xlu0 %v7858_v45, %s7921_s23 }
0x285e   :  { %v7860_v6 = vpop.eup %7859 }
0x285f   :  { %v6341_v38 = vadd.f32 1.0, %v7860_v6 }
0x2861   :  { %7861 = vrcp.f32 %v6341_v38 }
0x286e   :  { %v7862_v12 = vpop.eup %7861 }
0x286f   :  { %v6345_v13 = vmul.f32 %v7862_v12, %v9006_v43  ;;  %v6524_v43 = vld [vmem:[%s9148_s7] sm:$0xff] }
0x28cf   :  { %v6348_v5 = vpop.permute.xlu0 %6347 }
0x28d0   :  { %v6350_v35 = vmul.f32 %v7862_v12, %v6348_v5 }
0x28d2   :  { %6352 = vrot.lane.b32.xlu1 %v6350_v35, %s7922_s4 }
0x2944   :  { %v6353_v53 = vpop.permute.xlu1 %6352 }
0x2945   :  { %v6355_v31 = vadd.f32 %v6353_v53, %v6345_v13 }
0x2947   :  { %7863 = vtanh.f32 %v6355_v31 }
0x2954   :  { %v7864_v47 = vpop.eup %7863 }
0x2955   :  { %6358 = vrot.lane.b32.xlu0 %v7864_v47, %s7923_s27 }
0x29c7   :  { %v6359_v60 = vpop.permute.xlu0 %6358 }
0x29c8   :  { %v6361_v18 = vmul.f32 %v7862_v12, %v6359_v60 }
0x29ca   :  { %6363 = vrot.lane.b32.xlu1 %v6361_v18, %s7924_s28 }
0x2a3c   :  { %v6364_v19 = vpop.permute.xlu1 %6363 }
0x2a3d   :  { %7655 = vmatmul.mubr.msk.f32.vlgmr.msra.gmra.mxu0 %vm78_vm0, %v6364_v19 }
0x2a3e   :  { %7672 = vmatpush3.msra.mxu0 %v6525_v50  ;;  %7675 = vmatprep.mubr.msk.f32.mxu0 %vm7920_vm2, %v7919_v4 }
0x2a3f   :  { %7673 = vmatprep.subr.mxu0 %v7919_v4 }
0x2a40   :  { %7674 = vmatpush3.msra.mxu0 %v6524_v43 }
0x2a41   :  { %7676 = vmatmul.mubr.msk.f32.vlgmr.msra.gmra.mxu0 %vm78_vm0, %v6364_v19 }
0x2afd   :  { %v6433_v21 = vpop.f32.mrf.mxu0 }
0x2afe   :  { %v6437_v29 = vsel %vm4293_vm3, %v6433_v21, -1e+30 }
0x2aff   :  { %v7656_v62 = vpop.f32.mrf.mxu0  ;;  %v6438_v33 = vsel %vm4955_vm4, %v6437_v29, -inf }
0x2b00   :  { %6439 = vmax.xlane.f32.xlu0 %v6438_v33 }
0x2b01   :  { %v6668_v58 = vpop.f32.mrf.mxu0 }
0x2b03   :  { %v7677_v59 = vpop.f32.mrf.mxu0 }
0x2b89   :  { %v6440_v61 = vpop.xlane.xlu0 %6439 }
0x2b8a   :  { %v6441_v7 = vsub.f32 %v6437_v29, %v6440_v61 }
0x2b8c   :  { %v6442_v32 = vmul.f32 1.442695, %v6441_v7 }
0x2b8e   :  { %7865 = vpow2.f32 %v6442_v32 }
0x2b9b   :  { %v7866_v42 = vpop.eup %7865 }
0x2b9c   :  { %v6444_v54 = vsel %vm4293_vm3, %v7866_v42, 0.0 }
0x2b9d   :  { %v6445_v1 = vsel %vm4955_vm4, %v6444_v54, 0.0 }
0x2b9e   :  { %6446 = vadd.xlane.f32.xlu1 %v6445_v1 }
0x2c27   :  { %v6447_v26 = vpop.xlane.xlu1 %6446 }
0x2c28   :  { %v6448_v57 = vmax.f32 %v6447_v26, 1e-30 }
0x2c2a   :  { %7867 = vrcp.f32 %v6448_v57 }
0x2c37   :  { %v7868_v3 = vpop.eup %7867 }
0x2c38   :  { %v6450_v39 = vmul.f32 %v7868_v3, %v6444_v54 }
0x2c3a   :  { %7662 = vmatmul.mubr.msk.f32.vlgmr.msra.gmra.mxu1 %vm78_vm0, %v6450_v39 }
0x2c3b   :  { %7665 = vmatpush3.msra.mxu1 %v6527_v9  ;;  %7668 = vmatprep.mubr.msk.f32.mxu1 %vm7920_vm2, %v7919_v4 }
0x2c3c   :  { %7666 = vmatprep.subr.mxu1 %v7919_v4 }
0x2c3d   :  { %7667 = vmatpush3.msra.mxu1 %v6526_v36 }
0x2cfa   :  { %v6520_v40 = vpop.f32.mrf.mxu1 }
0x2cfb   :  { %7669 = vmatmul.mubr.msk.f32.vlgmr.msra.gmra.mxu1 %vm78_vm0, %v6520_v40 }
0x2cfc   :  { %v7663_v27 = vpop.f32.mrf.mxu1 }
0x2dbb   :  { %v6598_v37 = vpop.f32.mrf.mxu1 }
0x2dbc   :  { %v6669_v52 = vadd.f32 %v6668_v58, %v6598_v37 }
0x2dbd   :  { %v7670_v30 = vpop.f32.mrf.mxu1 }
0x2dbe   :  { %v6676_v4 = vadd.f32 %v6852_v49, %v6669_v52 }
0x2dc0   :  { %6678 = vst.msk [vmem:[#allocation3] sm:$0x3] %vm6677_vm5, %v6676_v4 }
0x2dc1   :  { %7908 = shalt.err (!%p7905_p4)
}
0x2dc2   :  { %6688 = dma.vmem_to_hbm [thread:$0]  %s6686_s19, 32, %s9149_s8, [#allocation4]  }
0x2dc3   :  { %7917 = dma.done.wait [#allocation4], 32  }
0x2dc4   :  { %7918 = vsyncadd [#allocation4], 4294967264 }
0x2dc5   :  { %6692 = vsyncpa [#allocation4], 1 }

</bundles_post_ra>
